<compile_context>
chip_gen: v5e
topology: v5e:2x2
jax: 0.10.0
libtpu: 0.0.40
codegen_flags: <defaults>
</compile_context>

<pallas_src>
import functools

import jax
import jax.numpy as jnp
from jax import lax
from jax.experimental import pallas as pl
from jax.experimental.pallas import tpu as pltpu


def adversary_kernel(x_ref,
                     w1_ref, b1_ref,
                     w2_ref, b2_ref,
                     w3_ref, b3_ref,
                     w4_ref, b4_ref,
                     o_ref,
                     *, compute_dtype):
    cdt = compute_dtype

    # f32 -> bf16 cast happens here on the VPU (nearly free) instead of as a
    # separate XLA pass over x in HBM.
    h = x_ref[...].astype(jnp.bfloat16)

    def layer(h_b, w_ref, b_ref):
        acc = jnp.dot(h_b, w_ref[...], preferred_element_type=jnp.float32)
        a = acc.astype(cdt) + b_ref[...].astype(cdt)
        a = jnp.where(a > 0, a, 0.2 * a)               # LeakyReLU(0.2)
        return a.astype(jnp.bfloat16)                  # next MXU operand

    h = layer(h, w1_ref, b1_ref)                       # (tb, 512)
    h = layer(h, w2_ref, b2_ref)                       # (tb, 256)
    h = layer(h, w3_ref, b3_ref)                       # (tb, 128)

    # fc4 (128 -> 1) as a 1-row NT matmul: (1,128) . (tb,128)^T -> (1, tb).
    # Lane-major result -> unmasked full-width store below.
    out_row = lax.dot_general(
        w4_ref[...], h,
        dimension_numbers=(((1,), (1,)), ((), ())),
        preferred_element_type=jnp.float32)            # (1, tb) f32
    o_ref[...] = (out_row + b4_ref[...]).astype(o_ref.dtype)


def _round_up(x, m):
    return ((x + m - 1) // m) * m


def _default_compute_dtype():
    # bf16 VALUs exist on v6e / v7x; v5e and older keep f32 elementwise.
    try:
        kind = jax.devices()[0].device_kind.lower()
    except Exception:
        kind = ""
    return jnp.bfloat16 if ("v6" in kind or "v7" in kind) else jnp.float32


def adversary_forward(x, params, *, tb=None, compute_dtype=None):
    """x: (B, D) float32.  params: dict of bf16 weights / f32 biases."""
    B, D = x.shape
    w1, b1 = params["w1"], params["b1"]
    w2, b2 = params["w2"], params["b2"]
    w3, b3 = params["w3"], params["b3"]
    w4, b4 = params["w4"], params["b4"]

    if compute_dtype is None:
        compute_dtype = _default_compute_dtype()

    if tb is None:
        # Big tiles amortize per-step pipeline overhead; multiples of 256 fill
        # whole MXU row-passes.  Keep >=2 tiles for v7x megacore when B allows.
        tb = min(1024, _round_up(max(B, 1), 256))
        if B > 256 and pl.cdiv(B, tb) < 2:
            tb = _round_up(pl.cdiv(B, 2), 256)
    num_tiles = pl.cdiv(B, tb)

    def resident(shape):
        # Same block every grid step -> stays VMEM-resident across the grid.
        nd = len(shape)
        return pl.BlockSpec(shape, lambda i, _nd=nd: (0,) * _nd)

    flops = 2 * num_tiles * tb * (D * 512 + 512 * 256 + 256 * 128 + 128 * 1)
    bytes_accessed = (
        x.size * x.dtype.itemsize
        + sum(p.size * p.dtype.itemsize
              for p in (w1, b1, w2, b2, w3, b3, w4, b4))
        + num_tiles * tb * 4)

    kernel = functools.partial(adversary_kernel, compute_dtype=compute_dtype)

    out = pl.pallas_call(
        kernel,
        out_shape=jax.ShapeDtypeStruct((num_tiles, tb), jnp.float32),
        grid=(num_tiles,),
        in_specs=[
            pl.BlockSpec((tb, D), lambda i: (i, 0)),   # x: tiled over batch
            resident(w1.shape), resident(b1.shape),
            resident(w2.shape), resident(b2.shape),
            resident(w3.shape), resident(b3.shape),
            resident(w4.shape), resident(b4.shape),
        ],
        out_specs=pl.BlockSpec((1, tb), lambda i: (i, 0)),
        compiler_params=pltpu.CompilerParams(
            dimension_semantics=("parallel",)),        # megacore on v7x
        cost_estimate=pl.CostEstimate(
            flops=flops, transcendentals=0, bytes_accessed=bytes_accessed),
    )(x, w1, b1, w2, b2, w3, b3, w4, b4)

    # Lane-dense (num_tiles, tb) -> (B, 1); padded rows from the ragged last
    # tile are dropped here.
    return out.reshape(-1)[:B].reshape(B, 1)


def init_params(key, in_dim):
    """nn.Linear-style U(-1/sqrt(fan_in), +1/sqrt(fan_in)) init.

    Weights stored transposed vs. PyTorch as (in_features, out_features) in
    bf16 (MXU-native); w4 is stored as a (1, 128) row for the 1-row matmul.
    Biases are f32, shape (1, out_features).
    """
    dims = [in_dim, 512, 256, 128, 1]
    params = {}
    for i in range(4):
        fan_in, fan_out = dims[i], dims[i + 1]
        key, kw, kb = jax.random.split(key, 3)
        bound = 1.0 / jnp.sqrt(fan_in)
        w = jax.random.uniform(kw, (fan_in, fan_out), jnp.float32, -bound, bound)
        b = jax.random.uniform(kb, (1, fan_out), jnp.float32, -bound, bound)
        if i == 3:
            w = w.T  # (1, 128) row layout
        params[f"w{i+1}"] = w.astype(jnp.bfloat16)
        params[f"b{i+1}"] = b
    return params


def reference_forward(x, params, compute_dtype=jnp.float32):
    """Pure-JAX reference mirroring the kernel's dtype path."""
    h = x.astype(jnp.bfloat16)
    for i in range(1, 4):
        acc = jnp.dot(h, params[f"w{i}"], preferred_element_type=jnp.float32)
        a = acc.astype(compute_dtype) + params[f"b{i}"].astype(compute_dtype)
        a = jnp.where(a > 0, a, 0.2 * a)
        h = a.astype(jnp.bfloat16)
    out = jnp.dot(h, params["w4"].T, preferred_element_type=jnp.float32)
    return out + params["b4"]                           # (B, 1)


if __name__ == "__main__":
    H, W = 16, 16          # Adversary(H=16, W=16)
    B = 8                  # small batch; ragged tile handled by clamped DMAs
    in_dim = H * W

    key = jax.random.PRNGKey(0)
    key, kx = jax.random.split(key)
    x = jax.random.normal(kx, (B, in_dim), jnp.float32)
    params = init_params(key, in_dim)

    cdt = _default_compute_dtype()
    out = adversary_forward(x, params, compute_dtype=cdt)
    out = jax.block_until_ready(out)

    ref = reference_forward(x, params, compute_dtype=cdt)
    assert out.shape == (B, 1), out.shape
    assert jnp.allclose(out, ref, atol=2e-2, rtol=2e-2), "mismatch vs reference"

    print("KERNEL_OK")
</pallas_src>

<mosaic_0001>
module attributes {stable_mosaic.version = 11 : i64} {
  func.func @adversary_kernel(%arg0: i32, %arg1: memref<256x256xf32, #tpu.memory_space<vmem>>, %arg2: memref<256x512xbf16, #tpu.memory_space<vmem>>, %arg3: memref<1x512xf32, #tpu.memory_space<vmem>>, %arg4: memref<512x256xbf16, #tpu.memory_space<vmem>>, %arg5: memref<1x256xf32, #tpu.memory_space<vmem>>, %arg6: memref<256x128xbf16, #tpu.memory_space<vmem>>, %arg7: memref<1x128xf32, #tpu.memory_space<vmem>>, %arg8: memref<1x128xbf16, #tpu.memory_space<vmem>>, %arg9: memref<1x1xf32, #tpu.memory_space<vmem>>, %arg10: memref<1x256xf32, #tpu.memory_space<vmem>>) attributes {dimension_semantics = [#tpu.dimension_semantics<parallel>], iteration_bounds = array<i64: 1>, scalar_prefetch = 0 : i64, scratch_operands = 0 : i64, tpu.core_type = #tpu.core_type<tc>, window_params = [{transform_indices = @transform_0, window_bounds = array<i64: 256, 256>}, {pipeline_mode = #tpu.pipeline_mode<synchronous>, transform_indices = @transform_1, window_bounds = array<i64: 256, 512>}, {pipeline_mode = #tpu.pipeline_mode<synchronous>, transform_indices = @transform_2, window_bounds = array<i64: 1, 512>}, {pipeline_mode = #tpu.pipeline_mode<synchronous>, transform_indices = @transform_3, window_bounds = array<i64: 512, 256>}, {pipeline_mode = #tpu.pipeline_mode<synchronous>, transform_indices = @transform_4, window_bounds = array<i64: 1, 256>}, {pipeline_mode = #tpu.pipeline_mode<synchronous>, transform_indices = @transform_5, window_bounds = array<i64: 256, 128>}, {pipeline_mode = #tpu.pipeline_mode<synchronous>, transform_indices = @transform_6, window_bounds = array<i64: 1, 128>}, {pipeline_mode = #tpu.pipeline_mode<synchronous>, transform_indices = @transform_7, window_bounds = array<i64: 1, 128>}, {pipeline_mode = #tpu.pipeline_mode<synchronous>, transform_indices = @transform_8, window_bounds = array<i64: 1, 1>}, {transform_indices = @transform_9, window_bounds = array<i64: 1, 256>}]} {
    %c0 = arith.constant 0 : index
    %c0_0 = arith.constant 0 : index
    %0 = vector.load %arg1[%c0, %c0_0] : memref<256x256xf32, #tpu.memory_space<vmem>>, vector<256x256xf32>
    %1 = arith.truncf %0 : vector<256x256xf32> to vector<256x256xbf16>
    %c0_1 = arith.constant 0 : index
    %c0_2 = arith.constant 0 : index
    %2 = vector.load %arg2[%c0_1, %c0_2] : memref<256x512xbf16, #tpu.memory_space<vmem>>, vector<256x512xbf16>
    %cst = arith.constant dense<0.000000e+00> : vector<256x512xf32>
    %3 = tpu.matmul %1, %2, %cst {dimension_numbers = #tpu.dot_dimension_numbers<[1], [0], [0], [1], [0, 0, 1, 1], [], []>} : vector<256x256xbf16>, vector<256x512xbf16>, vector<256x512xf32> -> vector<256x512xf32>
    %c0_3 = arith.constant 0 : index
    %c0_4 = arith.constant 0 : index
    %4 = vector.load %arg3[%c0_3, %c0_4] : memref<1x512xf32, #tpu.memory_space<vmem>>, vector<1x512xf32>
    %5 = vector.broadcast %4 : vector<1x512xf32> to vector<256x512xf32>
    %6 = arith.addf %3, %5 : vector<256x512xf32>
    %cst_5 = arith.constant 0.000000e+00 : f32
    %7 = vector.broadcast %cst_5 : f32 to vector<256x512xf32>
    %8 = arith.cmpf ogt, %6, %7 : vector<256x512xf32>
    %cst_6 = arith.constant 2.000000e-01 : f32
    %9 = vector.broadcast %cst_6 : f32 to vector<256x512xf32>
    %10 = arith.mulf %9, %6 : vector<256x512xf32>
    %11 = arith.select %8, %6, %10 : vector<256x512xi1>, vector<256x512xf32>
    %12 = arith.truncf %11 : vector<256x512xf32> to vector<256x512xbf16>
    %c0_7 = arith.constant 0 : index
    %c0_8 = arith.constant 0 : index
    %13 = vector.load %arg4[%c0_7, %c0_8] : memref<512x256xbf16, #tpu.memory_space<vmem>>, vector<512x256xbf16>
    %cst_9 = arith.constant dense<0.000000e+00> : vector<256x256xf32>
    %14 = tpu.matmul %12, %13, %cst_9 {dimension_numbers = #tpu.dot_dimension_numbers<[1], [0], [0], [1], [0, 0, 1, 1], [], []>} : vector<256x512xbf16>, vector<512x256xbf16>, vector<256x256xf32> -> vector<256x256xf32>
    %c0_10 = arith.constant 0 : index
    %c0_11 = arith.constant 0 : index
    %15 = vector.load %arg5[%c0_10, %c0_11] : memref<1x256xf32, #tpu.memory_space<vmem>>, vector<1x256xf32>
    %16 = vector.broadcast %15 : vector<1x256xf32> to vector<256x256xf32>
    %17 = arith.addf %14, %16 : vector<256x256xf32>
    %cst_12 = arith.constant 0.000000e+00 : f32
    %18 = vector.broadcast %cst_12 : f32 to vector<256x256xf32>
    %19 = arith.cmpf ogt, %17, %18 : vector<256x256xf32>
    %cst_13 = arith.constant 2.000000e-01 : f32
    %20 = vector.broadcast %cst_13 : f32 to vector<256x256xf32>
    %21 = arith.mulf %20, %17 : vector<256x256xf32>
    %22 = arith.select %19, %17, %21 : vector<256x256xi1>, vector<256x256xf32>
    %23 = arith.truncf %22 : vector<256x256xf32> to vector<256x256xbf16>
    %c0_14 = arith.constant 0 : index
    %c0_15 = arith.constant 0 : index
    %24 = vector.load %arg6[%c0_14, %c0_15] : memref<256x128xbf16, #tpu.memory_space<vmem>>, vector<256x128xbf16>
    %cst_16 = arith.constant dense<0.000000e+00> : vector<256x128xf32>
    %25 = tpu.matmul %23, %24, %cst_16 {dimension_numbers = #tpu.dot_dimension_numbers<[1], [0], [0], [1], [0, 0, 1, 1], [], []>} : vector<256x256xbf16>, vector<256x128xbf16>, vector<256x128xf32> -> vector<256x128xf32>
    %c0_17 = arith.constant 0 : index
    %c0_18 = arith.constant 0 : index
    %26 = vector.load %arg7[%c0_17, %c0_18] : memref<1x128xf32, #tpu.memory_space<vmem>>, vector<1x128xf32>
    %27 = vector.broadcast %26 : vector<1x128xf32> to vector<256x128xf32>
    %28 = arith.addf %25, %27 : vector<256x128xf32>
    %cst_19 = arith.constant 0.000000e+00 : f32
    %29 = vector.broadcast %cst_19 : f32 to vector<256x128xf32>
    %30 = arith.cmpf ogt, %28, %29 : vector<256x128xf32>
    %cst_20 = arith.constant 2.000000e-01 : f32
    %31 = vector.broadcast %cst_20 : f32 to vector<256x128xf32>
    %32 = arith.mulf %31, %28 : vector<256x128xf32>
    %33 = arith.select %30, %28, %32 : vector<256x128xi1>, vector<256x128xf32>
    %34 = arith.truncf %33 : vector<256x128xf32> to vector<256x128xbf16>
    %c0_21 = arith.constant 0 : index
    %c0_22 = arith.constant 0 : index
    %35 = vector.load %arg8[%c0_21, %c0_22] : memref<1x128xbf16, #tpu.memory_space<vmem>>, vector<1x128xbf16>
    %cst_23 = arith.constant dense<0.000000e+00> : vector<1x256xf32>
    %36 = tpu.matmul %35, %34, %cst_23 {dimension_numbers = #tpu.dot_dimension_numbers<[1], [1], [0], [0], [0, 0, 1, 0], [], []>} : vector<1x128xbf16>, vector<256x128xbf16>, vector<1x256xf32> -> vector<1x256xf32>
    %c0_24 = arith.constant 0 : index
    %c0_25 = arith.constant 0 : index
    %37 = vector.load %arg9[%c0_24, %c0_25] : memref<1x1xf32, #tpu.memory_space<vmem>>, vector<1x1xf32>
    %38 = vector.broadcast %37 : vector<1x1xf32> to vector<1x256xf32>
    %39 = arith.addf %36, %38 : vector<1x256xf32>
    %c0_26 = arith.constant 0 : index
    %c0_27 = arith.constant 0 : index
    %40 = vector.load %arg10[%c0_26, %c0_27] : memref<1x256xf32, #tpu.memory_space<vmem>>, vector<1x256xf32>
    tpu.vector_store %arg10[%c0_26, %c0_27], %39 {strides = array<i32>} : memref<1x256xf32, #tpu.memory_space<vmem>>, vector<1x256xf32>,
    return
  }
  func.func @transform_0(%arg0: i32) -> (i32, i32) {
    %c0_i32 = arith.constant 0 : i32
    %c0_i32_0 = arith.constant 0 : i32
    return %arg0, %c0_i32 : i32, i32
  }
  func.func @transform_1(%arg0: i32) -> (i32, i32) {
    %c0_i32 = arith.constant 0 : i32
    %c0_i32_0 = arith.constant 0 : i32
    %c0_i32_1 = arith.constant 0 : i32
    return %c0_i32, %c0_i32_0 : i32, i32
  }
  func.func @transform_2(%arg0: i32) -> (i32, i32) {
    %c0_i32 = arith.constant 0 : i32
    %c0_i32_0 = arith.constant 0 : i32
    %c0_i32_1 = arith.constant 0 : i32
    return %c0_i32, %c0_i32_0 : i32, i32
  }
  func.func @transform_3(%arg0: i32) -> (i32, i32) {
    %c0_i32 = arith.constant 0 : i32
    %c0_i32_0 = arith.constant 0 : i32
    %c0_i32_1 = arith.constant 0 : i32
    return %c0_i32, %c0_i32_0 : i32, i32
  }
  func.func @transform_4(%arg0: i32) -> (i32, i32) {
    %c0_i32 = arith.constant 0 : i32
    %c0_i32_0 = arith.constant 0 : i32
    %c0_i32_1 = arith.constant 0 : i32
    return %c0_i32, %c0_i32_0 : i32, i32
  }
  func.func @transform_5(%arg0: i32) -> (i32, i32) {
    %c0_i32 = arith.constant 0 : i32
    %c0_i32_0 = arith.constant 0 : i32
    %c0_i32_1 = arith.constant 0 : i32
    return %c0_i32, %c0_i32_0 : i32, i32
  }
  func.func @transform_6(%arg0: i32) -> (i32, i32) {
    %c0_i32 = arith.constant 0 : i32
    %c0_i32_0 = arith.constant 0 : i32
    %c0_i32_1 = arith.constant 0 : i32
    return %c0_i32, %c0_i32_0 : i32, i32
  }
  func.func @transform_7(%arg0: i32) -> (i32, i32) {
    %c0_i32 = arith.constant 0 : i32
    %c0_i32_0 = arith.constant 0 : i32
    %c0_i32_1 = arith.constant 0 : i32
    return %c0_i32, %c0_i32_0 : i32, i32
  }
  func.func @transform_8(%arg0: i32) -> (i32, i32) {
    %c0_i32 = arith.constant 0 : i32
    %c0_i32_0 = arith.constant 0 : i32
    %c0_i32_1 = arith.constant 0 : i32
    return %c0_i32, %c0_i32_0 : i32, i32
  }
  func.func @transform_9(%arg0: i32) -> (i32, i32) {
    %c0_i32 = arith.constant 0 : i32
    %c0_i32_0 = arith.constant 0 : i32
    return %arg0, %c0_i32 : i32, i32
  }
}

</mosaic_0001>

<bundles_post_ra>
// kernel: tpu_custom_call.1
= control target key start
LH: loop header
LB: loop body
LE: loop exit
PB: predicated region body
PF: predicated region fallthrough
CT: control target
= control target key end

     0   :  { %s6025_s0 = inlined_call_operand.hbm [shape: f32[8,256], index: 0, kind: input, shape index: {}]   ;;  %s6026_s1 = inlined_call_operand.hbm [shape: bf16[256,512], index: 1, kind: input, shape index: {}]   ;;  %s6027_s2 = inlined_call_operand.hbm [shape: f32[1,512], index: 2, kind: input, shape index: {}]   ;;  %s6028_s3 = inlined_call_operand.hbm [shape: bf16[512,256], index: 3, kind: input, shape index: {}]   ;;  %s6029_s4 = inlined_call_operand.vmem [shape: f32[1,256], index: 4, kind: input, shape index: {}]   ;;  %s6030_s5 = inlined_call_operand.hbm [shape: bf16[256,128], index: 5, kind: input, shape index: {}]   ;;  %s6031_s6 = inlined_call_operand.vmem [shape: f32[1,128], index: 6, kind: input, shape index: {}]   ;;  %s6032_s7 = inlined_call_operand.vmem [shape: bf16[1,128], index: 7, kind: input, shape index: {}]   ;;  %s6033_s8 = inlined_call_operand.<no memory space> [shape: f32[1,1], index: 8, kind: input, shape index: {}]   ;;  %s6034_s9 = inlined_call_operand.hbm [shape: f32[1,256], index: 9, kind: output, shape index: {}]  }
   0x1   :  { %v14_v0 = vstv %s6033_s8 }
   0x2   :  { %15 = vst [vmem:[#allocation2] sm:$0x1] %v14_v0 }
   0x3   :  { %16 = vsyncpa [#allocation4], 0 }
   0x4   :  { %17 = vsyncpa [#allocation7], 0 }
   0x5   :  { %18 = vsyncpa [#allocation10], 0 }
   0x6   :  { %19 = vsyncpa [#allocation5], 0 }
   0x7   :  { %23 = vsyncadd [#allocation4], 7936  ;;  %s37_s13 = sshll.u32 %s6026_s1, 4  ;;  %s4478_s14 = smov [#allocation6]   ;;  %s38_s13 = int_to_ptr.hbm [resolvable:$true] %s37_s13 }
   0x8   :  { %s39_s15 = sshll.u32 %s4478_s14, 4  ;;  %s61_s18 = sshll.u32 %s6028_s3, 4  ;;  %s40_s15 = int_to_ptr.vmem [resolvable:$true] %s39_s15  ;;  %s62_s18 = int_to_ptr.hbm [resolvable:$true] %s61_s18 }
   0x9   :  { %s4479_s19 = smov 256   ;;  %s4480_s8 = smov 16  }
   0xa   :  { %45 = dma.hbm_to_vmem [thread:$0]  %s38_s13, 8192, %s40_s15, [#allocation7], %s4479_s19, %s4479_s19, %s4480_s8  }
   0xb   :  { %s4481_s20 = smov [#allocation9]   ;;  %s4482_s22 = smov 128  }
   0xc   :  { %s63_s21 = sshll.u32 %s4481_s20, 4  ;;  %s4483_s23 = smov 8   ;;  %s64_s21 = int_to_ptr.vmem [resolvable:$true] %s63_s21 }
   0xd   :  { %69 = dma.hbm_to_vmem [thread:$0]  %s62_s18, 8192, %s64_s21, [#allocation10], %s4482_s22, %s4482_s22, %s4483_s23  }
   0xe   :  { %s24_s25 = sshll.u32 %s6025_s0, 4  ;;  %s4484_s26 = smov [#allocation3]   ;;  %s25_s25 = int_to_ptr.hbm [resolvable:$true] %s24_s25 }
   0xf   :  { %s26_s27 = sshll.u32 %s4484_s26, 4  ;;  %s51_s29 = sshll.u32 %s6027_s2, 4  ;;  %s27_s27 = int_to_ptr.vmem [resolvable:$true] %s26_s27  ;;  %s52_s29 = int_to_ptr.hbm [resolvable:$true] %s51_s29 }
  0x10   :  { %32 = dma.hbm_to_vmem [thread:$0]  %s25_s25, 256, %s27_s27, [#allocation4], %s4479_s19, %s4479_s19, %s4480_s8  }
  0x11   :  { %s4485_s30 = smov [#allocation8]   ;;  %s76_s13 = sshll.u32 %s6030_s5, 4  ;;  %s77_s13 = int_to_ptr.hbm [resolvable:$true] %s76_s13 }
  0x12   :  { %s53_s10 = sshll.u32 %s4485_s30, 4  ;;  %s4486_s0 = smov [#allocation11]   ;;  %s54_s10 = int_to_ptr.vmem [resolvable:$true] %s53_s10 }
  0x13   :  { %56 = dma.hbm_to_vmem [thread:$0]  %s52_s29, 64, %s54_s10, [#allocation7]  }
  0x14   :  { %s78_s14 = sshll.u32 %s4486_s0, 4  ;;  %s4487_s15 = smov 64   ;;  %s79_s14 = int_to_ptr.vmem [resolvable:$true] %s78_s14 }
  0x15   :  { %s4488_s16 = smov 4  }
  0x16   :  { %84 = dma.hbm_to_vmem [thread:$0]  %s77_s13, 2048, %s79_s14, [#allocation10], %s4487_s15, %s4487_s15, %s4488_s16  }
  0x17   :  { %4470 = dma.done.wait [#allocation4], 8192  }
  0x18   :  { %4471 = vsyncadd [#allocation4], 4294959104 }
  0x19   :  { %4472 = dma.done.wait [#allocation7], 8256  }
  0x1a   :  { %4473 = vsyncadd [#allocation7], 4294959040 }
  0x1b   :  { %4474 = dma.done.wait [#allocation10], 10240  }
  0x1c   :  { %4475 = vsyncadd [#allocation10], 4294957056  ;;  %v3687_v1 = vld [vmem:[#allocation6 + $0xe0] sm:$0xf]  ;;  %v4179_v2 = vld [vmem:[#allocation6 + $0xec] sm:$0xf0] }
  0x1d   :  { %v3815_v3 = vld [vmem:[#allocation6 + $0x1e0] sm:$0xf]  ;;  %v3688_v4 = vor.u32 %v4179_v2, %v3687_v1  ;;  %v4211_v5 = vld [vmem:[#allocation6 + $0x1ec] sm:$0xf0]  ;;  %v112_v52 = vld [vmem:[#allocation3 + $0x8] sm:$0xff]  ;;  %s3561_s23 = sshll.u32 %s6034_s9, 4  ;;  %s3562_s23 = int_to_ptr.hbm [resolvable:$true] %s3561_s23 }
  0x1e   :  { %v3671_v6 = vld [vmem:[#allocation6 + $0xc0] sm:$0xf]  ;;  %v4175_v7 = vld [vmem:[#allocation6 + $0xcc] sm:$0xf0]  ;;  %v3816_v8 = vor.u32 %v4211_v5, %v3815_v3  ;;  %v114_v54 = vld [vmem:[#allocation3 + $0x18] sm:$0xff] }
  0x1f   :  { %v3799_v9 = vld [vmem:[#allocation6 + $0x1c0] sm:$0xf]  ;;  %v4207_v10 = vld [vmem:[#allocation6 + $0x1cc] sm:$0xf0]  ;;  %601 = vmatpush.bf16.msra.mxu0 %v3688_v4  ;;  %4293 = vmatpush.bf16.msra.mxu2 %v3688_v4  ;;  %v3672_v11 = vor.u32 %v4175_v7, %v3671_v6  ;;  %v148_v55 = vld [vmem:[#allocation3 + $0x128] sm:$0xff]  ;;  %v4563_v59 = vpack.c.bf16 %v114_v54, %v112_v52 }
  0x20   :  { %690 = vmatpush.bf16.msra.mxu1 %v3816_v8  ;;  %4301 = vmatpush.bf16.msra.mxu3 %v3816_v8  ;;  %v3800_v12 = vor.u32 %v4207_v10, %v3799_v9  ;;  %v3655_v13 = vld [vmem:[#allocation6 + $0xa0] sm:$0xf]  ;;  %v4171_v14 = vld [vmem:[#allocation6 + $0xac] sm:$0xf0]  ;;  %v150_v56 = vld [vmem:[#allocation3 + $0x138] sm:$0xff] }
  0x21   :  { %v3783_v15 = vld [vmem:[#allocation6 + $0x1a0] sm:$0xf]  ;;  %v4203_v16 = vld [vmem:[#allocation6 + $0x1ac] sm:$0xf0]  ;;  %v3656_v17 = vor.u32 %v4171_v14, %v3655_v13  ;;  %v4565_v60 = vpack.c.bf16 %v150_v56, %v148_v55  ;;  %v116_v1 = vld [vmem:[#allocation3 + $0x28] sm:$0xff] }
  0x22   :  { %v3784_v18 = vor.u32 %v4203_v16, %v3783_v15  ;;  %v3639_v19 = vld [vmem:[#allocation6 + $0x80] sm:$0xf]  ;;  %v4167_v20 = vld [vmem:[#allocation6 + $0x8c] sm:$0xf0]  ;;  %v118_v2 = vld [vmem:[#allocation3 + $0x38] sm:$0xff] }
  0x23   :  { %602 = vmatpush.bf16.msra.mxu0 %v3672_v11  ;;  %4294 = vmatpush.bf16.msra.mxu2 %v3672_v11  ;;  %v3767_v21 = vld [vmem:[#allocation6 + $0x180] sm:$0xf]  ;;  %v4199_v22 = vld [vmem:[#allocation6 + $0x18c] sm:$0xf0]  ;;  %v3640_v23 = vor.u32 %v4167_v20, %v3639_v19  ;;  %6098 = vst [vmem:[#allocation18_spill] sm:$0xff] %v4565_v60  ;;  %v152_v3 = vld [vmem:[#allocation3 + $0x148] sm:$0xff]  ;;  %v4575_v7 = vpack.c.bf16 %v118_v2, %v116_v1 }
  0x24   :  { %691 = vmatpush.bf16.msra.mxu1 %v3800_v12  ;;  %4302 = vmatpush.bf16.msra.mxu3 %v3800_v12  ;;  %v3768_v24 = vor.u32 %v4199_v22, %v3767_v21  ;;  %v3623_v25 = vld [vmem:[#allocation6 + $0x60] sm:$0xf]  ;;  %v4163_v26 = vld [vmem:[#allocation6 + $0x6c] sm:$0xf0]  ;;  %v154_v4 = vld [vmem:[#allocation3 + $0x158] sm:$0xff] }
  0x25   :  { %v3751_v27 = vld [vmem:[#allocation6 + $0x160] sm:$0xf]  ;;  %v4195_v28 = vld [vmem:[#allocation6 + $0x16c] sm:$0xf0]  ;;  %v3624_v29 = vor.u32 %v4163_v26, %v3623_v25  ;;  %v4577_v8 = vpack.c.bf16 %v154_v4, %v152_v3  ;;  %v120_v13 = vld [vmem:[#allocation3 + $0x48] sm:$0xff] }
  0x26   :  { %v3752_v30 = vor.u32 %v4195_v28, %v3751_v27  ;;  %v3607_v31 = vld [vmem:[#allocation6 + $0x40] sm:$0xf]  ;;  %v4159_v32 = vld [vmem:[#allocation6 + $0x4c] sm:$0xf0]  ;;  %v122_v14 = vld [vmem:[#allocation3 + $0x58] sm:$0xff] }
  0x27   :  { %603 = vmatpush.bf16.msra.mxu0 %v3656_v17  ;;  %4295 = vmatpush.bf16.msra.mxu2 %v3656_v17  ;;  %v3735_v33 = vld [vmem:[#allocation6 + $0x140] sm:$0xf]  ;;  %v4191_v34 = vld [vmem:[#allocation6 + $0x14c] sm:$0xf0]  ;;  %v3608_v35 = vor.u32 %v4159_v32, %v3607_v31  ;;  %6100 = vst [vmem:[#allocation20_spill] sm:$0xff] %v4577_v8  ;;  %v156_v15 = vld [vmem:[#allocation3 + $0x168] sm:$0xff]  ;;  %v4587_v19 = vpack.c.bf16 %v122_v14, %v120_v13 }
  0x28   :  { %692 = vmatpush.bf16.msra.mxu1 %v3784_v18  ;;  %4303 = vmatpush.bf16.msra.mxu3 %v3784_v18  ;;  %v3736_v36 = vor.u32 %v4191_v34, %v3735_v33  ;;  %v3591_v37 = vld [vmem:[#allocation6 + $0x20] sm:$0xf]  ;;  %v4155_v38 = vld [vmem:[#allocation6 + $0x2c] sm:$0xf0]  ;;  %v158_v16 = vld [vmem:[#allocation3 + $0x178] sm:$0xff] }
  0x29   :  { %v3719_v39 = vld [vmem:[#allocation6 + $0x120] sm:$0xf]  ;;  %v4187_v40 = vld [vmem:[#allocation6 + $0x12c] sm:$0xf0]  ;;  %v3592_v41 = vor.u32 %v4155_v38, %v3591_v37  ;;  %v4589_v20 = vpack.c.bf16 %v158_v16, %v156_v15  ;;  %v124_v25 = vld [vmem:[#allocation3 + $0x68] sm:$0xff] }
  0x2a   :  { %v3720_v42 = vor.u32 %v4187_v40, %v3719_v39  ;;  %v3575_v43 = vld [vmem:[#allocation6] sm:$0xf]  ;;  %v4151_v44 = vld [vmem:[#allocation6 + $0xc] sm:$0xf0]  ;;  %v126_v26 = vld [vmem:[#allocation3 + $0x78] sm:$0xff] }
  0x2b   :  { %604 = vmatpush.bf16.msra.mxu0 %v3640_v23  ;;  %4296 = vmatpush.bf16.msra.mxu2 %v3640_v23  ;;  %v3703_v45 = vld [vmem:[#allocation6 + $0x100] sm:$0xf]  ;;  %v4183_v46 = vld [vmem:[#allocation6 + $0x10c] sm:$0xf0]  ;;  %v3576_v49 = vor.u32 %v4151_v44, %v3575_v43  ;;  %6102 = vst [vmem:[#allocation22_spill] sm:$0xff] %v4589_v20  ;;  %v160_v27 = vld [vmem:[#allocation3 + $0x188] sm:$0xff]  ;;  %v4599_v31 = vpack.c.bf16 %v126_v26, %v124_v25 }
  0x2c   :  { %693 = vmatpush.bf16.msra.mxu1 %v3768_v24  ;;  %4304 = vmatpush.bf16.msra.mxu3 %v3768_v24  ;;  %v111_v47 = vld [vmem:[#allocation3] sm:$0xff]  ;;  %v113_v48 = vld [vmem:[#allocation3 + $0x10] sm:$0xff]  ;;  %v3704_v53 = vor.u32 %v4183_v46, %v3703_v45  ;;  %v162_v28 = vld [vmem:[#allocation3 + $0x198] sm:$0xff] }
  0x2d   :  { %v147_v50 = vld [vmem:[#allocation3 + $0x120] sm:$0xff]  ;;  %v149_v51 = vld [vmem:[#allocation3 + $0x130] sm:$0xff]  ;;  %v4559_v57 = vpack.c.bf16 %v113_v48, %v111_v47  ;;  %v4601_v32 = vpack.c.bf16 %v162_v28, %v160_v27 }
  0x2e   :  { %v4561_v58 = vpack.c.bf16 %v149_v51, %v147_v50  ;;  %v115_v61 = vld [vmem:[#allocation3 + $0x20] sm:$0xff]  ;;  %v117_v62 = vld [vmem:[#allocation3 + $0x30] sm:$0xff] }
  0x2f   :  { %605 = vmatpush.bf16.msra.mxu0 %v3624_v29  ;;  %4297 = vmatpush.bf16.msra.mxu2 %v3624_v29  ;;  %v151_v63 = vld [vmem:[#allocation3 + $0x140] sm:$0xff]  ;;  %v153_v0 = vld [vmem:[#allocation3 + $0x150] sm:$0xff]  ;;  %v4571_v5 = vpack.c.bf16 %v117_v62, %v115_v61  ;;  %6104 = vst [vmem:[#allocation24_spill] sm:$0xff] %v4601_v32  ;;  %v128_v61 = vld [vmem:[#allocation3 + $0x88] sm:$0xff] }
  0x30   :  { %694 = vmatpush.bf16.msra.mxu1 %v3752_v30  ;;  %4305 = vmatpush.bf16.msra.mxu3 %v3752_v30  ;;  %6097 = vst [vmem:[#allocation17_spill] sm:$0xff] %v4561_v58  ;;  %v4573_v6 = vpack.c.bf16 %v153_v0, %v151_v63  ;;  %v119_v9 = vld [vmem:[#allocation3 + $0x40] sm:$0xff]  ;;  %v121_v10 = vld [vmem:[#allocation3 + $0x50] sm:$0xff]  ;;  %v130_v62 = vld [vmem:[#allocation3 + $0x98] sm:$0xff] }
  0x31   :  { %v155_v11 = vld [vmem:[#allocation3 + $0x160] sm:$0xff]  ;;  %v157_v12 = vld [vmem:[#allocation3 + $0x170] sm:$0xff]  ;;  %v4583_v17 = vpack.c.bf16 %v121_v10, %v119_v9  ;;  %v164_v63 = vld [vmem:[#allocation3 + $0x1a8] sm:$0xff]  ;;  %v4611_v10 = vpack.c.bf16 %v130_v62, %v128_v61 }
  0x32   :  { %6099 = vst [vmem:[#allocation19_spill] sm:$0xff] %v4573_v6  ;;  %v4585_v18 = vpack.c.bf16 %v157_v12, %v155_v11  ;;  %v123_v21 = vld [vmem:[#allocation3 + $0x60] sm:$0xff]  ;;  %v125_v22 = vld [vmem:[#allocation3 + $0x70] sm:$0xff]  ;;  %v166_v0 = vld [vmem:[#allocation3 + $0x1b8] sm:$0xff] }
  0x33   :  { %606 = vmatpush.bf16.msra.mxu0 %v3608_v35  ;;  %4298 = vmatpush.bf16.msra.mxu2 %v3608_v35  ;;  %v159_v23 = vld [vmem:[#allocation3 + $0x180] sm:$0xff]  ;;  %v161_v24 = vld [vmem:[#allocation3 + $0x190] sm:$0xff]  ;;  %v4595_v29 = vpack.c.bf16 %v125_v22, %v123_v21  ;;  %v4613_v11 = vpack.c.bf16 %v166_v0, %v164_v63  ;;  %v3695_v61 = vld [vmem:[#allocation6 + $0xe8] sm:$0xf] }
  0x34   :  { %695 = vmatpush.bf16.msra.mxu1 %v3736_v36  ;;  %4306 = vmatpush.bf16.msra.mxu3 %v3736_v36  ;;  %6101 = vst [vmem:[#allocation21_spill] sm:$0xff] %v4585_v18  ;;  %v4597_v30 = vpack.c.bf16 %v161_v24, %v159_v23  ;;  %v4177_v33 = vld [vmem:[#allocation6 + $0xe4] sm:$0xf]  ;;  %v3689_v34 = vld [vmem:[#allocation6 + $0xf0] sm:$0xf0] }
  0x35   :  { %v4209_v35 = vld [vmem:[#allocation6 + $0x1e4] sm:$0xf]  ;;  %v3692_v36 = vor.u32 %v4177_v33, %v3689_v34  ;;  %v3817_v37 = vld [vmem:[#allocation6 + $0x1f0] sm:$0xf0]  ;;  %6106 = vst [vmem:[#allocation26_spill] sm:$0xff] %v4613_v11 }
  0x36   :  { %6103 = vst [vmem:[#allocation23_spill] sm:$0xff] %v4597_v30  ;;  %v4173_v38 = vld [vmem:[#allocation6 + $0xc4] sm:$0xf]  ;;  %v3673_v39 = vld [vmem:[#allocation6 + $0xd0] sm:$0xf0]  ;;  %v3820_v40 = vor.u32 %v4209_v35, %v3817_v37 }
  0x37   :  { %607 = vmatpush.bf16.msra.mxu0 %v3592_v41  ;;  %4299 = vmatpush.bf16.msra.mxu2 %v3592_v41  ;;  %v4205_v41 = vld [vmem:[#allocation6 + $0x1c4] sm:$0xf]  ;;  %v3676_v43 = vor.u32 %v4173_v38, %v3673_v39  ;;  %v3657_v46 = vld [vmem:[#allocation6 + $0xb0] sm:$0xf0]  ;;  %v4180_v62 = vld [vmem:[#allocation6 + $0xf4] sm:$0xf0] }
  0x38   :  { %696 = vmatpush.bf16.msra.mxu1 %v3720_v42  ;;  %4307 = vmatpush.bf16.msra.mxu3 %v3720_v42  ;;  %v3801_v42 = vld [vmem:[#allocation6 + $0x1d0] sm:$0xf0]  ;;  %v4169_v45 = vld [vmem:[#allocation6 + $0xa4] sm:$0xf]  ;;  %v3823_v63 = vld [vmem:[#allocation6 + $0x1e8] sm:$0xf]  ;;  %v3696_v0 = vor.u32 %v4180_v62, %v3695_v61 }
  0x39   :  { %v3804_v44 = vor.u32 %v4205_v41, %v3801_v42  ;;  %v4201_v47 = vld [vmem:[#allocation6 + $0x1a4] sm:$0xf]  ;;  %v3785_v48 = vld [vmem:[#allocation6 + $0x1b0] sm:$0xf0]  ;;  %v3660_v50 = vor.u32 %v4169_v45, %v3657_v46  ;;  %v134_v45 = vld [vmem:[#allocation3 + $0xb8] sm:$0xff] }
  0x3a   :  { %v129_v51 = vld [vmem:[#allocation3 + $0x90] sm:$0xff]  ;;  %v3788_v52 = vor.u32 %v4201_v47, %v3785_v48  ;;  %v163_v55 = vld [vmem:[#allocation3 + $0x1a0] sm:$0xff]  ;;  %v168_v46 = vld [vmem:[#allocation3 + $0x1c8] sm:$0xff] }
  0x3b   :  { %608 = vmatpush.bf16.msra.mxu0 %v3576_v49  ;;  %4300 = vmatpush.bf16.msra.mxu2 %v3576_v49  ;;  %v127_v49 = vld [vmem:[#allocation3 + $0x80] sm:$0xff]  ;;  %v3641_v54 = vld [vmem:[#allocation6 + $0x90] sm:$0xf0]  ;;  %v170_v47 = vld [vmem:[#allocation3 + $0x1d8] sm:$0xff] }
  0x3c   :  { %697 = vmatpush.bf16.msra.mxu1 %v3704_v53  ;;  %4308 = vmatpush.bf16.msra.mxu3 %v3704_v53  ;;  %v4165_v53 = vld [vmem:[#allocation6 + $0x84] sm:$0xf]  ;;  %v165_v56 = vld [vmem:[#allocation3 + $0x1b0] sm:$0xff]  ;;  %v4607_v4 = vpack.c.bf16 %v129_v51, %v127_v49  ;;  %v4196_v61 = vld [vmem:[#allocation6 + $0x174] sm:$0xf0] }
  0x3d   :  { %v3644_v1 = vor.u32 %v4165_v53, %v3641_v54  ;;  %v4197_v2 = vld [vmem:[#allocation6 + $0x184] sm:$0xf]  ;;  %v3769_v3 = vld [vmem:[#allocation6 + $0x190] sm:$0xf0]  ;;  %v4609_v9 = vpack.c.bf16 %v165_v56, %v163_v55  ;;  %v4625_v55 = vpack.c.bf16 %v170_v47, %v168_v46 }
  0x3e   :  { %609 = vmatmul.bf16.vlgmr.msra.gmra.mxu0 %v4559_v57  ;;  %654 = vmatmul.bf16.vlgmr.msra.gmra.mxu2 %v4561_v58  ;;  %v3772_v12 = vor.u32 %v4197_v2, %v3769_v3  ;;  %v4161_v13 = vld [vmem:[#allocation6 + $0x64] sm:$0xf]  ;;  %v3625_v14 = vld [vmem:[#allocation6 + $0x70] sm:$0xf0]  ;;  %v3679_v3 = vld [vmem:[#allocation6 + $0xc8] sm:$0xf] }
  0x3f   :  { %698 = vmatmul.bf16.vlgmr.msra.gmra.mxu1 %v4563_v59  ;;  %743 = vmatmul.bf16.vlgmr.msra.gmra.mxu3 %v4565_v60  ;;  %6105 = vst [vmem:[#allocation25_spill] sm:$0xff] %v4609_v9  ;;  %v4193_v15 = vld [vmem:[#allocation6 + $0x164] sm:$0xf]  ;;  %v3628_v16 = vor.u32 %v4161_v13, %v3625_v14  ;;  %v3753_v21 = vld [vmem:[#allocation6 + $0x170] sm:$0xf0] }
  0x40   :  { %779 = vmatpush.bf16.msrb.mxu2 %v3692_v36  ;;  %868 = vmatpush.bf16.msrb.mxu3 %v3820_v40  ;;  %v4157_v22 = vld [vmem:[#allocation6 + $0x44] sm:$0xf]  ;;  %v3609_v23 = vld [vmem:[#allocation6 + $0x50] sm:$0xf0]  ;;  %v3756_v24 = vor.u32 %v4193_v15, %v3753_v21  ;;  %v3807_v13 = vld [vmem:[#allocation6 + $0x1c8] sm:$0xf] }
  0x41   :  { %v3612_v25 = vor.u32 %v4157_v22, %v3609_v23  ;;  %v4189_v26 = vld [vmem:[#allocation6 + $0x144] sm:$0xf]  ;;  %v3737_v27 = vld [vmem:[#allocation6 + $0x150] sm:$0xf0]  ;;  %957 = vmatpush.bf16.msrb.mxu0 %v3696_v0  ;;  %v4208_v15 = vld [vmem:[#allocation6 + $0x1d4] sm:$0xf0] }
  0x42   :  { %v4153_v28 = vld [vmem:[#allocation6 + $0x24] sm:$0xf]  ;;  %v3593_v33 = vld [vmem:[#allocation6 + $0x30] sm:$0xf0]  ;;  %v3740_v34 = vor.u32 %v4189_v26, %v3737_v27  ;;  %v3663_v21 = vld [vmem:[#allocation6 + $0xa8] sm:$0xf] }
  0x43   :  { %v131_v35 = vld [vmem:[#allocation3 + $0xa0] sm:$0xff]  ;;  %v3596_v36 = vor.u32 %v4153_v28, %v3593_v33  ;;  %v3721_v38 = vld [vmem:[#allocation6 + $0x130] sm:$0xf0]  ;;  %v4172_v22 = vld [vmem:[#allocation6 + $0xb4] sm:$0xf0] }
  0x44   :  { %780 = vmatpush.bf16.msrb.mxu2 %v3676_v43  ;;  %869 = vmatpush.bf16.msrb.mxu3 %v3804_v44  ;;  %v4185_v37 = vld [vmem:[#allocation6 + $0x124] sm:$0xf]  ;;  %v133_v39 = vld [vmem:[#allocation3 + $0xb0] sm:$0xff]  ;;  %v132_v44 = vld [vmem:[#allocation3 + $0xa8] sm:$0xff] }
  0x45   :  { %v4149_v40 = vld [vmem:[#allocation6 + $0x4] sm:$0xf]  ;;  %v3577_v41 = vld [vmem:[#allocation6 + $0x10] sm:$0xf0]  ;;  %v3724_v48 = vor.u32 %v4185_v37, %v3721_v38  ;;  %v4623_v54 = vpack.c.bf16 %v134_v45, %v132_v44  ;;  %v3791_v23 = vld [vmem:[#allocation6 + $0x1a8] sm:$0xf] }
  0x46   :  { %v167_v42 = vld [vmem:[#allocation3 + $0x1c0] sm:$0xff]  ;;  %v169_v43 = vld [vmem:[#allocation3 + $0x1d0] sm:$0xff]  ;;  %v3580_v49 = vor.u32 %v4149_v40, %v3577_v41  ;;  %v172_v37 = vld [vmem:[#allocation3 + $0x1e8] sm:$0xff] }
  0x47   :  { %v3705_v51 = vld [vmem:[#allocation6 + $0x110] sm:$0xf0]  ;;  %v4621_v53 = vpack.c.bf16 %v169_v43, %v167_v42  ;;  %6107 = vst [vmem:[#allocation27_spill] sm:$0xff] %v4623_v54  ;;  %v135_v27 = vld [vmem:[#allocation3 + $0xc0] sm:$0xff]  ;;  %v174_v38 = vld [vmem:[#allocation3 + $0x1f8] sm:$0xff] }
  0x48   :  { %781 = vmatpush.bf16.msrb.mxu2 %v3660_v50  ;;  %870 = vmatpush.bf16.msrb.mxu3 %v3788_v52  ;;  %v4181_v50 = vld [vmem:[#allocation6 + $0x104] sm:$0xf]  ;;  %v4619_v52 = vpack.c.bf16 %v133_v39, %v131_v35  ;;  %v137_v28 = vld [vmem:[#allocation3 + $0xd0] sm:$0xff]  ;;  %v136_v35 = vld [vmem:[#allocation3 + $0xc8] sm:$0xff]  ;;  %v4637_v47 = vpack.c.bf16 %v174_v38, %v172_v37 }
  0x49   :  { %v3708_v56 = vor.u32 %v4181_v50, %v3705_v51  ;;  %v171_v33 = vld [vmem:[#allocation3 + $0x1e0] sm:$0xff]  ;;  %v3647_v39 = vld [vmem:[#allocation6 + $0x88] sm:$0xf]  ;;  %v4168_v40 = vld [vmem:[#allocation6 + $0x94] sm:$0xf0]  ;;  %v4631_v42 = vpack.c.bf16 %v137_v28, %v135_v27 }
  0x4a   :  { %v3775_v41 = vld [vmem:[#allocation6 + $0x188] sm:$0xf]  ;;  %v3648_v44 = vor.u32 %v4168_v40, %v3647_v39  ;;  %v4200_v45 = vld [vmem:[#allocation6 + $0x194] sm:$0xf0]  ;;  %v4651_v39 = vld [vmem:[#allocation8] sm:$0xf] }
  0x4b   :  { %6108 = vst [vmem:[#allocation28_spill] sm:$0xff] %v4631_v42  ;;  %v4164_v50 = vld [vmem:[#allocation6 + $0x74] sm:$0xf0]  ;;  %v3583_v27 = vld [vmem:[#allocation6 + $0x8] sm:$0xf]  ;;  %v143_v40 = vld [vmem:[#allocation3 + $0x100] sm:$0xff] }
  0x4c   :  { %782 = vmatpush.bf16.msrb.mxu2 %v3644_v1  ;;  %871 = vmatpush.bf16.msrb.mxu3 %v3772_v12  ;;  %v4212_v1 = vld [vmem:[#allocation6 + $0x1f4] sm:$0xf0] }
  0x4d   :  { %v3824_v2 = vor.u32 %v4212_v1, %v3823_v63  ;;  %v4176_v12 = vld [vmem:[#allocation6 + $0xd4] sm:$0xf0]  ;;  %v3615_v63 = vld [vmem:[#allocation6 + $0x48] sm:$0xf] }
  0x4e   :  { %614 = vmatmul.bf16.gmra.mxu0 %v4571_v5  ;;  %659 = vmatmul.bf16.gmra.mxu2 %v4573_v6  ;;  %v3680_v14 = vor.u32 %v4176_v12, %v3679_v3  ;;  %v4160_v0 = vld [vmem:[#allocation6 + $0x54] sm:$0xf0]  ;;  %v3743_v1 = vld [vmem:[#allocation6 + $0x148] sm:$0xf] }
  0x4f   :  { %703 = vmatmul.bf16.gmra.mxu1 %v4575_v7  ;;  %748 = vmatmul.bf16.gmra.mxu3 %v4577_v8  ;;  %v4192_v3 = vld [vmem:[#allocation6 + $0x154] sm:$0xf0] }
  0x50   :  { %783 = vmatpush.bf16.msrb.mxu2 %v3628_v16  ;;  %872 = vmatpush.bf16.msrb.mxu3 %v3756_v24  ;;  %v3808_v16 = vor.u32 %v4208_v15, %v3807_v13  ;;  %v4204_v24 = vld [vmem:[#allocation6 + $0x1b4] sm:$0xf0]  ;;  %v3744_v12 = vor.u32 %v4192_v3, %v3743_v1  ;;  %v3599_v13 = vld [vmem:[#allocation6 + $0x28] sm:$0xf] }
  0x51   :  { %1046 = vmatpush.bf16.msrb.mxu1 %v3824_v2  ;;  %958 = vmatpush.bf16.msrb.mxu0 %v3680_v14  ;;  %v3792_v26 = vor.u32 %v4204_v24, %v3791_v23  ;;  %v3616_v2 = vor.u32 %v4160_v0, %v3615_v63  ;;  %v4156_v14 = vld [vmem:[#allocation6 + $0x34] sm:$0xf0]  ;;  %v3727_v15 = vld [vmem:[#allocation6 + $0x128] sm:$0xf]  ;;  %v141_v23 = vld [vmem:[#allocation3 + $0xf0] sm:$0xff] }
  0x52   :  { %v4152_v28 = vld [vmem:[#allocation6 + $0x14] sm:$0xf0] }
  0x54   :  { %784 = vmatpush.bf16.msrb.mxu2 %v3612_v25  ;;  %873 = vmatpush.bf16.msrb.mxu3 %v3740_v34  ;;  %v3664_v25 = vor.u32 %v4172_v22, %v3663_v21  ;;  %v173_v34 = vld [vmem:[#allocation3 + $0x1f0] sm:$0xff]  ;;  %v4188_v21 = vld [vmem:[#allocation6 + $0x134] sm:$0xf0]  ;;  %v139_v22 = vld [vmem:[#allocation3 + $0xe0] sm:$0xff] }
  0x55   :  { %1047 = vmatpush.bf16.msrb.mxu1 %v3808_v16  ;;  %v4633_v43 = vpack.c.bf16 %v173_v34, %v171_v33  ;;  %v3600_v16 = vor.u32 %v4156_v14, %v3599_v13  ;;  %v3728_v24 = vor.u32 %v4188_v21, %v3727_v15  ;;  %v3711_v33 = vld [vmem:[#allocation6 + $0x108] sm:$0xf]  ;;  %v4643_v34 = vpack.c.bf16 %v141_v23, %v139_v22 }
  0x56   :  { %959 = vmatpush.bf16.msrb.mxu0 %v3664_v25  ;;  %v140_v25 = vld [vmem:[#allocation3 + $0xe8] sm:$0xff] }
  0x57   :  { %6110 = vst [vmem:[#allocation30_spill] sm:$0xff] %v4643_v34 }
  0x58   :  { %785 = vmatpush.bf16.msrb.mxu2 %v3596_v36  ;;  %874 = vmatpush.bf16.msrb.mxu3 %v3724_v48  ;;  %v138_v36 = vld [vmem:[#allocation3 + $0xd8] sm:$0xff]  ;;  %v3776_v48 = vor.u32 %v4200_v45, %v3775_v41  ;;  %v145_v41 = vld [vmem:[#allocation3 + $0x110] sm:$0xff] }
  0x59   :  { %1048 = vmatpush.bf16.msrb.mxu1 %v3792_v26  ;;  %v4635_v46 = vpack.c.bf16 %v138_v36, %v136_v35  ;;  %v142_v26 = vld [vmem:[#allocation3 + $0xf8] sm:$0xff]  ;;  %v3584_v35 = vor.u32 %v4152_v28, %v3583_v27 }
  0x5a   :  { %960 = vmatpush.bf16.msrb.mxu0 %v3648_v44  ;;  %v4184_v36 = vld [vmem:[#allocation6 + $0x114] sm:$0xf0]  ;;  %v4645_v37 = vpack.c.bf16 %v142_v26, %v140_v25  ;;  %v144_v44 = vld [vmem:[#allocation3 + $0x108] sm:$0xff] }
  0x5b   :  { %6109 = vst [vmem:[#allocation29_spill] sm:$0xff] %v4635_v46  ;;  %v3712_v38 = vor.u32 %v4184_v36, %v3711_v33  ;;  %v146_v45 = vld [vmem:[#allocation3 + $0x118] sm:$0xff] }
  0x5c   :  { %786 = vmatpush.bf16.msrb.mxu2 %v3580_v49  ;;  %875 = vmatpush.bf16.msrb.mxu3 %v3708_v56  ;;  %v3631_v49 = vld [vmem:[#allocation6 + $0x68] sm:$0xf]  ;;  %6111 = vst [vmem:[#allocation31_spill] sm:$0xff] %v4645_v37 }
  0x5d   :  { %1049 = vmatpush.bf16.msrb.mxu1 %v3776_v48  ;;  %v3632_v51 = vor.u32 %v4164_v50, %v3631_v49  ;;  %v3759_v56 = vld [vmem:[#allocation6 + $0x168] sm:$0xf]  ;;  %v4654_v48 = vperm.slane %v4651_v39, 0  ;;  %v4656_v49 = vpack.c.bf16 %v145_v41, %v143_v40 }
  0x5e   :  { %619 = vmatmul.bf16.gmra.mxu0 %v4583_v17  ;;  %664 = vmatmul.bf16.gmra.mxu2 %v4585_v18  ;;  %v3760_v62 = vor.u32 %v4196_v61, %v3759_v56 }
  0x5f   :  { %708 = vmatmul.bf16.gmra.mxu1 %v4587_v19  ;;  %753 = vmatmul.bf16.gmra.mxu3 %v4589_v20  ;;  %6112 = vst [vmem:[#allocation32_spill] sm:$0xff] %v4656_v49 }
  0x60   :  { %961 = vmatpush.bf16.msrb.mxu0 %v3632_v51  ;;  %v4658_v51 = vpack.c.bf16 %v146_v45, %v144_v44 }
  0x61   :  { %1050 = vmatpush.bf16.msrb.mxu1 %v3760_v62 }
  0x62   :  { %6113 = vst [vmem:[#allocation33_spill] sm:$0xff] %v4658_v51 }
  0x64   :  { %962 = vmatpush.bf16.msrb.mxu0 %v3616_v2 }
  0x65   :  { %1051 = vmatpush.bf16.msrb.mxu1 %v3744_v12 }
  0x68   :  { %963 = vmatpush.bf16.msrb.mxu0 %v3600_v16 }
  0x69   :  { %1052 = vmatpush.bf16.msrb.mxu1 %v3728_v24 }
  0x6c   :  { %964 = vmatpush.bf16.msrb.mxu0 %v3584_v35 }
  0x6d   :  { %1053 = vmatpush.bf16.msrb.mxu1 %v3712_v38 }
  0x6e   :  { %624 = vmatmul.bf16.gmra.mxu0 %v4595_v29  ;;  %669 = vmatmul.bf16.gmra.mxu2 %v4597_v30 }
  0x6f   :  { %713 = vmatmul.bf16.gmra.mxu1 %v4599_v31  ;;  %758 = vmatmul.bf16.gmra.mxu3 %v4601_v32 }
  0x7e   :  { %629 = vmatmul.bf16.gmra.mxu0 %v4607_v4  ;;  %674 = vmatmul.bf16.gmra.mxu2 %v4609_v9 }
  0x7f   :  { %718 = vmatmul.bf16.gmra.mxu1 %v4611_v10  ;;  %763 = vmatmul.bf16.gmra.mxu3 %v4613_v11 }
  0x8e   :  { %634 = vmatmul.bf16.gmra.mxu0 %v4619_v52  ;;  %679 = vmatmul.bf16.gmra.mxu2 %v4621_v53 }
  0x8f   :  { %723 = vmatmul.bf16.gmra.mxu1 %v4623_v54  ;;  %768 = vmatmul.bf16.gmra.mxu3 %v4625_v55 }
  0x9e   :  { %639 = vmatmul.bf16.gmra.mxu0 %v4631_v42  ;;  %684 = vmatmul.bf16.gmra.mxu2 %v4633_v43 }
  0x9f   :  { %728 = vmatmul.bf16.gmra.mxu1 %v4635_v46  ;;  %773 = vmatmul.bf16.gmra.mxu3 %v4637_v47 }
  0xae   :  { %644 = vmatmul.bf16.gmra.mxu0 %v4643_v34  ;;  %787 = vmatmul.bf16.vlgmr.msrb.gmra.mxu2 %v4559_v57 }
  0xaf   :  { %733 = vmatmul.bf16.gmra.mxu1 %v4645_v37  ;;  %876 = vmatmul.bf16.vlgmr.msrb.gmra.mxu3 %v4563_v59 }
  0xbb   :  { %v610_v50 = vpop.f32.mrf.mxu0 }
  0xbc   :  { %v611_v56 = vadd.f32 %v610_v50, %v4654_v48  ;;  %v699_v61 = vpop.f32.mrf.mxu1 }
  0xbe   :  { %v700_v62 = vadd.f32 %v699_v61, %v611_v56  ;;  %649 = vmatmul.bf16.gmra.mxu0 %v4656_v49  ;;  %792 = vmatmul.bf16.gmra.mxu2 %v4571_v5 }
  0xbf   :  { %738 = vmatmul.bf16.gmra.mxu1 %v4658_v51  ;;  %881 = vmatmul.bf16.gmra.mxu3 %v4575_v7 }
  0xc0   :  { %v1441_v3 = vmul.f32 0.2, %v700_v62  ;;  %vm1313_vm0 = vcmp.gt.f32.partialorder %v700_v62, 0.0 }
  0xc1   :  { %v655_v63 = vpop.f32.mrf.mxu2 }
  0xc2   :  { %v656_v0 = vadd.f32 %v655_v63, %v4654_v48  ;;  %v744_v1 = vpop.f32.mrf.mxu3  ;;  %v1569_v16 = vsel %vm1313_vm0, %v700_v62, %v1441_v3 }
  0xc3   :  { %v612_v2 = vpop.f32.mrf.mxu0 }
  0xc4   :  { %v745_v12 = vadd.f32 %v744_v1, %v656_v0  ;;  %v613_v13 = vadd.f32 %v612_v2, %v4654_v48  ;;  %v701_v14 = vpop.f32.mrf.mxu1 }
  0xc6   :  { %v702_v15 = vadd.f32 %v701_v14, %v613_v13  ;;  %v1513_v28 = vmul.f32 0.2, %v745_v12  ;;  %vm1385_vm2 = vcmp.gt.f32.partialorder %v745_v12, 0.0 }
  0xc8   :  { %vm1317_vm1 = vcmp.gt.f32.partialorder %v702_v15, 0.0  ;;  %v1445_v21 = vmul.f32 0.2, %v702_v15  ;;  %v1641_v41 = vsel %vm1385_vm2, %v745_v12, %v1513_v28 }
  0xc9   :  { %v657_v22 = vpop.f32.mrf.mxu2 }
  0xca   :  { %v1573_v23 = vsel %vm1317_vm1, %v702_v15, %v1445_v21  ;;  %v658_v24 = vadd.f32 %v657_v22, %v4654_v48  ;;  %v746_v25 = vpop.f32.mrf.mxu3 }
  0xcb   :  { %v4668_v26 = vpack.c.bf16 %v1573_v23, %v1569_v16  ;;  %v615_v27 = vpop.f32.mrf.mxu0 }
  0xcc   :  { %v747_v33 = vadd.f32 %v746_v25, %v658_v24  ;;  %v616_v35 = vadd.f32 %v615_v27, %v4654_v48  ;;  %v704_v36 = vpop.f32.mrf.mxu1 }
  0xce   :  { %vm1389_vm3 = vcmp.gt.f32.partialorder %v747_v33, 0.0  ;;  %v1517_v38 = vmul.f32 0.2, %v747_v33  ;;  %v4671_v40 = vadd.f32 %v704_v36, %v616_v35  ;;  %797 = vmatmul.bf16.gmra.mxu2 %v4583_v17  ;;  %965 = vmatmul.bf16.vlgmr.msrb.gmra.mxu0 %v4559_v57 }
  0xcf   :  { %886 = vmatmul.bf16.gmra.mxu3 %v4587_v19  ;;  %1054 = vmatmul.bf16.vlgmr.msrb.gmra.mxu1 %v4563_v59 }
  0xd0   :  { %v1645_v44 = vsel %vm1389_vm3, %v747_v33, %v1517_v38  ;;  %vm1321_vm14 = vcmp.gt.f32.partialorder %v4671_v40, 0.0 }
  0xd1   :  { %v660_v45 = vpop.f32.mrf.mxu2  ;;  %v4677_v50 = vpack.c.bf16 %v1645_v44, %v1641_v41 }
  0xd2   :  { %v661_v56 = vadd.f32 %v660_v45, %v4654_v48  ;;  %v749_v61 = vpop.f32.mrf.mxu3 }
  0xd3   :  { %6114 = vst [vmem:[#allocation34_spill] sm:$0xff] %v4677_v50  ;;  %v617_v62 = vpop.f32.mrf.mxu0 }
  0xd4   :  { %v750_v63 = vadd.f32 %v749_v61, %v661_v56  ;;  %v618_v0 = vadd.f32 %v617_v62, %v4654_v48  ;;  %v706_v1 = vpop.f32.mrf.mxu1 }
  0xd6   :  { %v4681_v2 = vadd.f32 %v706_v1, %v618_v0  ;;  %v1521_v12 = vmul.f32 0.2, %v750_v63  ;;  %vm1393_vm4 = vcmp.gt.f32.partialorder %v750_v63, 0.0 }
  0xd8   :  { %v1649_v25 = vsel %vm1393_vm4, %v750_v63, %v1521_v12  ;;  %vm1325_vm15 = vcmp.gt.f32.partialorder %v4681_v2, 0.0 }
  0xd9   :  { %v662_v3 = vpop.f32.mrf.mxu2 }
  0xda   :  { %v663_v13 = vadd.f32 %v662_v3, %v4654_v48  ;;  %v751_v14 = vpop.f32.mrf.mxu3 }
  0xdb   :  { %v620_v15 = vpop.f32.mrf.mxu0 }
  0xdc   :  { %v752_v16 = vadd.f32 %v751_v14, %v663_v13  ;;  %v621_v21 = vadd.f32 %v620_v15, %v4654_v48  ;;  %v709_v22 = vpop.f32.mrf.mxu1 }
  0xde   :  { %vm1397_vm5 = vcmp.gt.f32.partialorder %v752_v16, 0.0  ;;  %v1525_v23 = vmul.f32 0.2, %v752_v16  ;;  %v4685_v24 = vadd.f32 %v709_v22, %v621_v21  ;;  %802 = vmatmul.bf16.gmra.mxu2 %v4595_v29  ;;  %970 = vmatmul.bf16.gmra.mxu0 %v4571_v5 }
  0xdf   :  { %891 = vmatmul.bf16.gmra.mxu3 %v4599_v31  ;;  %1059 = vmatmul.bf16.gmra.mxu1 %v4575_v7 }
  0xe0   :  { %v1653_v27 = vsel %vm1397_vm5, %v752_v16, %v1525_v23  ;;  %vm1329_vm2 = vcmp.gt.f32.partialorder %v4685_v24, 0.0 }
  0xe1   :  { %v665_v28 = vpop.f32.mrf.mxu2  ;;  %v4691_v33 = vpack.c.bf16 %v1653_v27, %v1649_v25 }
  0xe2   :  { %v666_v35 = vadd.f32 %v665_v28, %v4654_v48  ;;  %v754_v36 = vpop.f32.mrf.mxu3 }
  0xe3   :  { %6115 = vst [vmem:[#allocation35_spill] sm:$0xff] %v4691_v33  ;;  %v622_v38 = vpop.f32.mrf.mxu0 }
  0xe4   :  { %v755_v41 = vadd.f32 %v754_v36, %v666_v35  ;;  %v623_v44 = vadd.f32 %v622_v38, %v4654_v48  ;;  %v711_v45 = vpop.f32.mrf.mxu1 }
  0xe6   :  { %v4695_v56 = vadd.f32 %v711_v45, %v623_v44  ;;  %v1529_v63 = vmul.f32 0.2, %v755_v41  ;;  %vm1401_vm6 = vcmp.gt.f32.partialorder %v755_v41, 0.0 }
  0xe8   :  { %v1657_v16 = vsel %vm1401_vm6, %v755_v41, %v1529_v63  ;;  %vm1333_vm3 = vcmp.gt.f32.partialorder %v4695_v56, 0.0 }
  0xe9   :  { %v667_v61 = vpop.f32.mrf.mxu2 }
  0xea   :  { %v668_v62 = vadd.f32 %v667_v61, %v4654_v48  ;;  %v756_v0 = vpop.f32.mrf.mxu3 }
  0xeb   :  { %v625_v1 = vpop.f32.mrf.mxu0 }
  0xec   :  { %v757_v3 = vadd.f32 %v756_v0, %v668_v62  ;;  %v626_v13 = vadd.f32 %v625_v1, %v4654_v48  ;;  %v714_v14 = vpop.f32.mrf.mxu1 }
  0xee   :  { %vm1405_vm7 = vcmp.gt.f32.partialorder %v757_v3, 0.0  ;;  %v1533_v15 = vmul.f32 0.2, %v757_v3  ;;  %v4699_v12 = vadd.f32 %v714_v14, %v626_v13  ;;  %807 = vmatmul.bf16.gmra.mxu2 %v4607_v4  ;;  %975 = vmatmul.bf16.gmra.mxu0 %v4583_v17 }
  0xef   :  { %896 = vmatmul.bf16.gmra.mxu3 %v4611_v10  ;;  %1064 = vmatmul.bf16.gmra.mxu1 %v4587_v19 }
  0xf0   :  { %v1661_v21 = vsel %vm1405_vm7, %v757_v3, %v1533_v15  ;;  %vm1337_vm6 = vcmp.gt.f32.partialorder %v4699_v12, 0.0 }
  0xf1   :  { %v670_v22 = vpop.f32.mrf.mxu2  ;;  %v4705_v23 = vpack.c.bf16 %v1661_v21, %v1657_v16 }
  0xf2   :  { %v671_v25 = vadd.f32 %v670_v22, %v4654_v48  ;;  %v759_v27 = vpop.f32.mrf.mxu3 }
  0xf3   :  { %6116 = vst [vmem:[#allocation36_spill] sm:$0xff] %v4705_v23  ;;  %v627_v28 = vpop.f32.mrf.mxu0 }
  0xf4   :  { %v760_v35 = vadd.f32 %v759_v27, %v671_v25  ;;  %v628_v36 = vadd.f32 %v627_v28, %v4654_v48  ;;  %v716_v38 = vpop.f32.mrf.mxu1 }
  0xf6   :  { %v4709_v44 = vadd.f32 %v716_v38, %v628_v36  ;;  %v1537_v41 = vmul.f32 0.2, %v760_v35  ;;  %vm1409_vm8 = vcmp.gt.f32.partialorder %v760_v35, 0.0 }
  0xf8   :  { %v1665_v15 = vsel %vm1409_vm8, %v760_v35, %v1537_v41  ;;  %vm1341_vm7 = vcmp.gt.f32.partialorder %v4709_v44, 0.0 }
  0xf9   :  { %v672_v45 = vpop.f32.mrf.mxu2 }
  0xfa   :  { %v673_v61 = vadd.f32 %v672_v45, %v4654_v48  ;;  %v761_v62 = vpop.f32.mrf.mxu3 }
  0xfb   :  { %v630_v0 = vpop.f32.mrf.mxu0 }
  0xfc   :  { %v762_v1 = vadd.f32 %v761_v62, %v673_v61  ;;  %v631_v63 = vadd.f32 %v630_v0, %v4654_v48  ;;  %v719_v3 = vpop.f32.mrf.mxu1 }
  0xfe   :  { %vm1413_vm9 = vcmp.gt.f32.partialorder %v762_v1, 0.0  ;;  %v1541_v13 = vmul.f32 0.2, %v762_v1  ;;  %v4713_v14 = vadd.f32 %v719_v3, %v631_v63  ;;  %812 = vmatmul.bf16.gmra.mxu2 %v4619_v52  ;;  %980 = vmatmul.bf16.gmra.mxu0 %v4595_v29 }
  0xff   :  { %901 = vmatmul.bf16.gmra.mxu3 %v4623_v54  ;;  %1069 = vmatmul.bf16.gmra.mxu1 %v4599_v31 }
 0x100   :  { %v1669_v16 = vsel %vm1413_vm9, %v762_v1, %v1541_v13 }
 0x101   :  { %v675_v21 = vpop.f32.mrf.mxu2  ;;  %v4719_v22 = vpack.c.bf16 %v1669_v16, %v1665_v15 }
 0x102   :  { %v676_v25 = vadd.f32 %v675_v21, %v4654_v48  ;;  %v764_v27 = vpop.f32.mrf.mxu3 }
 0x103   :  { %6117 = vst [vmem:[#allocation37_spill] sm:$0xff] %v4719_v22  ;;  %v632_v28 = vpop.f32.mrf.mxu0 }
 0x104   :  { %v765_v36 = vadd.f32 %v764_v27, %v676_v25  ;;  %v633_v38 = vadd.f32 %v632_v28, %v4654_v48  ;;  %v721_v45 = vpop.f32.mrf.mxu1 }
 0x106   :  { %v4723_v61 = vadd.f32 %v721_v45, %v633_v38  ;;  %v1545_v35 = vmul.f32 0.2, %v765_v36  ;;  %vm1417_vm10 = vcmp.gt.f32.partialorder %v765_v36, 0.0 }
 0x108   :  { %v1673_v21 = vsel %vm1417_vm10, %v765_v36, %v1545_v35  ;;  %vm1345_vm10 = vcmp.gt.f32.partialorder %v4713_v14, 0.0 }
 0x109   :  { %v677_v62 = vpop.f32.mrf.mxu2 }
 0x10a   :  { %v678_v0 = vadd.f32 %v677_v62, %v4654_v48  ;;  %v766_v63 = vpop.f32.mrf.mxu3 }
 0x10b   :  { %v635_v3 = vpop.f32.mrf.mxu0 }
 0x10c   :  { %v767_v41 = vadd.f32 %v766_v63, %v678_v0  ;;  %v636_v1 = vadd.f32 %v635_v3, %v4654_v48  ;;  %v724_v13 = vpop.f32.mrf.mxu1 }
 0x10e   :  { %vm1421_vm11 = vcmp.gt.f32.partialorder %v767_v41, 0.0  ;;  %v1549_v15 = vmul.f32 0.2, %v767_v41  ;;  %v4727_v16 = vadd.f32 %v724_v13, %v636_v1  ;;  %817 = vmatmul.bf16.gmra.mxu2 %v4631_v42  ;;  %985 = vmatmul.bf16.gmra.mxu0 %v4607_v4 }
 0x10f   :  { %906 = vmatmul.bf16.gmra.mxu3 %v4635_v46  ;;  %1074 = vmatmul.bf16.gmra.mxu1 %v4611_v10 }
 0x110   :  { %v1677_v25 = vsel %vm1421_vm11, %v767_v41, %v1549_v15  ;;  %vm1349_vm11 = vcmp.gt.f32.partialorder %v4723_v61, 0.0 }
 0x111   :  { %v680_v27 = vpop.f32.mrf.mxu2  ;;  %v4733_v28 = vpack.c.bf16 %v1677_v25, %v1673_v21 }
 0x112   :  { %v681_v38 = vadd.f32 %v680_v27, %v4654_v48  ;;  %v769_v45 = vpop.f32.mrf.mxu3  ;;  %v1449_v27 = vmul.f32 0.2, %v4671_v40 }
 0x113   :  { %6118 = vst [vmem:[#allocation38_spill] sm:$0xff] %v4733_v28  ;;  %v637_v62 = vpop.f32.mrf.mxu0 }
 0x114   :  { %v770_v0 = vadd.f32 %v769_v45, %v681_v38  ;;  %v638_v63 = vadd.f32 %v637_v62, %v4654_v48  ;;  %v726_v3 = vpop.f32.mrf.mxu1  ;;  %v1577_v28 = vsel %vm1321_vm14, %v4671_v40, %v1449_v27  ;;  %v1461_v27 = vmul.f32 0.2, %v4695_v56 }
 0x116   :  { %v4737_v1 = vadd.f32 %v726_v3, %v638_v63  ;;  %v1553_v36 = vmul.f32 0.2, %v770_v0  ;;  %vm1425_vm12 = vcmp.gt.f32.partialorder %v770_v0, 0.0 }
 0x119   :  { %v682_v13 = vpop.f32.mrf.mxu2 }
 0x11a   :  { %v683_v22 = vadd.f32 %v682_v13, %v4654_v48  ;;  %v771_v23 = vpop.f32.mrf.mxu3 }
 0x11b   :  { %v640_v33 = vpop.f32.mrf.mxu0 }
 0x11c   :  { %v772_v35 = vadd.f32 %v771_v23, %v683_v22  ;;  %v641_v41 = vadd.f32 %v640_v33, %v4654_v48  ;;  %v729_v15 = vpop.f32.mrf.mxu1  ;;  %v1453_v23 = vmul.f32 0.2, %v4681_v2  ;;  %v1681_v22 = vsel %vm1425_vm12, %v770_v0, %v1553_v36 }
 0x11e   :  { %vm1429_vm13 = vcmp.gt.f32.partialorder %v772_v35, 0.0  ;;  %v1557_v21 = vmul.f32 0.2, %v772_v35  ;;  %v4741_v25 = vadd.f32 %v729_v15, %v641_v41  ;;  %822 = vmatmul.bf16.gmra.mxu2 %v4643_v34  ;;  %990 = vmatmul.bf16.gmra.mxu0 %v4619_v52  ;;  %v1581_v0 = vsel %vm1325_vm15, %v4681_v2, %v1453_v23 }
 0x11f   :  { %911 = vmatmul.bf16.gmra.mxu3 %v4645_v37  ;;  %1079 = vmatmul.bf16.gmra.mxu1 %v4623_v54  ;;  %v4757_v36 = vpack.c.bf16 %v1581_v0, %v1577_v28  ;;  %v4768_v2 = vperm.slane %v4651_v39, 1  ;;  %v1457_v28 = vmul.f32 0.2, %v4685_v24 }
 0x120   :  { %v1685_v33 = vsel %vm1429_vm13, %v772_v35, %v1557_v21 }
 0x121   :  { %v685_v38 = vpop.f32.mrf.mxu2  ;;  %v4751_v45 = vpack.c.bf16 %v1685_v33, %v1681_v22 }
 0x122   :  { %v686_v62 = vadd.f32 %v685_v38, %v4654_v48  ;;  %v774_v63 = vpop.f32.mrf.mxu3 }
 0x123   :  { %6119 = vst [vmem:[#allocation39_spill] sm:$0xff] %v4751_v45  ;;  %v642_v3 = vpop.f32.mrf.mxu0 }
 0x124   :  { %v775_v13 = vadd.f32 %v774_v63, %v686_v62  ;;  %v643_v41 = vadd.f32 %v642_v3, %v4654_v48  ;;  %v731_v15 = vpop.f32.mrf.mxu1 }
 0x126   :  { %v4759_v35 = vadd.f32 %v731_v15, %v643_v41  ;;  %v1561_v38 = vmul.f32 0.2, %v775_v13  ;;  %vm1433_vm0 = vcmp.gt.f32.partialorder %v775_v13, 0.0 }
 0x128   :  { %v1689_v23 = vsel %vm1433_vm0, %v775_v13, %v1561_v38  ;;  %v1589_v13 = vsel %vm1333_vm3, %v4695_v56, %v1461_v27  ;;  %v1469_v56 = vmul.f32 0.2, %v4709_v44  ;;  %vm1353_vm0 = vcmp.gt.f32.partialorder %v4727_v16, 0.0 }
 0x129   :  { %v687_v21 = vpop.f32.mrf.mxu2 }
 0x12a   :  { %v688_v22 = vadd.f32 %v687_v21, %v4654_v48  ;;  %v776_v33 = vpop.f32.mrf.mxu3 }
 0x12b   :  { %v645_v45 = vpop.f32.mrf.mxu0 }
 0x12c   :  { %v777_v50 = vadd.f32 %v776_v33, %v688_v22  ;;  %v646_v62 = vadd.f32 %v645_v45, %v4654_v48  ;;  %v734_v63 = vpop.f32.mrf.mxu1 }
 0x12e   :  { %vm1437_vm1 = vcmp.gt.f32.partialorder %v777_v50, 0.0  ;;  %v1565_v3 = vmul.f32 0.2, %v777_v50  ;;  %v4763_v40 = vadd.f32 %v734_v63, %v646_v62  ;;  %827 = vmatmul.bf16.gmra.mxu2 %v4656_v49  ;;  %995 = vmatmul.bf16.gmra.mxu0 %v4631_v42 }
 0x12f   :  { %916 = vmatmul.bf16.gmra.mxu3 %v4658_v51  ;;  %1084 = vmatmul.bf16.gmra.mxu1 %v4635_v46  ;;  %v1585_v46 = vsel %vm1329_vm2, %v4685_v24, %v1457_v28 }
 0x130   :  { %v1693_v45 = vsel %vm1437_vm1, %v777_v50, %v1565_v3  ;;  %v4782_v50 = vpack.c.bf16 %v1589_v13, %v1585_v46  ;;  %v1465_v46 = vmul.f32 0.2, %v4699_v12  ;;  %vm1357_vm1 = vcmp.gt.f32.partialorder %v4737_v1, 0.0 }
 0x131   :  { %v788_v41 = vpop.f32.mrf.mxu2  ;;  %v4776_v15 = vpack.c.bf16 %v1693_v45, %v1689_v23 }
 0x132   :  { %v789_v0 = vadd.f32 %v788_v41, %v4768_v2  ;;  %v877_v21 = vpop.f32.mrf.mxu3 }
 0x133   :  { %6120 = vst [vmem:[#allocation40_spill] sm:$0xff] %v4776_v15  ;;  %v647_v22 = vpop.f32.mrf.mxu0 }
 0x134   :  { %v878_v33 = vadd.f32 %v877_v21, %v789_v0  ;;  %v648_v62 = vadd.f32 %v647_v22, %v4654_v48  ;;  %v736_v63 = vpop.f32.mrf.mxu1 }
 0x136   :  { %v4784_v38 = vadd.f32 %v736_v63, %v648_v62  ;;  %v1442_v41 = vmul.f32 0.2, %v878_v33  ;;  %vm1314_vm4 = vcmp.gt.f32.partialorder %v878_v33, 0.0 }
 0x138   :  { %v1570_v28 = vsel %vm1314_vm4, %v878_v33, %v1442_v41  ;;  %v1597_v33 = vsel %vm1341_vm7, %v4709_v44, %v1469_v56  ;;  %v4178_v56 = vld [vmem:[#allocation6 + $0xec] sm:$0xf]  ;;  %vm1361_vm4 = vcmp.gt.f32.partialorder %v4741_v25, 0.0 }
 0x139   :  { %v790_v3 = vpop.f32.mrf.mxu2 }
 0x13a   :  { %v791_v23 = vadd.f32 %v790_v3, %v4768_v2  ;;  %v879_v45 = vpop.f32.mrf.mxu3 }
 0x13b   :  { %v650_v15 = vpop.f32.mrf.mxu0 }
 0x13c   :  { %v880_v42 = vadd.f32 %v879_v45, %v791_v23  ;;  %v651_v0 = vadd.f32 %v650_v15, %v4654_v48  ;;  %v739_v21 = vpop.f32.mrf.mxu1 }
 0x13e   :  { %vm1318_vm5 = vcmp.gt.f32.partialorder %v880_v42, 0.0  ;;  %v1446_v22 = vmul.f32 0.2, %v880_v42  ;;  %v4788_v24 = vadd.f32 %v739_v21, %v651_v0  ;;  %832 = vmatmul.bf16.gmra.mxu2 %v4561_v58  ;;  %1000 = vmatmul.bf16.gmra.mxu0 %v4643_v34  ;;  %v1593_v21 = vsel %vm1337_vm6, %v4699_v12, %v1465_v46 }
 0x13f   :  { %921 = vmatmul.bf16.gmra.mxu3 %v4565_v60  ;;  %1089 = vmatmul.bf16.gmra.mxu1 %v4645_v37  ;;  %v1477_v46 = vmul.f32 0.2, %v4723_v61 }
 0x140   :  { %v1574_v27 = vsel %vm1318_vm5, %v880_v42, %v1446_v22  ;;  %v4804_v42 = vpack.c.bf16 %v1597_v33, %v1593_v21  ;;  %v4809_v22 = vperm.slane %v4651_v39, 2  ;;  %v1473_v39 = vmul.f32 0.2, %v4713_v14  ;;  %v3697_v21 = vld [vmem:[#allocation6 + $0xf8] sm:$0xf0] }
 0x141   :  { %v4798_v15 = vpack.c.bf16 %v1574_v27, %v1570_v28  ;;  %v793_v62 = vpop.f32.mrf.mxu2  ;;  %vm1365_vm5 = vcmp.gt.f32.partialorder %v4759_v35, 0.0 }
 0x142   :  { %v794_v63 = vadd.f32 %v793_v62, %v4768_v2  ;;  %v882_v13 = vpop.f32.mrf.mxu3 }
 0x143   :  { %v652_v3 = vpop.f32.mrf.mxu0 }
 0x144   :  { %v883_v23 = vadd.f32 %v882_v13, %v794_v63  ;;  %v653_v45 = vadd.f32 %v652_v3, %v4654_v48  ;;  %v741_v0 = vpop.f32.mrf.mxu1 }
 0x146   :  { %v4806_v41 = vadd.f32 %v741_v0, %v653_v45  ;;  %v1450_v63 = vmul.f32 0.2, %v883_v23  ;;  %vm1322_vm8 = vcmp.gt.f32.partialorder %v883_v23, 0.0 }
 0x148   :  { %v1578_v45 = vsel %vm1322_vm8, %v883_v23, %v1450_v63  ;;  %v1601_v23 = vsel %vm1345_vm10, %v4713_v14, %v1473_v39  ;;  %v1605_v63 = vsel %vm1349_vm11, %v4723_v61, %v1477_v46  ;;  %vm1369_vm8 = vcmp.gt.f32.partialorder %v4763_v40, 0.0 }
 0x149   :  { %v795_v28 = vpop.f32.mrf.mxu2 }
 0x14a   :  { %v796_v27 = vadd.f32 %v795_v28, %v4768_v2  ;;  %v884_v62 = vpop.f32.mrf.mxu3 }
 0x14b   :  { %v966_v37 = vpop.f32.mrf.mxu0 }
 0x14c   :  { %v885_v13 = vadd.f32 %v884_v62, %v796_v27  ;;  %v967_v48 = vadd.f32 %v966_v37, %v4809_v22  ;;  %v1055_v3 = vpop.f32.mrf.mxu1  ;;  %v3700_v62 = vor.u32 %v4178_v56, %v3697_v21 }
 0x14e   :  { %vm1326_vm9 = vcmp.gt.f32.partialorder %v885_v13, 0.0  ;;  %v1454_v12 = vmul.f32 0.2, %v885_v13  ;;  %v1056_v44 = vadd.f32 %v1055_v3, %v967_v48  ;;  %837 = vmatmul.bf16.gmra.mxu2 %v4573_v6  ;;  %1005 = vmatmul.bf16.gmra.mxu0 %v4656_v49 }
 0x14f   :  { %926 = vmatmul.bf16.gmra.mxu3 %v4577_v8  ;;  %1094 = vmatmul.bf16.gmra.mxu1 %v4658_v51 }
 0x150   :  { %v1582_v37 = vsel %vm1326_vm9, %v885_v13, %v1454_v12  ;;  %v1443_v48 = vmul.f32 0.2, %v1056_v44  ;;  %1135 = vmatpush.bf16.msra.mxu2 %v3700_v62  ;;  %vm1315_vm12 = vcmp.gt.f32.partialorder %v1056_v44, 0.0  ;;  %v4827_v13 = vpack.c.bf16 %v1605_v63, %v1601_v23 }
 0x151   :  { %v798_v0 = vpop.f32.mrf.mxu2  ;;  %v4821_v33 = vpack.c.bf16 %v1582_v37, %v1578_v45  ;;  %v4210_v45 = vld [vmem:[#allocation6 + $0x1ec] sm:$0xf]  ;;  %v3825_v37 = vld [vmem:[#allocation6 + $0x1f8] sm:$0xf0]  ;;  %vm1373_vm9 = vcmp.gt.f32.partialorder %v4784_v38, 0.0 }
 0x152   :  { %v799_v28 = vadd.f32 %v798_v0, %v4768_v2  ;;  %v887_v27 = vpop.f32.mrf.mxu3  ;;  %v1571_v0 = vsel %vm1315_vm12, %v1056_v44, %v1443_v48  ;;  %v3828_v21 = vor.u32 %v4210_v45, %v3825_v37  ;;  %v1485_v48 = vmul.f32 0.2, %v4737_v1 }
 0x153   :  { %v968_v3 = vpop.f32.mrf.mxu0  ;;  %vm1377_vm12 = vcmp.gt.f32.partialorder %v4788_v24, 0.0 }
 0x154   :  { %v888_v51 = vadd.f32 %v887_v27, %v799_v28  ;;  %v969_v49 = vadd.f32 %v968_v3, %v4809_v22  ;;  %v1057_v34 = vpop.f32.mrf.mxu1  ;;  %1224 = vmatpush.bf16.msra.mxu3 %v3828_v21 }
 0x156   :  { %v1058_v12 = vadd.f32 %v1057_v34, %v969_v49  ;;  %v1458_v61 = vmul.f32 0.2, %v888_v51  ;;  %vm1330_vm14 = vcmp.gt.f32.partialorder %v888_v51, 0.0 }
 0x158   :  { %vm1319_vm13 = vcmp.gt.f32.partialorder %v1058_v12, 0.0  ;;  %v1447_v56 = vmul.f32 0.2, %v1058_v12  ;;  %v1586_v23 = vsel %vm1330_vm14, %v888_v51, %v1458_v61  ;;  %v1613_v51 = vsel %vm1357_vm1, %v4737_v1, %v1485_v48  ;;  %v4174_v48 = vld [vmem:[#allocation6 + $0xcc] sm:$0xf] }
 0x159   :  { %v800_v54 = vpop.f32.mrf.mxu2  ;;  %v1489_v1 = vmul.f32 0.2, %v4741_v25 }
 0x15a   :  { %v1575_v28 = vsel %vm1319_vm13, %v1058_v12, %v1447_v56  ;;  %v801_v27 = vadd.f32 %v800_v54, %v4768_v2  ;;  %v889_v3 = vpop.f32.mrf.mxu3  ;;  %v1481_v54 = vmul.f32 0.2, %v4727_v16  ;;  %vm1381_vm13 = vcmp.gt.f32.partialorder %v4806_v41, 0.0 }
 0x15b   :  { %v4830_v62 = vpack.c.bf16 %v1575_v28, %v1571_v0  ;;  %v971_v14 = vpop.f32.mrf.mxu0 }
 0x15c   :  { %v890_v39 = vadd.f32 %v889_v3, %v801_v27  ;;  %v972_v46 = vadd.f32 %v971_v14, %v4809_v22  ;;  %v1060_v34 = vpop.f32.mrf.mxu1  ;;  %v1609_v3 = vsel %vm1353_vm0, %v4727_v16, %v1481_v54  ;;  %v1493_v54 = vmul.f32 0.2, %v4759_v35 }
 0x15d   :  { %6121 = vst [vmem:[#allocation41_spill] sm:$0xff] %v4830_v62  ;;  %v4849_v14 = vpack.c.bf16 %v1613_v51, %v1609_v3  ;;  %v3681_v3 = vld [vmem:[#allocation6 + $0xd8] sm:$0xf0]  ;;  %v4206_v51 = vld [vmem:[#allocation6 + $0x1cc] sm:$0xf] }
 0x15e   :  { %vm1334_vm15 = vcmp.gt.f32.partialorder %v890_v39, 0.0  ;;  %v1462_v49 = vmul.f32 0.2, %v890_v39  ;;  %v4833_v44 = vadd.f32 %v1060_v34, %v972_v46  ;;  %842 = vmatmul.bf16.gmra.mxu2 %v4585_v18  ;;  %1010 = vmatmul.bf16.gmra.mxu0 %v4561_v58 }
 0x15f   :  { %931 = vmatmul.bf16.gmra.mxu3 %v4589_v20  ;;  %1099 = vmatmul.bf16.gmra.mxu1 %v4565_v60  ;;  %6122 = vst [vmem:[#allocation42_spill] sm:$0xff] %v4849_v14 }
 0x160   :  { %v1590_v63 = vsel %vm1334_vm15, %v890_v39, %v1462_v49 }
 0x161   :  { %v803_v12 = vpop.f32.mrf.mxu2  ;;  %v4843_v45 = vpack.c.bf16 %v1590_v63, %v1586_v23 }
 0x162   :  { %v804_v37 = vadd.f32 %v803_v12, %v4768_v2  ;;  %v892_v0 = vpop.f32.mrf.mxu3 }
 0x163   :  { %v973_v56 = vpop.f32.mrf.mxu0 }
 0x164   :  { %v893_v21 = vadd.f32 %v892_v0, %v804_v37  ;;  %v974_v28 = vadd.f32 %v973_v56, %v4809_v22  ;;  %v1062_v27 = vpop.f32.mrf.mxu1 }
 0x166   :  { %v4851_v61 = vadd.f32 %v1062_v27, %v974_v28  ;;  %v1466_v23 = vmul.f32 0.2, %v893_v21  ;;  %vm1338_vm2 = vcmp.gt.f32.partialorder %v893_v21, 0.0 }
 0x168   :  { %v1594_v56 = vsel %vm1338_vm2, %v893_v21, %v1466_v23  ;;  %v1617_v21 = vsel %vm1361_vm4, %v4741_v25, %v1489_v1  ;;  %v4170_v23 = vld [vmem:[#allocation6 + $0xac] sm:$0xf]  ;;  %vm1323_vm2 = vcmp.gt.f32.partialorder %v4833_v44, 0.0 }
 0x169   :  { %v805_v39 = vpop.f32.mrf.mxu2 }
 0x16a   :  { %v806_v46 = vadd.f32 %v805_v39, %v4768_v2  ;;  %v894_v34 = vpop.f32.mrf.mxu3  ;;  %v3809_v39 = vld [vmem:[#allocation6 + $0x1d8] sm:$0xf0] }
 0x16b   :  { %v976_v49 = vpop.f32.mrf.mxu0 }
 0x16c   :  { %v895_v63 = vadd.f32 %v894_v34, %v806_v46  ;;  %v977_v12 = vadd.f32 %v976_v49, %v4809_v22  ;;  %v1065_v37 = vpop.f32.mrf.mxu1 }
 0x16e   :  { %vm1342_vm3 = vcmp.gt.f32.partialorder %v895_v63, 0.0  ;;  %v1470_v0 = vmul.f32 0.2, %v895_v63  ;;  %v4855_v16 = vadd.f32 %v1065_v37, %v977_v12  ;;  %847 = vmatmul.bf16.gmra.mxu2 %v4597_v30  ;;  %1015 = vmatmul.bf16.gmra.mxu0 %v4573_v6  ;;  %v3684_v12 = vor.u32 %v4174_v48, %v3681_v3 }
 0x16f   :  { %936 = vmatmul.bf16.gmra.mxu3 %v4601_v32  ;;  %1104 = vmatmul.bf16.gmra.mxu1 %v4577_v8  ;;  %v3812_v37 = vor.u32 %v4206_v51, %v3809_v39  ;;  %v4166_v39 = vld [vmem:[#allocation6 + $0x8c] sm:$0xf] }
 0x170   :  { %v1598_v28 = vsel %vm1342_vm3, %v895_v63, %v1470_v0  ;;  %1136 = vmatpush.bf16.msra.mxu2 %v3684_v12  ;;  %v3665_v63 = vld [vmem:[#allocation6 + $0xb8] sm:$0xf0]  ;;  %v4202_v0 = vld [vmem:[#allocation6 + $0x1ac] sm:$0xf]  ;;  %vm1327_vm3 = vcmp.gt.f32.partialorder %v4851_v61, 0.0 }
 0x171   :  { %v808_v27 = vpop.f32.mrf.mxu2  ;;  %v4864_v46 = vpack.c.bf16 %v1598_v28, %v1594_v56  ;;  %1225 = vmatpush.bf16.msra.mxu3 %v3812_v37  ;;  %v1621_v56 = vsel %vm1365_vm5, %v4759_v35, %v1493_v54  ;;  %v3668_v48 = vor.u32 %v4170_v23, %v3665_v63  ;;  %v3777_v37 = vld [vmem:[#allocation6 + $0x198] sm:$0xf0]  ;;  %v4162_v23 = vld [vmem:[#allocation6 + $0x6c] sm:$0xf] }
 0x172   :  { %v809_v34 = vadd.f32 %v808_v27, %v4768_v2  ;;  %v897_v49 = vpop.f32.mrf.mxu3  ;;  %v3793_v27 = vld [vmem:[#allocation6 + $0x1b8] sm:$0xf0]  ;;  %v4875_v51 = vpack.c.bf16 %v1621_v56, %v1617_v21 }
 0x173   :  { %v978_v62 = vpop.f32.mrf.mxu0  ;;  %v3796_v3 = vor.u32 %v4202_v0, %v3793_v27  ;;  %v3633_v63 = vld [vmem:[#allocation6 + $0x78] sm:$0xf0]  ;;  %v4194_v0 = vld [vmem:[#allocation6 + $0x16c] sm:$0xf] }
 0x174   :  { %v898_v8 = vadd.f32 %v897_v49, %v809_v34  ;;  %v979_v6 = vadd.f32 %v978_v62, %v4809_v22  ;;  %v1067_v60 = vpop.f32.mrf.mxu1  ;;  %6123 = vst [vmem:[#allocation43_spill] sm:$0xff] %v4875_v51  ;;  %1137 = vmatpush.bf16.msra.mxu2 %v3668_v48  ;;  %v3649_v34 = vld [vmem:[#allocation6 + $0x98] sm:$0xf0]  ;;  %v4198_v49 = vld [vmem:[#allocation6 + $0x18c] sm:$0xf]  ;;  %v3636_v27 = vor.u32 %v4162_v23, %v3633_v63 }
 0x175   :  { %1226 = vmatpush.bf16.msra.mxu3 %v3796_v3  ;;  %v3652_v12 = vor.u32 %v4166_v39, %v3649_v34  ;;  %v3780_v35 = vor.u32 %v4198_v49, %v3777_v37  ;;  %v3761_v3 = vld [vmem:[#allocation6 + $0x178] sm:$0xf0]  ;;  %v1501_v39 = vmul.f32 0.2, %v4784_v38  ;;  %v4190_v37 = vld [vmem:[#allocation6 + $0x14c] sm:$0xf] }
 0x176   :  { %v4873_v28 = vadd.f32 %v1067_v60, %v979_v6  ;;  %vm1346_vm6 = vcmp.gt.f32.partialorder %v898_v8, 0.0  ;;  %v1474_v60 = vmul.f32 0.2, %v898_v8  ;;  %v3745_v63 = vld [vmem:[#allocation6 + $0x158] sm:$0xf0] }
 0x178   :  { %1138 = vmatpush.bf16.msra.mxu2 %v3652_v12  ;;  %v1602_v34 = vsel %vm1346_vm6, %v898_v8, %v1474_v60  ;;  %v3617_v12 = vld [vmem:[#allocation6 + $0x58] sm:$0xf0]  ;;  %vm1331_vm6 = vcmp.gt.f32.partialorder %v4855_v16, 0.0 }
 0x179   :  { %v810_v62 = vpop.f32.mrf.mxu2  ;;  %1227 = vmatpush.bf16.msra.mxu3 %v3780_v35 }
 0x17a   :  { %v811_v25 = vadd.f32 %v810_v62, %v4768_v2  ;;  %v899_v1 = vpop.f32.mrf.mxu3  ;;  %v3764_v62 = vor.u32 %v4194_v0, %v3761_v3  ;;  %v3748_v3 = vor.u32 %v4190_v37, %v3745_v63  ;;  %v3713_v63 = vld [vmem:[#allocation6 + $0x118] sm:$0xf0] }
 0x17b   :  { %v981_v58 = vpop.f32.mrf.mxu0 }
 0x17c   :  { %v900_v6 = vadd.f32 %v899_v1, %v811_v25  ;;  %v982_v54 = vadd.f32 %v981_v58, %v4809_v22  ;;  %v1070_v21 = vpop.f32.mrf.mxu1  ;;  %v1497_v58 = vmul.f32 0.2, %v4763_v40  ;;  %1139 = vmatpush.bf16.msra.mxu2 %v3636_v27  ;;  %v4158_v1 = vld [vmem:[#allocation6 + $0x4c] sm:$0xf] }
 0x17d   :  { %1228 = vmatpush.bf16.msra.mxu3 %v3764_v62  ;;  %v3620_v23 = vor.u32 %v4158_v1, %v3617_v12  ;;  %v3601_v62 = vld [vmem:[#allocation6 + $0x38] sm:$0xf0] }
 0x17e   :  { %vm1350_vm7 = vcmp.gt.f32.partialorder %v900_v6, 0.0  ;;  %v1478_v56 = vmul.f32 0.2, %v900_v6  ;;  %v4879_v48 = vadd.f32 %v1070_v21, %v982_v54  ;;  %852 = vmatmul.bf16.gmra.mxu2 %v4609_v9  ;;  %1020 = vmatmul.bf16.gmra.mxu0 %v4585_v18  ;;  %v1625_v60 = vsel %vm1369_vm8, %v4763_v40, %v1497_v58  ;;  %v3729_v12 = vld [vmem:[#allocation6 + $0x138] sm:$0xf0] }
 0x17f   :  { %941 = vmatmul.bf16.gmra.mxu3 %v4613_v11  ;;  %1109 = vmatmul.bf16.gmra.mxu1 %v4589_v20  ;;  %v3585_v40 = vld [vmem:[#allocation6 + $0x18] sm:$0xf0]  ;;  %v4182_v58 = vld [vmem:[#allocation6 + $0x10c] sm:$0xf] }
 0x180   :  { %v1606_v49 = vsel %vm1350_vm7, %v900_v6, %v1478_v56  ;;  %1140 = vmatpush.bf16.msra.mxu2 %v3620_v23  ;;  %v1629_v6 = vsel %vm1373_vm9, %v4784_v38, %v1501_v39  ;;  %v4154_v56 = vld [vmem:[#allocation6 + $0x2c] sm:$0xf]  ;;  %vm1335_vm7 = vcmp.gt.f32.partialorder %v4873_v28, 0.0 }
 0x181   :  { %v813_v25 = vpop.f32.mrf.mxu2  ;;  %v4891_v35 = vpack.c.bf16 %v1606_v49, %v1602_v34  ;;  %1229 = vmatpush.bf16.msra.mxu3 %v3748_v3  ;;  %v4186_v34 = vld [vmem:[#allocation6 + $0x12c] sm:$0xf]  ;;  %v4901_v49 = vpack.c.bf16 %v1629_v6, %v1625_v60  ;;  %v3604_v1 = vor.u32 %v4154_v56, %v3601_v62  ;;  %v3716_v3 = vor.u32 %v4182_v58, %v3713_v63  ;;  %v3887_v56 = vld [vmem:[#allocation9 + $0x70] sm:$0xf]  ;;  %v4228_v62 = vld [vmem:[#allocation9 + $0x74] sm:$0xf0] }
 0x182   :  { %v814_v54 = vadd.f32 %v813_v25, %v4768_v2  ;;  %v902_v21 = vpop.f32.mrf.mxu3  ;;  %v3732_v37 = vor.u32 %v4186_v34, %v3729_v12  ;;  %v3951_v34 = vld [vmem:[#allocation9 + $0xf0] sm:$0xf]  ;;  %v1509_v58 = vmul.f32 0.2, %v4806_v41  ;;  %v3879_v63 = vld [vmem:[#allocation9 + $0x60] sm:$0xf] }
 0x183   :  { %v983_v0 = vpop.f32.mrf.mxu0  ;;  %6124 = vst [vmem:[#allocation44_spill] sm:$0xff] %v4901_v49 }
 0x184   :  { %v903_v20 = vadd.f32 %v902_v21, %v814_v54  ;;  %v984_v27 = vadd.f32 %v983_v0, %v4809_v22  ;;  %v1072_v8 = vpop.f32.mrf.mxu1  ;;  %1141 = vmatpush.bf16.msra.mxu2 %v3604_v1  ;;  %v4150_v21 = vld [vmem:[#allocation6 + $0xc] sm:$0xf] }
 0x185   :  { %1230 = vmatpush.bf16.msra.mxu3 %v3732_v37  ;;  %v3588_v39 = vor.u32 %v4150_v21, %v3585_v40  ;;  %v3888_v37 = vor.u32 %v4228_v62, %v3887_v56  ;;  %v1505_v21 = vmul.f32 0.2, %v4788_v24 }
 0x186   :  { %v4903_v25 = vadd.f32 %v1072_v8, %v984_v27  ;;  %vm1354_vm10 = vcmp.gt.f32.partialorder %v903_v20, 0.0  ;;  %v1482_v60 = vmul.f32 0.2, %v903_v20 }
 0x187   :  { %2151 = vmatpush.bf16.msra.mxu0 %v3888_v37 }
 0x188   :  { %1142 = vmatpush.bf16.msra.mxu2 %v3588_v39 }
 0x189   :  { %v815_v54 = vpop.f32.mrf.mxu2  ;;  %1231 = vmatpush.bf16.msra.mxu3 %v3716_v3  ;;  %v3943_v3 = vld [vmem:[#allocation9 + $0xe0] sm:$0xf] }
 0x18a   :  { %v816_v23 = vadd.f32 %v815_v54, %v4768_v2  ;;  %v904_v38 = vpop.f32.mrf.mxu3  ;;  %v4244_v54 = vld [vmem:[#allocation9 + $0xf4] sm:$0xf0] }
 0x18b   :  { %v986_v0 = vpop.f32.mrf.mxu0  ;;  %v3952_v40 = vor.u32 %v4244_v54, %v3951_v34  ;;  %v4242_v34 = vld [vmem:[#allocation9 + $0xe4] sm:$0xf0] }
 0x18c   :  { %v905_v27 = vadd.f32 %v904_v38, %v816_v23  ;;  %v987_v8 = vadd.f32 %v986_v0, %v4809_v22  ;;  %v1075_v6 = vpop.f32.mrf.mxu1  ;;  %v1610_v23 = vsel %vm1354_vm10, %v903_v20, %v1482_v60  ;;  %v4226_v0 = vld [vmem:[#allocation9 + $0x64] sm:$0xf0]  ;;  %v1633_v60 = vsel %vm1377_vm12, %v4788_v24, %v1505_v21  ;;  %v3927_v21 = vld [vmem:[#allocation9 + $0xc0] sm:$0xf] }
 0x18d   :  { %2240 = vmatpush.bf16.msra.mxu1 %v3952_v40  ;;  %v3880_v62 = vor.u32 %v4226_v0, %v3879_v63  ;;  %v4224_v40 = vld [vmem:[#allocation9 + $0x54] sm:$0xf0]  ;;  %v4222_v24 = vld [vmem:[#allocation9 + $0x44] sm:$0xf0]  ;;  %vm1339_vm10 = vcmp.gt.f32.partialorder %v4879_v48, 0.0 }
 0x18e   :  { %vm1358_vm11 = vcmp.gt.f32.partialorder %v905_v27, 0.0  ;;  %v1486_v1 = vmul.f32 0.2, %v905_v27  ;;  %v4907_v12 = vadd.f32 %v1075_v6, %v987_v8  ;;  %857 = vmatmul.bf16.gmra.mxu2 %v4621_v53  ;;  %1025 = vmatmul.bf16.gmra.mxu0 %v4597_v30  ;;  %v4240_v0 = vld [vmem:[#allocation9 + $0xd4] sm:$0xf0] }
 0x18f   :  { %946 = vmatmul.bf16.gmra.mxu3 %v4625_v55  ;;  %1114 = vmatmul.bf16.gmra.mxu1 %v4601_v32  ;;  %v3944_v32 = vor.u32 %v4242_v34, %v3943_v3 }
 0x190   :  { %v1614_v38 = vsel %vm1358_vm11, %v905_v27, %v1486_v1  ;;  %2152 = vmatpush.bf16.msra.mxu0 %v3880_v62  ;;  %v1637_v27 = vsel %vm1381_vm13, %v4806_v41, %v1509_v58  ;;  %v3871_v1 = vld [vmem:[#allocation9 + $0x50] sm:$0xf]  ;;  %v4238_v58 = vld [vmem:[#allocation9 + $0xc4] sm:$0xf0]  ;;  %vm1343_vm11 = vcmp.gt.f32.partialorder %v4903_v25, 0.0 }
 0x191   :  { %v818_v39 = vpop.f32.mrf.mxu2  ;;  %v4919_v8 = vpack.c.bf16 %v1614_v38, %v1610_v23  ;;  %2241 = vmatpush.bf16.msra.mxu1 %v3944_v32  ;;  %v3935_v23 = vld [vmem:[#allocation9 + $0xd0] sm:$0xf]  ;;  %v4929_v38 = vpack.c.bf16 %v1637_v27, %v1633_v60  ;;  %v3872_v63 = vor.u32 %v4224_v40, %v3871_v1  ;;  %v4220_v40 = vld [vmem:[#allocation9 + $0x34] sm:$0xf0] }
 0x192   :  { %v819_v6 = vadd.f32 %v818_v39, %v4768_v2  ;;  %v907_v56 = vpop.f32.mrf.mxu3  ;;  %v3936_v3 = vor.u32 %v4240_v0, %v3935_v23  ;;  %v3855_v1 = vld [vmem:[#allocation9 + $0x30] sm:$0xf] }
 0x193   :  { %6125 = vst [vmem:[#allocation45_spill] sm:$0xff] %v4919_v8  ;;  %v988_v54 = vpop.f32.mrf.mxu0  ;;  %v3919_v23 = vld [vmem:[#allocation9 + $0xb0] sm:$0xf] }
 0x194   :  { %v908_v30 = vadd.f32 %v907_v56, %v819_v6  ;;  %v989_v37 = vadd.f32 %v988_v54, %v4809_v22  ;;  %v1077_v20 = vpop.f32.mrf.mxu1  ;;  %6126 = vst [vmem:[#allocation46_spill] sm:$0xff] %v4929_v38  ;;  %2153 = vmatpush.bf16.msra.mxu0 %v3872_v63  ;;  %v3863_v56 = vld [vmem:[#allocation9 + $0x40] sm:$0xf]  ;;  %v3928_v54 = vor.u32 %v4238_v58, %v3927_v21 }
 0x195   :  { %2242 = vmatpush.bf16.msra.mxu1 %v3936_v3  ;;  %v3864_v32 = vor.u32 %v4222_v24, %v3863_v56  ;;  %v3856_v3 = vor.u32 %v4220_v40, %v3855_v1  ;;  %v3911_v58 = vld [vmem:[#allocation9 + $0xa0] sm:$0xf]  ;;  %v4234_v1 = vld [vmem:[#allocation9 + $0xa4] sm:$0xf0] }
 0x196   :  { %v4931_v39 = vadd.f32 %v1077_v20, %v989_v37  ;;  %vm1362_vm14 = vcmp.gt.f32.partialorder %v908_v30, 0.0  ;;  %v1490_v60 = vmul.f32 0.2, %v908_v30 }
 0x198   :  { %2154 = vmatpush.bf16.msra.mxu0 %v3864_v32  ;;  %v1618_v24 = vsel %vm1362_vm14, %v908_v30, %v1490_v60  ;;  %v4218_v32 = vld [vmem:[#allocation9 + $0x24] sm:$0xf0]  ;;  %v3839_v30 = vld [vmem:[#allocation9 + $0x10] sm:$0xf]  ;;  %v4216_v60 = vld [vmem:[#allocation9 + $0x14] sm:$0xf0] }
 0x199   :  { %v820_v6 = vpop.f32.mrf.mxu2  ;;  %2243 = vmatpush.bf16.msra.mxu1 %v3928_v54  ;;  %vm1347_vm14 = vcmp.gt.f32.partialorder %v4907_v12, 0.0 }
 0x19a   :  { %v821_v62 = vadd.f32 %v820_v6, %v4768_v2  ;;  %v909_v41 = vpop.f32.mrf.mxu3  ;;  %v4236_v6 = vld [vmem:[#allocation9 + $0xb4] sm:$0xf0] }
 0x19b   :  { %v991_v34 = vpop.f32.mrf.mxu0  ;;  %v3920_v56 = vor.u32 %v4236_v6, %v3919_v23  ;;  %v3840_v6 = vor.u32 %v4216_v60, %v3839_v30 }
 0x19c   :  { %v910_v37 = vadd.f32 %v909_v41, %v821_v62  ;;  %v992_v20 = vadd.f32 %v991_v34, %v4809_v22  ;;  %v1080_v27 = vpop.f32.mrf.mxu1  ;;  %2155 = vmatpush.bf16.msra.mxu0 %v3856_v3  ;;  %v3847_v41 = vld [vmem:[#allocation9 + $0x20] sm:$0xf] }
 0x19d   :  { %2244 = vmatpush.bf16.msra.mxu1 %v3920_v56  ;;  %v4232_v56 = vld [vmem:[#allocation9 + $0x94] sm:$0xf0] }
 0x19e   :  { %vm1366_vm15 = vcmp.gt.f32.partialorder %v910_v37, 0.0  ;;  %v1494_v63 = vmul.f32 0.2, %v910_v37  ;;  %v4935_v0 = vadd.f32 %v1080_v27, %v992_v20  ;;  %862 = vmatmul.bf16.gmra.mxu2 %v4633_v43  ;;  %1030 = vmatmul.bf16.gmra.mxu0 %v4609_v9  ;;  %v3848_v27 = vor.u32 %v4218_v32, %v3847_v41  ;;  %v4214_v41 = vld [vmem:[#allocation9 + $0x4] sm:$0xf0] }
 0x19f   :  { %951 = vmatmul.bf16.gmra.mxu3 %v4637_v47  ;;  %1119 = vmatmul.bf16.gmra.mxu1 %v4613_v11  ;;  %v3912_v9 = vor.u32 %v4234_v1, %v3911_v58  ;;  %v3895_v32 = vld [vmem:[#allocation9 + $0x80] sm:$0xf] }
 0x1a0   :  { %v1622_v21 = vsel %vm1366_vm15, %v910_v37, %v1494_v63  ;;  %2156 = vmatpush.bf16.msra.mxu0 %v3848_v27  ;;  %v3903_v37 = vld [vmem:[#allocation9 + $0x90] sm:$0xf]  ;;  %v4230_v27 = vld [vmem:[#allocation9 + $0x84] sm:$0xf0]  ;;  %vm1351_vm15 = vcmp.gt.f32.partialorder %v4931_v39, 0.0 }
 0x1a1   :  { %v823_v62 = vpop.f32.mrf.mxu2  ;;  %v4942_v34 = vpack.c.bf16 %v1622_v21, %v1618_v24  ;;  %2245 = vmatpush.bf16.msra.mxu1 %v3912_v9  ;;  %v3904_v24 = vor.u32 %v4232_v56, %v3903_v37  ;;  %v3896_v1 = vor.u32 %v4230_v27, %v3895_v32  ;;  %v1451_v37 = vmul.f32 0.2, %v4833_v44 }
 0x1a2   :  { %v824_v54 = vadd.f32 %v823_v62, %v4768_v2  ;;  %v912_v20 = vpop.f32.mrf.mxu3  ;;  %v3831_v62 = vld [vmem:[#allocation9] sm:$0xf] }
 0x1a3   :  { %6127 = vst [vmem:[#allocation47_spill] sm:$0xff] %v4942_v34  ;;  %v993_v40 = vpop.f32.mrf.mxu0 }
 0x1a4   :  { %v913_v11 = vadd.f32 %v912_v20, %v824_v54  ;;  %v994_v23 = vadd.f32 %v993_v40, %v4809_v22  ;;  %v1082_v3 = vpop.f32.mrf.mxu1  ;;  %2157 = vmatpush.bf16.msra.mxu0 %v3840_v6  ;;  %v3832_v20 = vor.u32 %v4214_v41, %v3831_v62  ;;  %v1455_v6 = vmul.f32 0.2, %v4851_v61 }
 0x1a5   :  { %2246 = vmatpush.bf16.msra.mxu1 %v3904_v24 }
 0x1a6   :  { %v4946_v63 = vadd.f32 %v1082_v3, %v994_v23  ;;  %v1498_v40 = vmul.f32 0.2, %v913_v11  ;;  %vm1370_vm0 = vcmp.gt.f32.partialorder %v913_v11, 0.0 }
 0x1a8   :  { %2158 = vmatpush.bf16.msra.mxu0 %v3832_v20  ;;  %v1626_v56 = vsel %vm1370_vm0, %v913_v11, %v1498_v40  ;;  %v1579_v20 = vsel %vm1323_vm2, %v4833_v44, %v1451_v37  ;;  %v1583_v11 = vsel %vm1327_vm3, %v4851_v61, %v1455_v6  ;;  %v1459_v61 = vmul.f32 0.2, %v4855_v16 }
 0x1a9   :  { %v825_v21 = vpop.f32.mrf.mxu2  ;;  %2247 = vmatpush.bf16.msra.mxu1 %v3896_v1  ;;  %v1463_v37 = vmul.f32 0.2, %v4873_v28  ;;  %vm1355_vm2 = vcmp.gt.f32.partialorder %v4935_v0, 0.0  ;;  %vm1359_vm3 = vcmp.gt.f32.partialorder %v4946_v63, 0.0 }
 0x1aa   :  { %v826_v58 = vadd.f32 %v825_v21, %v4768_v2  ;;  %v914_v54 = vpop.f32.mrf.mxu3 }
 0x1ab   :  { %v996_v9 = vpop.f32.mrf.mxu0 }
 0x1ac   :  { %v915_v18 = vadd.f32 %v914_v54, %v826_v58  ;;  %v997_v23 = vadd.f32 %v996_v9, %v4809_v22  ;;  %v1085_v3 = vpop.f32.mrf.mxu1 }
 0x1ae   :  { %vm1374_vm1 = vcmp.gt.f32.partialorder %v915_v18, 0.0  ;;  %v1502_v30 = vmul.f32 0.2, %v915_v18  ;;  %v4950_v60 = vadd.f32 %v1085_v3, %v997_v23  ;;  %1035 = vmatmul.bf16.gmra.mxu0 %v4621_v53  ;;  %1143 = vmatmul.bf16.vlgmr.msra.gmra.mxu2 %v4559_v57 }
 0x1af   :  { %1124 = vmatmul.bf16.gmra.mxu1 %v4625_v55  ;;  %1232 = vmatmul.bf16.vlgmr.msra.gmra.mxu3 %v4563_v59 }
 0x1b0   :  { %v1630_v24 = vsel %vm1374_vm1, %v915_v18, %v1502_v30  ;;  %v4966_v18 = vpack.c.bf16 %v1583_v11, %v1579_v20 }
 0x1b1   :  { %v828_v21 = vpop.f32.mrf.mxu2  ;;  %v4960_v62 = vpack.c.bf16 %v1630_v24, %v1626_v56 }
 0x1b2   :  { %v829_v41 = vadd.f32 %v828_v21, %v4768_v2  ;;  %v917_v57 = vpop.f32.mrf.mxu3  ;;  %6129 = vst [vmem:[#allocation49_spill] sm:$0xff] %v4966_v18 }
 0x1b3   :  { %6128 = vst [vmem:[#allocation48_spill] sm:$0xff] %v4960_v62  ;;  %v998_v32 = vpop.f32.mrf.mxu0 }
 0x1b4   :  { %v918_v58 = vadd.f32 %v917_v57, %v829_v41  ;;  %v999_v59 = vadd.f32 %v998_v32, %v4809_v22  ;;  %v1087_v54 = vpop.f32.mrf.mxu1 }
 0x1b6   :  { %v4968_v27 = vadd.f32 %v1087_v54, %v999_v59  ;;  %v1506_v3 = vmul.f32 0.2, %v918_v58  ;;  %vm1378_vm4 = vcmp.gt.f32.partialorder %v918_v58, 0.0 }
 0x1b8   :  { %v1634_v6 = vsel %vm1378_vm4, %v918_v58, %v1506_v3  ;;  %v1591_v58 = vsel %vm1335_vm7, %v4873_v28, %v1463_v37  ;;  %v1467_v28 = vmul.f32 0.2, %v4879_v48  ;;  %vm1367_vm7 = vcmp.gt.f32.partialorder %v4968_v27, 0.0 }
 0x1b9   :  { %v830_v9 = vpop.f32.mrf.mxu2 }
 0x1ba   :  { %v831_v1 = vadd.f32 %v830_v9, %v4768_v2  ;;  %v919_v40 = vpop.f32.mrf.mxu3  ;;  %v1587_v9 = vsel %vm1331_vm6, %v4855_v16, %v1459_v61  ;;  %v1471_v61 = vmul.f32 0.2, %v4903_v25  ;;  %vm1363_vm6 = vcmp.gt.f32.partialorder %v4950_v60, 0.0 }
 0x1bb   :  { %v1001_v23 = vpop.f32.mrf.mxu0 }
 0x1bc   :  { %v920_v30 = vadd.f32 %v919_v40, %v831_v1  ;;  %v1002_v56 = vadd.f32 %v1001_v23, %v4809_v22  ;;  %v1090_v24 = vpop.f32.mrf.mxu1  ;;  %v4988_v1 = vpack.c.bf16 %v1591_v58, %v1587_v9 }
 0x1be   :  { %vm1382_vm5 = vcmp.gt.f32.partialorder %v920_v30, 0.0  ;;  %v1510_v21 = vmul.f32 0.2, %v920_v30  ;;  %v4972_v44 = vadd.f32 %v1090_v24, %v1002_v56  ;;  %1040 = vmatmul.bf16.gmra.mxu0 %v4633_v43  ;;  %1148 = vmatmul.bf16.gmra.mxu2 %v4571_v5 }
 0x1bf   :  { %1129 = vmatmul.bf16.gmra.mxu1 %v4637_v47  ;;  %1237 = vmatmul.bf16.gmra.mxu3 %v4575_v7 }
 0x1c0   :  { %v1638_v41 = vsel %vm1382_vm5, %v920_v30, %v1510_v21 }
 0x1c1   :  { %v833_v57 = vpop.f32.mrf.mxu2  ;;  %v4982_v32 = vpack.c.bf16 %v1638_v41, %v1634_v6 }
 0x1c2   :  { %v834_v59 = vadd.f32 %v833_v57, %v4768_v2  ;;  %v922_v5 = vpop.f32.mrf.mxu3 }
 0x1c3   :  { %6130 = vst [vmem:[#allocation50_spill] sm:$0xff] %v4982_v32  ;;  %v1003_v54 = vpop.f32.mrf.mxu0 }
 0x1c4   :  { %v923_v20 = vadd.f32 %v922_v5, %v834_v59  ;;  %v1004_v7 = vadd.f32 %v1003_v54, %v4809_v22  ;;  %v1092_v11 = vpop.f32.mrf.mxu1 }
 0x1c6   :  { %v4990_v40 = vadd.f32 %v1092_v11, %v1004_v7  ;;  %v1514_v24 = vmul.f32 0.2, %v923_v20  ;;  %vm1386_vm8 = vcmp.gt.f32.partialorder %v923_v20, 0.0 }
 0x1c8   :  { %v1642_v37 = vsel %vm1386_vm8, %v923_v20, %v1514_v24  ;;  %v1599_v20 = vsel %vm1343_vm11, %v4903_v25, %v1471_v61  ;;  %v1475_v25 = vmul.f32 0.2, %v4907_v12  ;;  %vm1375_vm11 = vcmp.gt.f32.partialorder %v4990_v40, 0.0 }
 0x1c9   :  { %v835_v23 = vpop.f32.mrf.mxu2 }
 0x1ca   :  { %v836_v3 = vadd.f32 %v835_v23, %v4768_v2  ;;  %v924_v30 = vpop.f32.mrf.mxu3  ;;  %v1595_v23 = vsel %vm1339_vm10, %v4879_v48, %v1467_v28  ;;  %v1479_v28 = vmul.f32 0.2, %v4931_v39  ;;  %vm1371_vm10 = vcmp.gt.f32.partialorder %v4972_v44, 0.0 }
 0x1cb   :  { %v1006_v56 = vpop.f32.mrf.mxu0 }
 0x1cc   :  { %v925_v21 = vadd.f32 %v924_v30, %v836_v3  ;;  %v1007_v6 = vadd.f32 %v1006_v56, %v4809_v22  ;;  %v1095_v41 = vpop.f32.mrf.mxu1  ;;  %v5010_v3 = vpack.c.bf16 %v1599_v20, %v1595_v23 }
 0x1ce   :  { %vm1390_vm9 = vcmp.gt.f32.partialorder %v925_v21, 0.0  ;;  %v1518_v57 = vmul.f32 0.2, %v925_v21  ;;  %v4994_v16 = vadd.f32 %v1095_v41, %v1007_v6  ;;  %1153 = vmatmul.bf16.gmra.mxu2 %v4583_v17  ;;  %2159 = vmatmul.bf16.vlgmr.msra.gmra.mxu0 %v4668_v26 }
 0x1cf   :  { %1242 = vmatmul.bf16.gmra.mxu3 %v4587_v19  ;;  %2248 = vmatmul.bf16.vlgmr.msra.gmra.mxu1 %v4798_v15 }
 0x1d0   :  { %v1646_v59 = vsel %vm1390_vm9, %v925_v21, %v1518_v57 }
 0x1d1   :  { %v838_v5 = vpop.f32.mrf.mxu2  ;;  %v5004_v54 = vpack.c.bf16 %v1646_v59, %v1642_v37 }
 0x1d2   :  { %v839_v17 = vadd.f32 %v838_v5, %v4768_v2  ;;  %v927_v7 = vpop.f32.mrf.mxu3 }
 0x1d3   :  { %6131 = vst [vmem:[#allocation51_spill] sm:$0xff] %v5004_v54  ;;  %v1008_v11 = vpop.f32.mrf.mxu0 }
 0x1d4   :  { %v928_v19 = vadd.f32 %v927_v7, %v839_v17  ;;  %v1009_v9 = vadd.f32 %v1008_v11, %v4809_v22  ;;  %v1097_v58 = vpop.f32.mrf.mxu1 }
 0x1d6   :  { %v5012_v30 = vadd.f32 %v1097_v58, %v1009_v9  ;;  %v1522_v41 = vmul.f32 0.2, %v928_v19  ;;  %vm1394_vm12 = vcmp.gt.f32.partialorder %v928_v19, 0.0 }
 0x1d8   :  { %v1650_v61 = vsel %vm1394_vm12, %v928_v19, %v1522_v41  ;;  %v1607_v19 = vsel %vm1351_vm15, %v4931_v39, %v1479_v28  ;;  %v1483_v39 = vmul.f32 0.2, %v4935_v0  ;;  %vm1383_vm15 = vcmp.gt.f32.partialorder %v5012_v30, 0.0 }
 0x1d9   :  { %v840_v56 = vpop.f32.mrf.mxu2 }
 0x1da   :  { %v841_v24 = vadd.f32 %v840_v56, %v4768_v2  ;;  %v929_v21 = vpop.f32.mrf.mxu3  ;;  %v1603_v56 = vsel %vm1347_vm14, %v4907_v12, %v1475_v25  ;;  %v1487_v25 = vmul.f32 0.2, %v4946_v63  ;;  %vm1379_vm14 = vcmp.gt.f32.partialorder %v4994_v16, 0.0 }
 0x1db   :  { %v1011_v6 = vpop.f32.mrf.mxu0 }
 0x1dc   :  { %v930_v57 = vadd.f32 %v929_v21, %v841_v24  ;;  %v1012_v37 = vadd.f32 %v1011_v6, %v4809_v22  ;;  %v1100_v59 = vpop.f32.mrf.mxu1  ;;  %v5032_v24 = vpack.c.bf16 %v1607_v19, %v1603_v56 }
 0x1de   :  { %vm1398_vm13 = vcmp.gt.f32.partialorder %v930_v57, 0.0  ;;  %v1526_v5 = vmul.f32 0.2, %v930_v57  ;;  %v5016_v48 = vadd.f32 %v1100_v59, %v1012_v37  ;;  %1158 = vmatmul.bf16.gmra.mxu2 %v4595_v29  ;;  %2164 = vmatmul.bf16.gmra.mxu0 %v4757_v36 }
 0x1df   :  { %1247 = vmatmul.bf16.gmra.mxu3 %v4599_v31  ;;  %2253 = vmatmul.bf16.gmra.mxu1 %v4821_v33 }
 0x1e0   :  { %v1654_v17 = vsel %vm1398_vm13, %v930_v57, %v1526_v5 }
 0x1e1   :  { %v843_v7 = vpop.f32.mrf.mxu2  ;;  %v5026_v11 = vpack.c.bf16 %v1654_v17, %v1650_v61 }
 0x1e2   :  { %v844_v29 = vadd.f32 %v843_v7, %v4768_v2  ;;  %v932_v9 = vpop.f32.mrf.mxu3 }
 0x1e3   :  { %6132 = vst [vmem:[#allocation52_spill] sm:$0xff] %v5026_v11  ;;  %v1013_v58 = vpop.f32.mrf.mxu0 }
 0x1e4   :  { %v933_v31 = vadd.f32 %v932_v9, %v844_v29  ;;  %v1014_v23 = vadd.f32 %v1013_v58, %v4809_v22  ;;  %v1102_v20 = vpop.f32.mrf.mxu1 }
 0x1e6   :  { %v5034_v21 = vadd.f32 %v1102_v20, %v1014_v23  ;;  %v1530_v59 = vmul.f32 0.2, %v933_v31  ;;  %vm1402_vm0 = vcmp.gt.f32.partialorder %v933_v31, 0.0 }
 0x1e8   :  { %v1658_v28 = vsel %vm1402_vm0, %v933_v31, %v1530_v59  ;;  %v1615_v31 = vsel %vm1359_vm3, %v4946_v63, %v1487_v25  ;;  %v6134_v63 = vld [vmem:[#allocation27_spill] sm:$0xff]  ;;  %v1495_v25 = vmul.f32 0.2, %v4968_v27  ;;  %vm1391_vm3 = vcmp.gt.f32.partialorder %v5034_v21, 0.0 }
 0x1e9   :  { %v845_v6 = vpop.f32.mrf.mxu2 }
 0x1ea   :  { %v846_v41 = vadd.f32 %v845_v6, %v4768_v2  ;;  %v934_v57 = vpop.f32.mrf.mxu3  ;;  %v1611_v6 = vsel %vm1355_vm2, %v4935_v0, %v1483_v39  ;;  %v1491_v39 = vmul.f32 0.2, %v4950_v60  ;;  %vm1387_vm2 = vcmp.gt.f32.partialorder %v5016_v48, 0.0 }
 0x1eb   :  { %v1016_v37 = vpop.f32.mrf.mxu0 }
 0x1ec   :  { %v935_v5 = vadd.f32 %v934_v57, %v846_v41  ;;  %v1017_v61 = vadd.f32 %v1016_v37, %v4809_v22  ;;  %v1105_v17 = vpop.f32.mrf.mxu1  ;;  %v5054_v41 = vpack.c.bf16 %v1615_v31, %v1611_v6 }
 0x1ee   :  { %vm1406_vm1 = vcmp.gt.f32.partialorder %v935_v5, 0.0  ;;  %v1534_v7 = vmul.f32 0.2, %v935_v5  ;;  %v5038_v12 = vadd.f32 %v1105_v17, %v1017_v61  ;;  %1163 = vmatmul.bf16.gmra.mxu2 %v4607_v4  ;;  %2169 = vmatmul.bf16.gmra.mxu0 %v4782_v50 }
 0x1ef   :  { %1252 = vmatmul.bf16.gmra.mxu3 %v4611_v10  ;;  %2258 = vmatmul.bf16.gmra.mxu1 %v4843_v45 }
 0x1f0   :  { %v1662_v29 = vsel %vm1406_vm1, %v935_v5, %v1534_v7 }
 0x1f1   :  { %v848_v9 = vpop.f32.mrf.mxu2  ;;  %v5048_v58 = vpack.c.bf16 %v1662_v29, %v1658_v28 }
 0x1f2   :  { %v849_v4 = vadd.f32 %v848_v9, %v4768_v2  ;;  %v937_v23 = vpop.f32.mrf.mxu3 }
 0x1f3   :  { %6133 = vst [vmem:[#allocation53_spill] sm:$0xff] %v5048_v58  ;;  %v1018_v20 = vpop.f32.mrf.mxu0 }
 0x1f4   :  { %v938_v10 = vadd.f32 %v937_v23, %v849_v4  ;;  %v1019_v56 = vadd.f32 %v1018_v20, %v4809_v22  ;;  %v1107_v19 = vpop.f32.mrf.mxu1 }
 0x1f6   :  { %v5056_v57 = vadd.f32 %v1107_v19, %v1019_v56  ;;  %v1538_v17 = vmul.f32 0.2, %v938_v10  ;;  %vm1410_vm4 = vcmp.gt.f32.partialorder %v938_v10, 0.0 }
 0x1f8   :  { %v1666_v4 = vsel %vm1410_vm4, %v938_v10, %v1538_v17  ;;  %v1623_v10 = vsel %vm1367_vm7, %v4968_v27, %v1495_v25  ;;  %v6137_v27 = vld [vmem:[#allocation28_spill] sm:$0xff]  ;;  %v1499_v25 = vmul.f32 0.2, %v4972_v44  ;;  %vm1399_vm7 = vcmp.gt.f32.partialorder %v5056_v57, 0.0 }
 0x1f9   :  { %v850_v37 = vpop.f32.mrf.mxu2 }
 0x1fa   :  { %v851_v59 = vadd.f32 %v850_v37, %v4768_v2  ;;  %v939_v5 = vpop.f32.mrf.mxu3 }
 0x1fb   :  { %v1021_v61 = vpop.f32.mrf.mxu0 }
 0x1fc   :  { %v940_v7 = vadd.f32 %v939_v5, %v851_v59  ;;  %v1022_v28 = vadd.f32 %v1021_v61, %v4809_v22  ;;  %v1110_v29 = vpop.f32.mrf.mxu1  ;;  %v1619_v5 = vsel %vm1363_vm6, %v4950_v60, %v1491_v39  ;;  %v6138_v39 = vld [vmem:[#allocation29_spill] sm:$0xff]  ;;  %vm1395_vm6 = vcmp.gt.f32.partialorder %v5038_v12, 0.0 }
 0x1fd   :  { %v5076_v61 = vpack.c.bf16 %v1623_v10, %v1619_v5 }
 0x1fe   :  { %vm1414_vm5 = vcmp.gt.f32.partialorder %v940_v7, 0.0  ;;  %v1542_v9 = vmul.f32 0.2, %v940_v7  ;;  %v5060_v0 = vadd.f32 %v1110_v29, %v1022_v28  ;;  %1168 = vmatmul.bf16.gmra.mxu2 %v4619_v52  ;;  %2174 = vmatmul.bf16.gmra.mxu0 %v4804_v42 }
 0x1ff   :  { %1257 = vmatmul.bf16.gmra.mxu3 %v6134_v63  ;;  %2263 = vmatmul.bf16.gmra.mxu1 %v4864_v46  ;;  %6136 = vst [vmem:[#allocation54_spill] sm:$0xff] %v5076_v61 }
 0x200   :  { %v1670_v23 = vsel %vm1414_vm5, %v940_v7, %v1542_v9 }
 0x201   :  { %v853_v20 = vpop.f32.mrf.mxu2  ;;  %v5070_v56 = vpack.c.bf16 %v1670_v23, %v1666_v4 }
 0x202   :  { %v854_v52 = vadd.f32 %v853_v20, %v4768_v2  ;;  %v942_v19 = vpop.f32.mrf.mxu3 }
 0x203   :  { %6135 = vst [vmem:[#allocation27_spill] sm:$0xff] %v5070_v56  ;;  %v1023_v6 = vpop.f32.mrf.mxu0 }
 0x204   :  { %v943_v31 = vadd.f32 %v942_v19, %v854_v52  ;;  %v1024_v37 = vadd.f32 %v1023_v6, %v4809_v22  ;;  %v1112_v59 = vpop.f32.mrf.mxu1  ;;  %v1503_v19 = vmul.f32 0.2, %v4990_v40 }
 0x206   :  { %v5078_v17 = vadd.f32 %v1112_v59, %v1024_v37  ;;  %v1546_v63 = vmul.f32 0.2, %v943_v31  ;;  %vm1418_vm8 = vcmp.gt.f32.partialorder %v943_v31, 0.0 }
 0x208   :  { %v1674_v6 = vsel %vm1418_vm8, %v943_v31, %v1546_v63  ;;  %v1631_v31 = vsel %vm1375_vm11, %v4990_v40, %v1503_v19  ;;  %v6141_v40 = vld [vmem:[#allocation30_spill] sm:$0xff]  ;;  %v1507_v19 = vmul.f32 0.2, %v4994_v16  ;;  %vm1407_vm11 = vcmp.gt.f32.partialorder %v5078_v17, 0.0 }
 0x209   :  { %v855_v7 = vpop.f32.mrf.mxu2 }
 0x20a   :  { %v856_v28 = vadd.f32 %v855_v7, %v4768_v2  ;;  %v944_v29 = vpop.f32.mrf.mxu3 }
 0x20b   :  { %v1026_v9 = vpop.f32.mrf.mxu0 }
 0x20c   :  { %v945_v4 = vadd.f32 %v944_v29, %v856_v28  ;;  %v1027_v23 = vadd.f32 %v1026_v9, %v4809_v22  ;;  %v1115_v20 = vpop.f32.mrf.mxu1 }
 0x20e   :  { %vm1422_vm9 = vcmp.gt.f32.partialorder %v945_v4, 0.0  ;;  %v1550_v52 = vmul.f32 0.2, %v945_v4  ;;  %v5082_v60 = vadd.f32 %v1115_v20, %v1027_v23  ;;  %1173 = vmatmul.bf16.gmra.mxu2 %v6137_v27  ;;  %2179 = vmatmul.bf16.gmra.mxu0 %v4827_v13  ;;  %v1627_v20 = vsel %vm1371_vm10, %v4972_v44, %v1499_v25  ;;  %v6142_v25 = vld [vmem:[#allocation31_spill] sm:$0xff] }
 0x20f   :  { %1262 = vmatmul.bf16.gmra.mxu3 %v6138_v39  ;;  %2268 = vmatmul.bf16.gmra.mxu1 %v4891_v35  ;;  %v5098_v63 = vpack.c.bf16 %v1631_v31, %v1627_v20  ;;  %vm1403_vm10 = vcmp.gt.f32.partialorder %v5060_v0, 0.0 }
 0x210   :  { %v1678_v37 = vsel %vm1422_vm9, %v945_v4, %v1550_v52 }
 0x211   :  { %v858_v59 = vpop.f32.mrf.mxu2  ;;  %v5092_v5 = vpack.c.bf16 %v1678_v37, %v1674_v6  ;;  %6140 = vst [vmem:[#allocation29_spill] sm:$0xff] %v5098_v63 }
 0x212   :  { %v859_v10 = vadd.f32 %v858_v59, %v4768_v2  ;;  %v947_v7 = vpop.f32.mrf.mxu3 }
 0x213   :  { %6139 = vst [vmem:[#allocation28_spill] sm:$0xff] %v5092_v5  ;;  %v1028_v28 = vpop.f32.mrf.mxu0 }
 0x214   :  { %v948_v29 = vadd.f32 %v947_v7, %v859_v10  ;;  %v1029_v9 = vadd.f32 %v1028_v28, %v4809_v22  ;;  %v1117_v23 = vpop.f32.mrf.mxu1 }
 0x216   :  { %v5100_v4 = vadd.f32 %v1117_v23, %v1029_v9  ;;  %v1554_v37 = vmul.f32 0.2, %v948_v29  ;;  %vm1426_vm12 = vcmp.gt.f32.partialorder %v948_v29, 0.0  ;;  %v1511_v9 = vmul.f32 0.2, %v5012_v30 }
 0x218   :  { %v1682_v23 = vsel %vm1426_vm12, %v948_v29, %v1554_v37  ;;  %v1639_v29 = vsel %vm1383_vm15, %v5012_v30, %v1511_v9  ;;  %v6144_v30 = vld [vmem:[#allocation32_spill] sm:$0xff]  ;;  %vm1415_vm15 = vcmp.gt.f32.partialorder %v5100_v4, 0.0 }
 0x219   :  { %v860_v52 = vpop.f32.mrf.mxu2 }
 0x21a   :  { %v861_v27 = vadd.f32 %v860_v52, %v4768_v2  ;;  %v949_v39 = vpop.f32.mrf.mxu3 }
 0x21b   :  { %v1031_v6 = vpop.f32.mrf.mxu0 }
 0x21c   :  { %v950_v59 = vadd.f32 %v949_v39, %v861_v27  ;;  %v1032_v10 = vadd.f32 %v1031_v6, %v4809_v22  ;;  %v1120_v7 = vpop.f32.mrf.mxu1 }
 0x21e   :  { %vm1430_vm13 = vcmp.gt.f32.partialorder %v950_v59, 0.0  ;;  %v1558_v28 = vmul.f32 0.2, %v950_v59  ;;  %v5104_v44 = vadd.f32 %v1120_v7, %v1032_v10  ;;  %1178 = vmatmul.bf16.gmra.mxu2 %v6141_v40  ;;  %2184 = vmatmul.bf16.gmra.mxu0 %v4849_v14 }
 0x21f   :  { %1267 = vmatmul.bf16.gmra.mxu3 %v6142_v25  ;;  %2273 = vmatmul.bf16.gmra.mxu1 %v4919_v8  ;;  %v1635_v25 = vsel %vm1379_vm14, %v4994_v16, %v1507_v19  ;;  %v4324_v19 = vld [vmem:[#allocation8] sm:$0xf]  ;;  %vm1411_vm14 = vcmp.gt.f32.partialorder %v5082_v60, 0.0 }
 0x220   :  { %v1686_v20 = vsel %vm1430_vm13, %v950_v59, %v1558_v28  ;;  %v5120_v37 = vpack.c.bf16 %v1639_v29, %v1635_v25  ;;  %v5130_v9 = vperm.slane %v4324_v19, 3 }
 0x221   :  { %v863_v31 = vpop.f32.mrf.mxu2  ;;  %v5114_v52 = vpack.c.bf16 %v1686_v20, %v1682_v23 }
 0x222   :  { %v864_v27 = vadd.f32 %v863_v31, %v4768_v2  ;;  %v952_v39 = vpop.f32.mrf.mxu3  ;;  %6143 = vst [vmem:[#allocation30_spill] sm:$0xff] %v5120_v37 }
 0x223   :  { %v1033_v6 = vpop.f32.mrf.mxu0 }
 0x224   :  { %v953_v10 = vadd.f32 %v952_v39, %v864_v27  ;;  %v1034_v7 = vadd.f32 %v1033_v6, %v4809_v22  ;;  %v1122_v40 = vpop.f32.mrf.mxu1 }
 0x226   :  { %v5122_v59 = vadd.f32 %v1122_v40, %v1034_v7  ;;  %v1562_v31 = vmul.f32 0.2, %v953_v10  ;;  %vm1434_vm0 = vcmp.gt.f32.partialorder %v953_v10, 0.0  ;;  %v1515_v7 = vmul.f32 0.2, %v5016_v48 }
 0x228   :  { %v1690_v40 = vsel %vm1434_vm0, %v953_v10, %v1562_v31 }
 0x229   :  { %v865_v28 = vpop.f32.mrf.mxu2 }
 0x22a   :  { %v866_v23 = vadd.f32 %v865_v28, %v4768_v2  ;;  %v954_v20 = vpop.f32.mrf.mxu3  ;;  %v6145_v2 = vld [vmem:[#allocation33_spill] sm:$0xff] }
 0x22b   :  { %v1036_v8 = vpop.f32.mrf.mxu0 }
 0x22c   :  { %v955_v14 = vadd.f32 %v954_v20, %v866_v23  ;;  %v1037_v27 = vadd.f32 %v1036_v8, %v4809_v22  ;;  %v1125_v39 = vpop.f32.mrf.mxu1  ;;  %v1519_v8 = vmul.f32 0.2, %v5034_v21 }
 0x22e   :  { %vm1438_vm1 = vcmp.gt.f32.partialorder %v955_v14, 0.0  ;;  %v1566_v6 = vmul.f32 0.2, %v955_v14  ;;  %v5126_v16 = vadd.f32 %v1125_v39, %v1037_v27  ;;  %1183 = vmatmul.bf16.gmra.mxu2 %v6144_v30  ;;  %2189 = vmatmul.bf16.gmra.mxu0 %v4875_v51  ;;  %v1647_v10 = vsel %vm1391_vm3, %v5034_v21, %v1519_v8  ;;  %v6148_v21 = vld [vmem:[#allocation17_spill] sm:$0xff] }
 0x22f   :  { %1272 = vmatmul.bf16.gmra.mxu3 %v6145_v2  ;;  %2278 = vmatmul.bf16.gmra.mxu1 %v4942_v34  ;;  %v1643_v2 = vsel %vm1387_vm2, %v5016_v48, %v1515_v7  ;;  %v6149_v7 = vld [vmem:[#allocation18_spill] sm:$0xff]  ;;  %v1523_v8 = vmul.f32 0.2, %v5038_v12  ;;  %vm1419_vm2 = vcmp.gt.f32.partialorder %v5104_v44, 0.0  ;;  %vm1423_vm3 = vcmp.gt.f32.partialorder %v5122_v59, 0.0 }
 0x230   :  { %v1694_v25 = vsel %vm1438_vm1, %v955_v14, %v1566_v6  ;;  %v5144_v14 = vpack.c.bf16 %v1647_v10, %v1643_v2 }
 0x231   :  { %v1144_v29 = vpop.f32.mrf.mxu2  ;;  %v5138_v28 = vpack.c.bf16 %v1694_v25, %v1690_v40 }
 0x232   :  { %v1145_v23 = vadd.f32 %v1144_v29, %v5130_v9  ;;  %v1233_v20 = vpop.f32.mrf.mxu3  ;;  %6147 = vst [vmem:[#allocation32_spill] sm:$0xff] %v5144_v14 }
 0x233   :  { %6146 = vst [vmem:[#allocation31_spill] sm:$0xff] %v5138_v28  ;;  %v1038_v27 = vpop.f32.mrf.mxu0 }
 0x234   :  { %v1234_v39 = vadd.f32 %v1233_v20, %v1145_v23  ;;  %v1039_v30 = vadd.f32 %v1038_v27, %v4809_v22  ;;  %v1127_v19 = vpop.f32.mrf.mxu1 }
 0x236   :  { %v5146_v31 = vadd.f32 %v1127_v19, %v1039_v30  ;;  %v1444_v29 = vmul.f32 0.2, %v1234_v39  ;;  %vm1316_vm4 = vcmp.gt.f32.partialorder %v1234_v39, 0.0  ;;  %v1527_v30 = vmul.f32 0.2, %v5056_v57 }
 0x238   :  { %v1572_v19 = vsel %vm1316_vm4, %v1234_v39, %v1444_v29  ;;  %v1655_v39 = vsel %vm1399_vm7, %v5056_v57, %v1527_v30  ;;  %vm1431_vm7 = vcmp.gt.f32.partialorder %v5146_v31, 0.0 }
 0x239   :  { %v1146_v6 = vpop.f32.mrf.mxu2 }
 0x23a   :  { %v1147_v40 = vadd.f32 %v1146_v6, %v5130_v9  ;;  %v1235_v25 = vpop.f32.mrf.mxu3 }
 0x23b   :  { %v1041_v34 = vpop.f32.mrf.mxu0 }
 0x23c   :  { %v1236_v51 = vadd.f32 %v1235_v25, %v1147_v40  ;;  %v1042_v23 = vadd.f32 %v1041_v34, %v4809_v22  ;;  %v1130_v20 = vpop.f32.mrf.mxu1 }
 0x23e   :  { %vm1320_vm5 = vcmp.gt.f32.partialorder %v1236_v51, 0.0  ;;  %v1448_v27 = vmul.f32 0.2, %v1236_v51  ;;  %v5150_v48 = vadd.f32 %v1130_v20, %v1042_v23  ;;  %1188 = vmatmul.bf16.gmra.mxu2 %v6148_v21  ;;  %2194 = vmatmul.bf16.gmra.mxu0 %v4901_v49 }
 0x23f   :  { %1277 = vmatmul.bf16.gmra.mxu3 %v6149_v7  ;;  %2283 = vmatmul.bf16.gmra.mxu1 %v4960_v62  ;;  %v1651_v7 = vsel %vm1395_vm6, %v5038_v12, %v1523_v8  ;;  %vm1427_vm6 = vcmp.gt.f32.partialorder %v5126_v16, 0.0 }
 0x240   :  { %v1576_v34 = vsel %vm1320_vm5, %v1236_v51, %v1448_v27  ;;  %v1825_v51 = vld [vmem:[%s6029_s4] sm:$0x3]  ;;  %v5169_v29 = vpack.c.bf16 %v1655_v39, %v1651_v7  ;;  %v6152_v7 = vld [vmem:[#allocation19_spill] sm:$0xff] }
 0x241   :  { %v5160_v2 = vpack.c.bf16 %v1576_v34, %v1572_v19  ;;  %v1149_v10 = vpop.f32.mrf.mxu2  ;;  %v5173_v19 = vperm.slane %v1825_v51, 0  ;;  %v4015_v39 = vld [vmem:[#allocation9 + $0x170] sm:$0xf]  ;;  %v4260_v51 = vld [vmem:[#allocation9 + $0x174] sm:$0xf0] }
 0x242   :  { %v1150_v6 = vadd.f32 %v1149_v10, %v5130_v9  ;;  %v1238_v40 = vpop.f32.mrf.mxu3  ;;  %6151 = vst [vmem:[#allocation17_spill] sm:$0xff] %v5169_v29 }
 0x243   :  { %6150 = vst [vmem:[#allocation33_spill] sm:$0xff] %v5160_v2  ;;  %v1043_v25 = vpop.f32.mrf.mxu0 }
 0x244   :  { %v1239_v23 = vadd.f32 %v1238_v40, %v1150_v6  ;;  %v1044_v20 = vadd.f32 %v1043_v25, %v4809_v22  ;;  %v1132_v21 = vpop.f32.mrf.mxu1 }
 0x246   :  { %v5171_v27 = vadd.f32 %v1132_v21, %v1044_v20  ;;  %v1452_v40 = vmul.f32 0.2, %v1239_v23  ;;  %vm1324_vm8 = vcmp.gt.f32.partialorder %v1239_v23, 0.0  ;;  %v1531_v20 = vmul.f32 0.2, %v5060_v0  ;;  %v6153_v21 = vld [vmem:[#allocation20_spill] sm:$0xff] }
 0x249   :  { %v1151_v34 = vpop.f32.mrf.mxu2 }
 0x24a   :  { %v1152_v10 = vadd.f32 %v1151_v34, %v5130_v9  ;;  %v1240_v6 = vpop.f32.mrf.mxu3  ;;  %v1535_v34 = vmul.f32 0.2, %v5078_v17 }
 0x24b   :  { %v2160_v22 = vpop.f32.mrf.mxu0 }
 0x24c   :  { %v1241_v25 = vadd.f32 %v1240_v6, %v1152_v10  ;;  %v2161_v12 = vadd.f32 %v2160_v22, %v5173_v19  ;;  %v2249_v57 = vpop.f32.mrf.mxu1  ;;  %v4016_v10 = vor.u32 %v4260_v51, %v4015_v39  ;;  %v1580_v6 = vsel %vm1324_vm8, %v1239_v23, %v1452_v40  ;;  %v4276_v51 = vld [vmem:[#allocation9 + $0x1f4] sm:$0xf0] }
 0x24d   :  { %v1659_v39 = vsel %vm1403_vm10, %v5060_v0, %v1531_v20  ;;  %v1663_v23 = vsel %vm1407_vm11, %v5078_v17, %v1535_v34  ;;  %v6158_v34 = vld [vmem:[#allocation22_spill] sm:$0xff]  ;;  %vm1435_vm10 = vcmp.gt.f32.partialorder %v5150_v48, 0.0  ;;  %vm1439_vm11 = vcmp.gt.f32.partialorder %v5171_v27, 0.0 }
 0x24e   :  { %vm1328_vm9 = vcmp.gt.f32.partialorder %v1241_v25, 0.0  ;;  %v1456_v8 = vmul.f32 0.2, %v1241_v25  ;;  %v5177_v30 = vadd.f32 %v2249_v57, %v2161_v12  ;;  %1193 = vmatmul.bf16.gmra.mxu2 %v6152_v7  ;;  %2199 = vmatmul.bf16.gmra.mxu0 %v4929_v38  ;;  %v5193_v40 = vpack.c.bf16 %v1663_v23, %v1659_v39 }
 0x24f   :  { %1282 = vmatmul.bf16.gmra.mxu3 %v6153_v21  ;;  %2288 = vmatmul.bf16.gmra.mxu1 %v4982_v32  ;;  %v1539_v39 = vmul.f32 0.2, %v5082_v60  ;;  %v1543_v23 = vmul.f32 0.2, %v5100_v4 }
 0x250   :  { %v1584_v22 = vsel %vm1328_vm9, %v1241_v25, %v1456_v8  ;;  %2329 = vmatpush.bf16.msrb.mxu2 %v4016_v10  ;;  %6155 = vst [vmem:[#allocation19_spill] sm:$0xff] %v5193_v40  ;;  %v4079_v8 = vld [vmem:[#allocation9 + $0x1f0] sm:$0xf] }
 0x251   :  { %v1154_v12 = vpop.f32.mrf.mxu2  ;;  %v5187_v57 = vpack.c.bf16 %v1584_v22, %v1580_v6  ;;  %v4080_v6 = vor.u32 %v4276_v51, %v4079_v8 }
 0x252   :  { %v1155_v7 = vadd.f32 %v1154_v12, %v5130_v9  ;;  %v1243_v38 = vpop.f32.mrf.mxu3 }
 0x253   :  { %6154 = vst [vmem:[#allocation18_spill] sm:$0xff] %v5187_v57  ;;  %v2162_v21 = vpop.f32.mrf.mxu0  ;;  %2418 = vmatpush.bf16.msrb.mxu3 %v4080_v6 }
 0x254   :  { %v1244_v32 = vadd.f32 %v1243_v38, %v1155_v7  ;;  %v2163_v29 = vadd.f32 %v2162_v21, %v5173_v19  ;;  %v2251_v62 = vpop.f32.mrf.mxu1 }
 0x256   :  { %v5195_v25 = vadd.f32 %v2251_v62, %v2163_v29  ;;  %v1460_v7 = vmul.f32 0.2, %v1244_v32  ;;  %vm1332_vm12 = vcmp.gt.f32.partialorder %v1244_v32, 0.0  ;;  %v6156_v62 = vld [vmem:[#allocation21_spill] sm:$0xff]  ;;  %v6157_v29 = vld [vmem:[#allocation34_spill] sm:$0xff] }
 0x258   :  { %v1588_v8 = vsel %vm1332_vm12, %v1244_v32, %v1460_v7  ;;  %v1671_v32 = vsel %vm1415_vm15, %v5100_v4, %v1543_v23  ;;  %v6163_v4 = vld [vmem:[#allocation23_spill] sm:$0xff]  ;;  %v1547_v23 = vmul.f32 0.2, %v5104_v44 }
 0x259   :  { %v1156_v22 = vpop.f32.mrf.mxu2 }
 0x25a   :  { %v1157_v12 = vadd.f32 %v1156_v22, %v5130_v9  ;;  %v1245_v10 = vpop.f32.mrf.mxu3 }
 0x25b   :  { %v2165_v38 = vpop.f32.mrf.mxu0 }
 0x25c   :  { %v1246_v21 = vadd.f32 %v1245_v10, %v1157_v12  ;;  %v2166_v49 = vadd.f32 %v2165_v38, %v5173_v19  ;;  %v2254_v0 = vpop.f32.mrf.mxu1 }
 0x25e   :  { %vm1336_vm13 = vcmp.gt.f32.partialorder %v1246_v21, 0.0  ;;  %v1464_v17 = vmul.f32 0.2, %v1246_v21  ;;  %v5199_v20 = vadd.f32 %v2254_v0, %v2166_v49  ;;  %1198 = vmatmul.bf16.gmra.mxu2 %v6156_v62  ;;  %2204 = vmatmul.bf16.gmra.mxu0 %v6157_v29 }
 0x25f   :  { %1287 = vmatmul.bf16.gmra.mxu3 %v6158_v34  ;;  %2293 = vmatmul.bf16.gmra.mxu1 %v5004_v54  ;;  %v1667_v34 = vsel %vm1411_vm14, %v5082_v60, %v1539_v39  ;;  %v6164_v39 = vld [vmem:[#allocation35_spill] sm:$0xff] }
 0x260   :  { %v1592_v51 = vsel %vm1336_vm13, %v1246_v21, %v1464_v17  ;;  %v5215_v7 = vpack.c.bf16 %v1671_v32, %v1667_v34  ;;  %v4258_v34 = vld [vmem:[#allocation9 + $0x164] sm:$0xf0] }
 0x261   :  { %v1159_v49 = vpop.f32.mrf.mxu2  ;;  %v5209_v6 = vpack.c.bf16 %v1592_v51, %v1588_v8 }
 0x262   :  { %v1160_v22 = vadd.f32 %v1159_v49, %v5130_v9  ;;  %v1248_v12 = vpop.f32.mrf.mxu3  ;;  %6160 = vst [vmem:[#allocation21_spill] sm:$0xff] %v5215_v7 }
 0x263   :  { %6159 = vst [vmem:[#allocation20_spill] sm:$0xff] %v5209_v6  ;;  %v2167_v10 = vpop.f32.mrf.mxu0 }
 0x264   :  { %v1249_v38 = vadd.f32 %v1248_v12, %v1160_v22  ;;  %v2168_v0 = vadd.f32 %v2167_v10, %v5173_v19  ;;  %v2256_v62 = vpop.f32.mrf.mxu1 }
 0x266   :  { %v5217_v21 = vadd.f32 %v2256_v62, %v2168_v0  ;;  %v1468_v49 = vmul.f32 0.2, %v1249_v38  ;;  %vm1340_vm0 = vcmp.gt.f32.partialorder %v1249_v38, 0.0  ;;  %v6165_v0 = vld [vmem:[#allocation24_spill] sm:$0xff] }
 0x267   :  { %v4007_v62 = vld [vmem:[#allocation9 + $0x160] sm:$0xf] }
 0x268   :  { %6161 = vst [vmem:[#allocation22_spill] sm:$0xff] %v5217_v21  ;;  %v4008_v32 = vor.u32 %v4258_v34, %v4007_v62  ;;  %v4256_v34 = vld [vmem:[#allocation9 + $0x154] sm:$0xf0] }
 0x269   :  { %v1161_v17 = vpop.f32.mrf.mxu2 }
 0x26a   :  { %v1162_v8 = vadd.f32 %v1161_v17, %v5130_v9  ;;  %v1250_v51 = vpop.f32.mrf.mxu3  ;;  %v1596_v17 = vsel %vm1340_vm0, %v1249_v38, %v1468_v49  ;;  %2330 = vmatpush.bf16.msrb.mxu2 %v4008_v32  ;;  %v4272_v32 = vld [vmem:[#allocation9 + $0x1d4] sm:$0xf0] }
 0x26b   :  { %v2170_v54 = vpop.f32.mrf.mxu0 }
 0x26c   :  { %v1251_v29 = vadd.f32 %v1250_v51, %v1162_v8  ;;  %v2171_v22 = vadd.f32 %v2170_v54, %v5173_v19  ;;  %v2259_v12 = vpop.f32.mrf.mxu1  ;;  %v1551_v54 = vmul.f32 0.2, %v5122_v59 }
 0x26e   :  { %vm1344_vm1 = vcmp.gt.f32.partialorder %v1251_v29, 0.0  ;;  %v1472_v10 = vmul.f32 0.2, %v1251_v29  ;;  %v5221_v60 = vadd.f32 %v2259_v12, %v2171_v22  ;;  %1203 = vmatmul.bf16.gmra.mxu2 %v6163_v4  ;;  %2209 = vmatmul.bf16.gmra.mxu0 %v6164_v39  ;;  %v4071_v22 = vld [vmem:[#allocation9 + $0x1e0] sm:$0xf]  ;;  %v1679_v49 = vsel %vm1423_vm3, %v5122_v59, %v1551_v54 }
 0x26f   :  { %1292 = vmatmul.bf16.gmra.mxu3 %v6165_v0  ;;  %2298 = vmatmul.bf16.gmra.mxu1 %v5026_v11  ;;  %v4274_v12 = vld [vmem:[#allocation9 + $0x1e4] sm:$0xf0] }
 0x270   :  { %6162 = vst [vmem:[#allocation55_spill] sm:$0xff] %v5221_v60  ;;  %v1600_v8 = vsel %vm1344_vm1, %v1251_v29, %v1472_v10  ;;  %v4072_v11 = vor.u32 %v4274_v12, %v4071_v22  ;;  %v1675_v29 = vsel %vm1419_vm2, %v5104_v44, %v1547_v23  ;;  %v3999_v10 = vld [vmem:[#allocation9 + $0x150] sm:$0xf]  ;;  %v4254_v12 = vld [vmem:[#allocation9 + $0x144] sm:$0xf0] }
 0x271   :  { %v1164_v51 = vpop.f32.mrf.mxu2  ;;  %v5231_v4 = vpack.c.bf16 %v1600_v8, %v1596_v17  ;;  %v4063_v60 = vld [vmem:[#allocation9 + $0x1d0] sm:$0xf]  ;;  %v5237_v17 = vpack.c.bf16 %v1679_v49, %v1675_v29  ;;  %v4270_v54 = vld [vmem:[#allocation9 + $0x1c4] sm:$0xf0] }
 0x272   :  { %v1165_v0 = vadd.f32 %v1164_v51, %v5130_v9  ;;  %v1253_v39 = vpop.f32.mrf.mxu3  ;;  %2419 = vmatpush.bf16.msrb.mxu3 %v4072_v11  ;;  %v4000_v51 = vor.u32 %v4256_v34, %v3999_v10  ;;  %v4064_v22 = vor.u32 %v4272_v32, %v4063_v60  ;;  %v4055_v11 = vld [vmem:[#allocation9 + $0x1c0] sm:$0xf]  ;;  %v3983_v60 = vld [vmem:[#allocation9 + $0x130] sm:$0xf]  ;;  %v4252_v10 = vld [vmem:[#allocation9 + $0x134] sm:$0xf0] }
 0x273   :  { %6166 = vst [vmem:[#allocation23_spill] sm:$0xff] %v5231_v4  ;;  %v2172_v7 = vpop.f32.mrf.mxu0  ;;  %v4056_v21 = vor.u32 %v4270_v54, %v4055_v11  ;;  %v4047_v34 = vld [vmem:[#allocation9 + $0x1b0] sm:$0xf]  ;;  %v1555_v11 = vmul.f32 0.2, %v5126_v16 }
 0x274   :  { %v1254_v40 = vadd.f32 %v1253_v39, %v1165_v0  ;;  %v2173_v62 = vadd.f32 %v2172_v7, %v5173_v19  ;;  %v2261_v38 = vpop.f32.mrf.mxu1  ;;  %6167 = vst [vmem:[#allocation24_spill] sm:$0xff] %v5237_v17  ;;  %2331 = vmatpush.bf16.msrb.mxu2 %v4000_v51  ;;  %v3991_v7 = vld [vmem:[#allocation9 + $0x140] sm:$0xf] }
 0x275   :  { %v3992_v59 = vor.u32 %v4254_v12, %v3991_v7  ;;  %v3984_v7 = vor.u32 %v4252_v10, %v3983_v60  ;;  %v4268_v12 = vld [vmem:[#allocation9 + $0x1b4] sm:$0xf0]  ;;  %v4039_v60 = vld [vmem:[#allocation9 + $0x1a0] sm:$0xf] }
 0x276   :  { %v5239_v8 = vadd.f32 %v2261_v38, %v2173_v62  ;;  %2420 = vmatpush.bf16.msrb.mxu3 %v4064_v22  ;;  %vm1348_vm4 = vcmp.gt.f32.partialorder %v1254_v40, 0.0  ;;  %v1476_v29 = vmul.f32 0.2, %v1254_v40  ;;  %v6168_v22 = vld [vmem:[#allocation25_spill] sm:$0xff] }
 0x278   :  { %2332 = vmatpush.bf16.msrb.mxu2 %v3992_v59  ;;  %v1604_v59 = vsel %vm1348_vm4, %v1254_v40, %v1476_v29  ;;  %v1683_v29 = vsel %vm1427_vm6, %v5126_v16, %v1555_v11  ;;  %v4246_v16 = vld [vmem:[#allocation9 + $0x104] sm:$0xf0]  ;;  %v4023_v11 = vld [vmem:[#allocation9 + $0x180] sm:$0xf] }
 0x279   :  { %v1166_v39 = vpop.f32.mrf.mxu2 }
 0x27a   :  { %v1167_v44 = vadd.f32 %v1166_v39, %v5130_v9  ;;  %v1255_v23 = vpop.f32.mrf.mxu3  ;;  %2421 = vmatpush.bf16.msrb.mxu3 %v4056_v21  ;;  %v6169_v39 = vld [vmem:[#allocation36_spill] sm:$0xff]  ;;  %v4048_v21 = vor.u32 %v4268_v12, %v4047_v34  ;;  %v4266_v12 = vld [vmem:[#allocation9 + $0x1a4] sm:$0xf0] }
 0x27b   :  { %v2175_v0 = vpop.f32.mrf.mxu0 }
 0x27c   :  { %v1256_v62 = vadd.f32 %v1255_v23, %v1167_v44  ;;  %v2176_v38 = vadd.f32 %v2175_v0, %v5173_v19  ;;  %v2264_v49 = vpop.f32.mrf.mxu1  ;;  %v6170_v44 = vld [vmem:[#allocation26_spill] sm:$0xff]  ;;  %v1559_v23 = vmul.f32 0.2, %v5146_v31  ;;  %2333 = vmatpush.bf16.msrb.mxu2 %v3984_v7 }
 0x27e   :  { %vm1352_vm5 = vcmp.gt.f32.partialorder %v1256_v62, 0.0  ;;  %v1480_v51 = vmul.f32 0.2, %v1256_v62  ;;  %v5243_v32 = vadd.f32 %v2264_v49, %v2176_v38  ;;  %1208 = vmatmul.bf16.gmra.mxu2 %v6168_v22  ;;  %2214 = vmatmul.bf16.gmra.mxu0 %v6169_v39  ;;  %v3975_v38 = vld [vmem:[#allocation9 + $0x120] sm:$0xf]  ;;  %v4040_v39 = vor.u32 %v4266_v12, %v4039_v60 }
 0x27f   :  { %1297 = vmatmul.bf16.gmra.mxu3 %v6170_v44  ;;  %2303 = vmatmul.bf16.gmra.mxu1 %v5048_v58  ;;  %v4250_v49 = vld [vmem:[#allocation9 + $0x124] sm:$0xf0] }
 0x280   :  { %v1608_v54 = vsel %vm1352_vm5, %v1256_v62, %v1480_v51  ;;  %2422 = vmatpush.bf16.msrb.mxu3 %v4048_v21  ;;  %v3976_v34 = vor.u32 %v4250_v49, %v3975_v38  ;;  %v1687_v62 = vsel %vm1431_vm7, %v5146_v31, %v1559_v23  ;;  %v3967_v51 = vld [vmem:[#allocation9 + $0x110] sm:$0xf]  ;;  %v4248_v21 = vld [vmem:[#allocation9 + $0x114] sm:$0xf0]  ;;  %v4262_v23 = vld [vmem:[#allocation9 + $0x184] sm:$0xf0] }
 0x281   :  { %v1169_v0 = vpop.f32.mrf.mxu2  ;;  %v5255_v10 = vpack.c.bf16 %v1608_v54, %v1604_v59  ;;  %v4031_v59 = vld [vmem:[#allocation9 + $0x190] sm:$0xf]  ;;  %v5265_v54 = vpack.c.bf16 %v1687_v62, %v1683_v29  ;;  %v3968_v38 = vor.u32 %v4248_v21, %v3967_v51  ;;  %v4024_v12 = vor.u32 %v4262_v23, %v4023_v11  ;;  %v4227_v51 = vld [vmem:[#allocation9 + $0x74] sm:$0xf]  ;;  %v3889_v21 = vld [vmem:[#allocation9 + $0x78] sm:$0xf0] }
 0x282   :  { %v1170_v22 = vadd.f32 %v1169_v0, %v5130_v9  ;;  %v1258_v44 = vpop.f32.mrf.mxu3  ;;  %2334 = vmatpush.bf16.msrb.mxu2 %v3976_v34  ;;  %v4225_v23 = vld [vmem:[#allocation9 + $0x64] sm:$0xf] }
 0x283   :  { %6171 = vst [vmem:[#allocation25_spill] sm:$0xff] %v5255_v10  ;;  %v2177_v58 = vpop.f32.mrf.mxu0 }
 0x284   :  { %v1259_v17 = vadd.f32 %v1258_v44, %v1170_v22  ;;  %v2178_v7 = vadd.f32 %v2177_v58, %v5173_v19  ;;  %v2266_v40 = vpop.f32.mrf.mxu1  ;;  %2423 = vmatpush.bf16.msrb.mxu3 %v4040_v39  ;;  %v4264_v58 = vld [vmem:[#allocation9 + $0x194] sm:$0xf0]  ;;  %v3959_v22 = vld [vmem:[#allocation9 + $0x100] sm:$0xf] }
 0x285   :  { %v4032_v49 = vor.u32 %v4264_v58, %v4031_v59  ;;  %v3960_v39 = vor.u32 %v4246_v16, %v3959_v22  ;;  %v4243_v59 = vld [vmem:[#allocation9 + $0xf4] sm:$0xf]  ;;  %v3953_v22 = vld [vmem:[#allocation9 + $0xf8] sm:$0xf0]  ;;  %v1563_v16 = vmul.f32 0.2, %v5150_v48 }
 0x286   :  { %v5267_v0 = vadd.f32 %v2266_v40, %v2178_v7  ;;  %2335 = vmatpush.bf16.msrb.mxu2 %v3968_v38  ;;  %vm1356_vm8 = vcmp.gt.f32.partialorder %v1259_v17, 0.0  ;;  %v1484_v29 = vmul.f32 0.2, %v1259_v17  ;;  %v3956_v11 = vor.u32 %v4243_v59, %v3953_v22 }
 0x288   :  { %2424 = vmatpush.bf16.msrb.mxu3 %v4032_v49  ;;  %v6172_v49 = vld [vmem:[#allocation37_spill] sm:$0xff]  ;;  %2596 = vmatpush.bf16.msrb.mxu1 %v3956_v11  ;;  %v3873_v11 = vld [vmem:[#allocation9 + $0x58] sm:$0xf0] }
 0x289   :  { %v1171_v60 = vpop.f32.mrf.mxu2 }
 0x28a   :  { %v1172_v44 = vadd.f32 %v1171_v60, %v5130_v9  ;;  %v1260_v31 = vpop.f32.mrf.mxu3  ;;  %2336 = vmatpush.bf16.msrb.mxu2 %v3960_v39  ;;  %v3892_v60 = vor.u32 %v4227_v51, %v3889_v21  ;;  %v3945_v21 = vld [vmem:[#allocation9 + $0xe8] sm:$0xf0] }
 0x28b   :  { %v2180_v34 = vpop.f32.mrf.mxu0 }
 0x28c   :  { %v1261_v7 = vadd.f32 %v1260_v31, %v1172_v44  ;;  %v2181_v40 = vadd.f32 %v2180_v34, %v5173_v19  ;;  %v2269_v62 = vpop.f32.mrf.mxu1  ;;  %2425 = vmatpush.bf16.msrb.mxu3 %v4024_v12  ;;  %v1567_v44 = vmul.f32 0.2, %v5171_v27  ;;  %2507 = vmatpush.bf16.msrb.mxu0 %v3892_v60  ;;  %v3881_v34 = vld [vmem:[#allocation9 + $0x68] sm:$0xf0]  ;;  %v4241_v12 = vld [vmem:[#allocation9 + $0xe4] sm:$0xf] }
 0x28d   :  { %v3884_v51 = vor.u32 %v4225_v23, %v3881_v34  ;;  %v3948_v22 = vor.u32 %v4241_v12, %v3945_v21  ;;  %v3937_v34 = vld [vmem:[#allocation9 + $0xd8] sm:$0xf0]  ;;  %v3929_v21 = vld [vmem:[#allocation9 + $0xc8] sm:$0xf0] }
 0x28e   :  { %vm1360_vm9 = vcmp.gt.f32.partialorder %v1261_v7, 0.0  ;;  %v1488_v38 = vmul.f32 0.2, %v1261_v7  ;;  %v5271_v58 = vadd.f32 %v2269_v62, %v2181_v40  ;;  %1213 = vmatmul.bf16.gmra.mxu2 %v4621_v53  ;;  %2219 = vmatmul.bf16.gmra.mxu0 %v6172_v49  ;;  %v1612_v53 = vsel %vm1356_vm8, %v1259_v17, %v1484_v29 }
 0x28f   :  { %1302 = vmatmul.bf16.gmra.mxu3 %v4625_v55  ;;  %2308 = vmatmul.bf16.gmra.mxu1 %v5070_v56  ;;  %v1691_v29 = vsel %vm1435_vm10, %v5150_v48, %v1563_v16  ;;  %v3865_v48 = vld [vmem:[#allocation9 + $0x48] sm:$0xf0]  ;;  %v4237_v16 = vld [vmem:[#allocation9 + $0xc4] sm:$0xf] }
 0x290   :  { %v1616_v31 = vsel %vm1360_vm9, %v1261_v7, %v1488_v38  ;;  %2508 = vmatpush.bf16.msrb.mxu0 %v3884_v51  ;;  %v1695_v7 = vsel %vm1439_vm11, %v5171_v27, %v1567_v44  ;;  %2597 = vmatpush.bf16.msrb.mxu1 %v3948_v22  ;;  %v4223_v38 = vld [vmem:[#allocation9 + $0x54] sm:$0xf]  ;;  %v3932_v22 = vor.u32 %v4237_v16, %v3929_v21  ;;  %v3849_v21 = vld [vmem:[#allocation9 + $0x28] sm:$0xf0] }
 0x291   :  { %v1174_v39 = vpop.f32.mrf.mxu2  ;;  %v5283_v40 = vpack.c.bf16 %v1616_v31, %v1612_v53  ;;  %v4239_v53 = vld [vmem:[#allocation9 + $0xd4] sm:$0xf]  ;;  %v5293_v31 = vpack.c.bf16 %v1695_v7, %v1691_v29  ;;  %v3876_v23 = vor.u32 %v4223_v38, %v3873_v11  ;;  %v3857_v11 = vld [vmem:[#allocation9 + $0x38] sm:$0xf0] }
 0x292   :  { %v1175_v55 = vadd.f32 %v1174_v39, %v5130_v9  ;;  %v1263_v62 = vpop.f32.mrf.mxu3  ;;  %v3940_v12 = vor.u32 %v4239_v53, %v3937_v34  ;;  %v4219_v38 = vld [vmem:[#allocation9 + $0x34] sm:$0xf] }
 0x293   :  { %6173 = vst [vmem:[#allocation26_spill] sm:$0xff] %v5283_v40  ;;  %v2182_v59 = vpop.f32.mrf.mxu0  ;;  %v4235_v53 = vld [vmem:[#allocation9 + $0xb4] sm:$0xf] }
 0x294   :  { %v1264_v56 = vadd.f32 %v1263_v62, %v1175_v55  ;;  %v2183_v60 = vadd.f32 %v2182_v59, %v5173_v19  ;;  %v2271_v17 = vpop.f32.mrf.mxu1  ;;  %2509 = vmatpush.bf16.msrb.mxu0 %v3876_v23  ;;  %2598 = vmatpush.bf16.msrb.mxu1 %v3940_v12  ;;  %v4221_v62 = vld [vmem:[#allocation9 + $0x44] sm:$0xf]  ;;  %v6174_v12 = vld [vmem:[#allocation38_spill] sm:$0xff] }
 0x295   :  { %v3868_v44 = vor.u32 %v4221_v62, %v3865_v48  ;;  %v3921_v62 = vld [vmem:[#allocation9 + $0xb8] sm:$0xf0] }
 0x296   :  { %v5295_v39 = vadd.f32 %v2271_v17, %v2183_v60  ;;  %vm1364_vm12 = vcmp.gt.f32.partialorder %v1264_v56, 0.0  ;;  %v1492_v29 = vmul.f32 0.2, %v1264_v56  ;;  %v3924_v48 = vor.u32 %v4235_v53, %v3921_v62 }
 0x298   :  { %2510 = vmatpush.bf16.msrb.mxu0 %v3868_v44  ;;  %2599 = vmatpush.bf16.msrb.mxu1 %v3932_v22  ;;  %v1620_v16 = vsel %vm1364_vm12, %v1264_v56, %v1492_v29  ;;  %v4217_v44 = vld [vmem:[#allocation9 + $0x24] sm:$0xf]  ;;  %v4215_v56 = vld [vmem:[#allocation9 + $0x14] sm:$0xf]  ;;  %v3841_v29 = vld [vmem:[#allocation9 + $0x18] sm:$0xf0] }
 0x299   :  { %v1176_v55 = vpop.f32.mrf.mxu2  ;;  %v3844_v62 = vor.u32 %v4215_v56, %v3841_v29 }
 0x29a   :  { %v1177_v51 = vadd.f32 %v1176_v55, %v5130_v9  ;;  %v1265_v27 = vpop.f32.mrf.mxu3  ;;  %v3860_v55 = vor.u32 %v4219_v38, %v3857_v11  ;;  %v3913_v38 = vld [vmem:[#allocation9 + $0xa8] sm:$0xf0] }
 0x29b   :  { %v2185_v59 = vpop.f32.mrf.mxu0 }
 0x29c   :  { %v1266_v60 = vadd.f32 %v1265_v27, %v1177_v51  ;;  %v2186_v17 = vadd.f32 %v2185_v59, %v5173_v19  ;;  %v2274_v7 = vpop.f32.mrf.mxu1  ;;  %2511 = vmatpush.bf16.msrb.mxu0 %v3860_v55  ;;  %2600 = vmatpush.bf16.msrb.mxu1 %v3924_v48  ;;  %v4233_v59 = vld [vmem:[#allocation9 + $0xa4] sm:$0xf]  ;;  %v3905_v48 = vld [vmem:[#allocation9 + $0x98] sm:$0xf0] }
 0x29d   :  { %v3916_v11 = vor.u32 %v4233_v59, %v3913_v38 }
 0x29e   :  { %vm1368_vm13 = vcmp.gt.f32.partialorder %v1266_v60, 0.0  ;;  %v1496_v23 = vmul.f32 0.2, %v1266_v60  ;;  %v5299_v34 = vadd.f32 %v2274_v7, %v2186_v17  ;;  %1218 = vmatmul.bf16.gmra.mxu2 %v4633_v43  ;;  %2224 = vmatmul.bf16.gmra.mxu0 %v6174_v12  ;;  %v3852_v7 = vor.u32 %v4217_v44, %v3849_v21  ;;  %v3833_v44 = vld [vmem:[#allocation9 + $0x8] sm:$0xf0] }
 0x29f   :  { %1307 = vmatmul.bf16.gmra.mxu3 %v4637_v47  ;;  %2313 = vmatmul.bf16.gmra.mxu1 %v5092_v5  ;;  %v4229_v21 = vld [vmem:[#allocation9 + $0x84] sm:$0xf] }
 0x2a0   :  { %v1624_v51 = vsel %vm1368_vm13, %v1266_v60, %v1496_v23  ;;  %2512 = vmatpush.bf16.msrb.mxu0 %v3852_v7  ;;  %2601 = vmatpush.bf16.msrb.mxu1 %v3916_v11  ;;  %v4231_v60 = vld [vmem:[#allocation9 + $0x94] sm:$0xf]  ;;  %v3897_v7 = vld [vmem:[#allocation9 + $0x88] sm:$0xf0] }
 0x2a1   :  { %v1179_v27 = vpop.f32.mrf.mxu2  ;;  %v5306_v22 = vpack.c.bf16 %v1624_v51, %v1620_v16  ;;  %v3908_v16 = vor.u32 %v4231_v60, %v3905_v48  ;;  %v6176_v60 = vld [vmem:[#allocation39_spill] sm:$0xff] }
 0x2a2   :  { %v1180_v43 = vadd.f32 %v1179_v27, %v5130_v9  ;;  %v1268_v17 = vpop.f32.mrf.mxu3  ;;  %v4213_v27 = vld [vmem:[#allocation9 + $0x4] sm:$0xf] }
 0x2a3   :  { %6175 = vst [vmem:[#allocation37_spill] sm:$0xff] %v5306_v22  ;;  %v2187_v47 = vpop.f32.mrf.mxu0 }
 0x2a4   :  { %v1269_v5 = vadd.f32 %v1268_v17, %v1180_v43  ;;  %v2188_v53 = vadd.f32 %v2187_v47, %v5173_v19  ;;  %v2276_v55 = vpop.f32.mrf.mxu1  ;;  %2513 = vmatpush.bf16.msrb.mxu0 %v3844_v62  ;;  %2602 = vmatpush.bf16.msrb.mxu1 %v3908_v16  ;;  %v3836_v17 = vor.u32 %v4213_v27, %v3833_v44  ;;  %v6177_v62 = vld [vmem:[#allocation41_spill] sm:$0xff] }
 0x2a5   :  { %v3900_v47 = vor.u32 %v4229_v21, %v3897_v7 }
 0x2a6   :  { %v5310_v23 = vadd.f32 %v2276_v55, %v2188_v53  ;;  %v1500_v11 = vmul.f32 0.2, %v1269_v5  ;;  %vm1372_vm14 = vcmp.gt.f32.partialorder %v1269_v5, 0.0 }
 0x2a8   :  { %2514 = vmatpush.bf16.msrb.mxu0 %v3836_v17  ;;  %2603 = vmatpush.bf16.msrb.mxu1 %v3900_v47  ;;  %v1628_v48 = vsel %vm1372_vm14, %v1269_v5, %v1500_v11 }
 0x2a9   :  { %v1181_v51 = vpop.f32.mrf.mxu2 }
 0x2aa   :  { %v1182_v59 = vadd.f32 %v1181_v51, %v5130_v9  ;;  %v1270_v43 = vpop.f32.mrf.mxu3 }
 0x2ab   :  { %v2190_v38 = vpop.f32.mrf.mxu0 }
 0x2ac   :  { %v1271_v12 = vadd.f32 %v1270_v43, %v1182_v59  ;;  %v2191_v53 = vadd.f32 %v2190_v38, %v5173_v19  ;;  %v2279_v55 = vpop.f32.mrf.mxu1 }
 0x2ae   :  { %vm1376_vm15 = vcmp.gt.f32.partialorder %v1271_v12, 0.0  ;;  %v1504_v56 = vmul.f32 0.2, %v1271_v12  ;;  %v5314_v29 = vadd.f32 %v2279_v55, %v2191_v53  ;;  %2229 = vmatmul.bf16.gmra.mxu0 %v6176_v60  ;;  %2337 = vmatmul.bf16.vlgmr.msrb.gmra.mxu2 %v6177_v62 }
 0x2af   :  { %2318 = vmatmul.bf16.gmra.mxu1 %v5114_v52  ;;  %2426 = vmatmul.bf16.vlgmr.msrb.gmra.mxu3 %v5160_v2 }
 0x2b0   :  { %v1632_v16 = vsel %vm1376_vm15, %v1271_v12, %v1504_v56 }
 0x2b1   :  { %v1184_v51 = vpop.f32.mrf.mxu2  ;;  %v5320_v27 = vpack.c.bf16 %v1632_v16, %v1628_v48 }
 0x2b2   :  { %v1185_v44 = vadd.f32 %v1184_v51, %v5130_v9  ;;  %v1273_v21 = vpop.f32.mrf.mxu3  ;;  %v6179_v51 = vld [vmem:[#allocation40_spill] sm:$0xff] }
 0x2b3   :  { %6178 = vst [vmem:[#allocation39_spill] sm:$0xff] %v5320_v27  ;;  %v2192_v59 = vpop.f32.mrf.mxu0 }
 0x2b4   :  { %v1274_v43 = vadd.f32 %v1273_v21, %v1185_v44  ;;  %v2193_v17 = vadd.f32 %v2192_v59, %v5173_v19  ;;  %v2281_v7 = vpop.f32.mrf.mxu1 }
 0x2b6   :  { %v5324_v38 = vadd.f32 %v2281_v7, %v2193_v17  ;;  %v1508_v5 = vmul.f32 0.2, %v1274_v43  ;;  %vm1380_vm0 = vcmp.gt.f32.partialorder %v1274_v43, 0.0 }
 0x2b8   :  { %v1636_v44 = vsel %vm1380_vm0, %v1274_v43, %v1508_v5 }
 0x2b9   :  { %v1186_v47 = vpop.f32.mrf.mxu2 }
 0x2ba   :  { %v1187_v53 = vadd.f32 %v1186_v47, %v5130_v9  ;;  %v1275_v55 = vpop.f32.mrf.mxu3 }
 0x2bb   :  { %v2195_v2 = vpop.f32.mrf.mxu0 }
 0x2bc   :  { %v1276_v12 = vadd.f32 %v1275_v55, %v1187_v53  ;;  %v2196_v11 = vadd.f32 %v2195_v2, %v5173_v19  ;;  %v2284_v56 = vpop.f32.mrf.mxu1 }
 0x2be   :  { %vm1384_vm1 = vcmp.gt.f32.partialorder %v1276_v12, 0.0  ;;  %v1512_v48 = vmul.f32 0.2, %v1276_v12  ;;  %v5328_v16 = vadd.f32 %v2284_v56, %v2196_v11  ;;  %2234 = vmatmul.bf16.gmra.mxu0 %v6179_v51  ;;  %2342 = vmatmul.bf16.gmra.mxu2 %v4966_v18 }
 0x2bf   :  { %2323 = vmatmul.bf16.gmra.mxu1 %v5138_v28  ;;  %2431 = vmatmul.bf16.gmra.mxu3 %v5187_v57 }
 0x2c0   :  { %v1640_v21 = vsel %vm1384_vm1, %v1276_v12, %v1512_v48 }
 0x2c1   :  { %v1189_v59 = vpop.f32.mrf.mxu2  ;;  %v5334_v17 = vpack.c.bf16 %v1640_v21, %v1636_v44 }
 0x2c2   :  { %v1190_v2 = vadd.f32 %v1189_v59, %v5130_v9  ;;  %v1278_v7 = vpop.f32.mrf.mxu3 }
 0x2c3   :  { %6180 = vst [vmem:[#allocation41_spill] sm:$0xff] %v5334_v17  ;;  %v2197_v47 = vpop.f32.mrf.mxu0 }
 0x2c4   :  { %v1279_v53 = vadd.f32 %v1278_v7, %v1190_v2  ;;  %v2198_v55 = vadd.f32 %v2197_v47, %v5173_v19  ;;  %v2286_v11 = vpop.f32.mrf.mxu1 }
 0x2c6   :  { %v5338_v56 = vadd.f32 %v2286_v11, %v2198_v55  ;;  %v1516_v43 = vmul.f32 0.2, %v1279_v53  ;;  %vm1388_vm2 = vcmp.gt.f32.partialorder %v1279_v53, 0.0 }
 0x2c9   :  { %v1191_v18 = vpop.f32.mrf.mxu2 }
 0x2ca   :  { %v1192_v28 = vadd.f32 %v1191_v18, %v5130_v9  ;;  %v1280_v51 = vpop.f32.mrf.mxu3  ;;  %v1644_v18 = vsel %vm1388_vm2, %v1279_v53, %v1516_v43 }
 0x2cb   :  { %v2200_v57 = vpop.f32.mrf.mxu0 }
 0x2cc   :  { %v1281_v5 = vadd.f32 %v1280_v51, %v1192_v28  ;;  %v2201_v12 = vadd.f32 %v2200_v57, %v5173_v19  ;;  %v2289_v48 = vpop.f32.mrf.mxu1 }
 0x2ce   :  { %vm1392_vm3 = vcmp.gt.f32.partialorder %v1281_v5, 0.0  ;;  %v1520_v44 = vmul.f32 0.2, %v1281_v5  ;;  %v5342_v21 = vadd.f32 %v2289_v48, %v2201_v12  ;;  %2347 = vmatmul.bf16.gmra.mxu2 %v4988_v1  ;;  %2515 = vmatmul.bf16.vlgmr.msrb.gmra.mxu0 %v4668_v26 }
 0x2cf   :  { %2436 = vmatmul.bf16.gmra.mxu3 %v5209_v6  ;;  %2604 = vmatmul.bf16.vlgmr.msrb.gmra.mxu1 %v4798_v15 }
 0x2d0   :  { %v1648_v59 = vsel %vm1392_vm3, %v1281_v5, %v1520_v44 }
 0x2d1   :  { %v1194_v2 = vpop.f32.mrf.mxu2  ;;  %v5348_v28 = vpack.c.bf16 %v1648_v59, %v1644_v18 }
 0x2d2   :  { %v1195_v57 = vadd.f32 %v1194_v2, %v5130_v9  ;;  %v1283_v51 = vpop.f32.mrf.mxu3 }
 0x2d3   :  { %6181 = vst [vmem:[#allocation56_spill] sm:$0xff] %v5348_v28  ;;  %v2202_v7 = vpop.f32.mrf.mxu0 }
 0x2d4   :  { %v1284_v47 = vadd.f32 %v1283_v51, %v1195_v57  ;;  %v2203_v55 = vadd.f32 %v2202_v7, %v5173_v19  ;;  %v2291_v11 = vpop.f32.mrf.mxu1 }
 0x2d6   :  { %v5352_v12 = vadd.f32 %v2291_v11, %v2203_v55  ;;  %v1524_v53 = vmul.f32 0.2, %v1284_v47  ;;  %vm1396_vm4 = vcmp.gt.f32.partialorder %v1284_v47, 0.0 }
 0x2d8   :  { %v1652_v2 = vsel %vm1396_vm4, %v1284_v47, %v1524_v53 }
 0x2d9   :  { %v1196_v26 = vpop.f32.mrf.mxu2 }
 0x2da   :  { %v1197_v48 = vadd.f32 %v1196_v26, %v5130_v9  ;;  %v1285_v6 = vpop.f32.mrf.mxu3 }
 0x2db   :  { %v2205_v15 = vpop.f32.mrf.mxu0 }
 0x2dc   :  { %v1286_v43 = vadd.f32 %v1285_v6, %v1197_v48  ;;  %v2206_v5 = vadd.f32 %v2205_v15, %v5173_v19  ;;  %v2294_v44 = vpop.f32.mrf.mxu1 }
 0x2de   :  { %vm1400_vm5 = vcmp.gt.f32.partialorder %v1286_v43, 0.0  ;;  %v1528_v18 = vmul.f32 0.2, %v1286_v43  ;;  %v5356_v59 = vadd.f32 %v2294_v44, %v2206_v5  ;;  %2352 = vmatmul.bf16.gmra.mxu2 %v5010_v3  ;;  %2520 = vmatmul.bf16.gmra.mxu0 %v4757_v36 }
 0x2df   :  { %2441 = vmatmul.bf16.gmra.mxu3 %v5231_v4  ;;  %2609 = vmatmul.bf16.gmra.mxu1 %v4821_v33 }
 0x2e0   :  { %v1656_v57 = vsel %vm1400_vm5, %v1286_v43, %v1528_v18 }
 0x2e1   :  { %v1199_v51 = vpop.f32.mrf.mxu2  ;;  %v5362_v6 = vpack.c.bf16 %v1656_v57, %v1652_v2 }
 0x2e2   :  { %v1200_v7 = vadd.f32 %v1199_v51, %v5130_v9  ;;  %v1288_v55 = vpop.f32.mrf.mxu3 }
 0x2e3   :  { %6182 = vst [vmem:[#allocation57_spill] sm:$0xff] %v5362_v6  ;;  %v2207_v11 = vpop.f32.mrf.mxu0 }
 0x2e4   :  { %v1289_v26 = vadd.f32 %v1288_v55, %v1200_v7  ;;  %v2208_v48 = vadd.f32 %v2207_v11, %v5173_v19  ;;  %v2296_v15 = vpop.f32.mrf.mxu1 }
 0x2e6   :  { %v5366_v5 = vadd.f32 %v2296_v15, %v2208_v48  ;;  %v1532_v47 = vmul.f32 0.2, %v1289_v26  ;;  %vm1404_vm6 = vcmp.gt.f32.partialorder %v1289_v26, 0.0 }
 0x2e8   :  { %v1660_v51 = vsel %vm1404_vm6, %v1289_v26, %v1532_v47 }
 0x2e9   :  { %v1201_v36 = vpop.f32.mrf.mxu2 }
 0x2ea   :  { %v1202_v44 = vadd.f32 %v1201_v36, %v5130_v9  ;;  %v1290_v4 = vpop.f32.mrf.mxu3 }
 0x2eb   :  { %v2210_v33 = vpop.f32.mrf.mxu0 }
 0x2ec   :  { %v1291_v53 = vadd.f32 %v1290_v4, %v1202_v44  ;;  %v2211_v43 = vadd.f32 %v2210_v33, %v5173_v19  ;;  %v2299_v18 = vpop.f32.mrf.mxu1 }
 0x2ee   :  { %vm1408_vm7 = vcmp.gt.f32.partialorder %v1291_v53, 0.0  ;;  %v1536_v2 = vmul.f32 0.2, %v1291_v53  ;;  %v5370_v57 = vadd.f32 %v2299_v18, %v2211_v43  ;;  %2357 = vmatmul.bf16.gmra.mxu2 %v5032_v24  ;;  %2525 = vmatmul.bf16.gmra.mxu0 %v4782_v50 }
 0x2ef   :  { %2446 = vmatmul.bf16.gmra.mxu3 %v5255_v10  ;;  %2614 = vmatmul.bf16.gmra.mxu1 %v4843_v45 }
 0x2f0   :  { %v1664_v7 = vsel %vm1408_vm7, %v1291_v53, %v1536_v2 }
 0x2f1   :  { %v1204_v55 = vpop.f32.mrf.mxu2  ;;  %v5376_v4 = vpack.c.bf16 %v1664_v7, %v1660_v51 }
 0x2f2   :  { %v1205_v11 = vadd.f32 %v1204_v55, %v5130_v9  ;;  %v1293_v48 = vpop.f32.mrf.mxu3 }
 0x2f3   :  { %6183 = vst [vmem:[#allocation58_spill] sm:$0xff] %v5376_v4  ;;  %v2212_v15 = vpop.f32.mrf.mxu0 }
 0x2f4   :  { %v1294_v36 = vadd.f32 %v1293_v48, %v1205_v11  ;;  %v2213_v44 = vadd.f32 %v2212_v15, %v5173_v19  ;;  %v2301_v33 = vpop.f32.mrf.mxu1 }
 0x2f6   :  { %v5380_v43 = vadd.f32 %v2301_v33, %v2213_v44  ;;  %v1540_v26 = vmul.f32 0.2, %v1294_v36  ;;  %vm1412_vm8 = vcmp.gt.f32.partialorder %v1294_v36, 0.0 }
 0x2f8   :  { %v1668_v55 = vsel %vm1412_vm8, %v1294_v36, %v1540_v26 }
 0x2f9   :  { %v1206_v50 = vpop.f32.mrf.mxu2 }
 0x2fa   :  { %v1207_v18 = vadd.f32 %v1206_v50, %v5130_v9  ;;  %v1295_v10 = vpop.f32.mrf.mxu3 }
 0x2fb   :  { %v2215_v45 = vpop.f32.mrf.mxu0 }
 0x2fc   :  { %v1296_v47 = vadd.f32 %v1295_v10, %v1207_v18  ;;  %v2216_v53 = vadd.f32 %v2215_v45, %v5173_v19  ;;  %v2304_v2 = vpop.f32.mrf.mxu1 }
 0x2fe   :  { %vm1416_vm9 = vcmp.gt.f32.partialorder %v1296_v47, 0.0  ;;  %v1544_v51 = vmul.f32 0.2, %v1296_v47  ;;  %v5384_v7 = vadd.f32 %v2304_v2, %v2216_v53  ;;  %2362 = vmatmul.bf16.gmra.mxu2 %v5054_v41  ;;  %2530 = vmatmul.bf16.gmra.mxu0 %v4804_v42 }
 0x2ff   :  { %2451 = vmatmul.bf16.gmra.mxu3 %v5283_v40  ;;  %2619 = vmatmul.bf16.gmra.mxu1 %v4864_v46 }
 0x300   :  { %v1672_v11 = vsel %vm1416_vm9, %v1296_v47, %v1544_v51 }
 0x301   :  { %v1209_v48 = vpop.f32.mrf.mxu2  ;;  %v5390_v10 = vpack.c.bf16 %v1672_v11, %v1668_v55 }
 0x302   :  { %v1210_v15 = vadd.f32 %v1209_v48, %v5130_v9  ;;  %v1298_v44 = vpop.f32.mrf.mxu3 }
 0x303   :  { %6184 = vst [vmem:[#allocation59_spill] sm:$0xff] %v5390_v10  ;;  %v2217_v33 = vpop.f32.mrf.mxu0 }
 0x304   :  { %v1299_v50 = vadd.f32 %v1298_v44, %v1210_v15  ;;  %v2218_v18 = vadd.f32 %v2217_v33, %v5173_v19  ;;  %v2306_v45 = vpop.f32.mrf.mxu1 }
 0x306   :  { %v5394_v53 = vadd.f32 %v2306_v45, %v2218_v18  ;;  %v1548_v36 = vmul.f32 0.2, %v1299_v50  ;;  %vm1420_vm10 = vcmp.gt.f32.partialorder %v1299_v50, 0.0 }
 0x308   :  { %v1676_v48 = vsel %vm1420_vm10, %v1299_v50, %v1548_v36 }
 0x309   :  { %v1211_v42 = vpop.f32.mrf.mxu2 }
 0x30a   :  { %v1212_v2 = vadd.f32 %v1211_v42, %v5130_v9  ;;  %v1300_v40 = vpop.f32.mrf.mxu3 }
 0x30b   :  { %v2220_v46 = vpop.f32.mrf.mxu0 }
 0x30c   :  { %v1301_v26 = vadd.f32 %v1300_v40, %v1212_v2  ;;  %v2221_v47 = vadd.f32 %v2220_v46, %v5173_v19  ;;  %v2309_v51 = vpop.f32.mrf.mxu1 }
 0x30e   :  { %vm1424_vm11 = vcmp.gt.f32.partialorder %v1301_v26, 0.0  ;;  %v1552_v55 = vmul.f32 0.2, %v1301_v26  ;;  %v5398_v11 = vadd.f32 %v2309_v51, %v2221_v47  ;;  %2367 = vmatmul.bf16.gmra.mxu2 %v5076_v61  ;;  %2535 = vmatmul.bf16.gmra.mxu0 %v4827_v13 }
 0x30f   :  { %2456 = vmatmul.bf16.gmra.mxu3 %v5306_v22  ;;  %2624 = vmatmul.bf16.gmra.mxu1 %v4891_v35 }
 0x310   :  { %v1680_v15 = vsel %vm1424_vm11, %v1301_v26, %v1552_v55 }
 0x311   :  { %v1214_v44 = vpop.f32.mrf.mxu2  ;;  %v5404_v40 = vpack.c.bf16 %v1680_v15, %v1676_v48 }
 0x312   :  { %v1215_v33 = vadd.f32 %v1214_v44, %v5130_v9  ;;  %v1303_v18 = vpop.f32.mrf.mxu3  ;;  %v6186_v44 = vld [vmem:[#allocation42_spill] sm:$0xff] }
 0x313   :  { %6185 = vst [vmem:[#allocation60_spill] sm:$0xff] %v5404_v40  ;;  %v2222_v45 = vpop.f32.mrf.mxu0 }
 0x314   :  { %v1304_v42 = vadd.f32 %v1303_v18, %v1215_v33  ;;  %v2223_v2 = vadd.f32 %v2222_v45, %v5173_v19  ;;  %v2311_v46 = vpop.f32.mrf.mxu1  ;;  %v6187_v33 = vld [vmem:[#allocation45_spill] sm:$0xff] }
 0x316   :  { %v5408_v47 = vadd.f32 %v2311_v46, %v2223_v2  ;;  %v1556_v50 = vmul.f32 0.2, %v1304_v42  ;;  %vm1428_vm12 = vcmp.gt.f32.partialorder %v1304_v42, 0.0 }
 0x318   :  { %v1684_v18 = vsel %vm1428_vm12, %v1304_v42, %v1556_v50 }
 0x319   :  { %v1216_v13 = vpop.f32.mrf.mxu2 }
 0x31a   :  { %v1217_v51 = vadd.f32 %v1216_v13, %v5130_v9  ;;  %v1305_v22 = vpop.f32.mrf.mxu3 }
 0x31b   :  { %v2225_v35 = vpop.f32.mrf.mxu0 }
 0x31c   :  { %v1306_v36 = vadd.f32 %v1305_v22, %v1217_v51  ;;  %v2226_v26 = vadd.f32 %v2225_v35, %v5173_v19  ;;  %v2314_v55 = vpop.f32.mrf.mxu1 }
 0x31e   :  { %vm1432_vm13 = vcmp.gt.f32.partialorder %v1306_v36, 0.0  ;;  %v1560_v48 = vmul.f32 0.2, %v1306_v36  ;;  %v5412_v15 = vadd.f32 %v2314_v55, %v2226_v26  ;;  %2372 = vmatmul.bf16.gmra.mxu2 %v5098_v63  ;;  %2540 = vmatmul.bf16.gmra.mxu0 %v6186_v44 }
 0x31f   :  { %2461 = vmatmul.bf16.gmra.mxu3 %v5320_v27  ;;  %2629 = vmatmul.bf16.gmra.mxu1 %v6187_v33 }
 0x320   :  { %v1688_v45 = vsel %vm1432_vm13, %v1306_v36, %v1560_v48 }
 0x321   :  { %v1219_v2 = vpop.f32.mrf.mxu2  ;;  %v5418_v22 = vpack.c.bf16 %v1688_v45, %v1684_v18 }
 0x322   :  { %v1220_v46 = vadd.f32 %v1219_v2, %v5130_v9  ;;  %v1308_v13 = vpop.f32.mrf.mxu3  ;;  %v6188_v2 = vld [vmem:[#allocation43_spill] sm:$0xff] }
 0x323   :  { %v2227_v51 = vpop.f32.mrf.mxu0 }
 0x324   :  { %v1309_v35 = vadd.f32 %v1308_v13, %v1220_v46  ;;  %v2228_v26 = vadd.f32 %v2227_v51, %v5173_v19  ;;  %v2316_v55 = vpop.f32.mrf.mxu1  ;;  %v6189_v46 = vld [vmem:[#allocation47_spill] sm:$0xff] }
 0x326   :  { %v5422_v63 = vadd.f32 %v2316_v55, %v2228_v26  ;;  %v1564_v42 = vmul.f32 0.2, %v1309_v35  ;;  %vm1436_vm14 = vcmp.gt.f32.partialorder %v1309_v35, 0.0 }
 0x329   :  { %v1221_v44 = vpop.f32.mrf.mxu2 }
 0x32a   :  { %v1222_v27 = vadd.f32 %v1221_v44, %v5130_v9  ;;  %v1310_v61 = vpop.f32.mrf.mxu3  ;;  %v1692_v9 = vsel %vm1436_vm14, %v1309_v35, %v1564_v42 }
 0x32b   :  { %v2230_v33 = vpop.f32.mrf.mxu0 }
 0x32c   :  { %v1311_v50 = vadd.f32 %v1310_v61, %v1222_v27  ;;  %v2231_v36 = vadd.f32 %v2230_v33, %v5173_v19  ;;  %v2319_v48 = vpop.f32.mrf.mxu1 }
 0x32e   :  { %vm1440_vm15 = vcmp.gt.f32.partialorder %v1311_v50, 0.0  ;;  %v1568_v18 = vmul.f32 0.2, %v1311_v50  ;;  %v5426_v45 = vadd.f32 %v2319_v48, %v2231_v36  ;;  %2377 = vmatmul.bf16.gmra.mxu2 %v5120_v37  ;;  %2545 = vmatmul.bf16.gmra.mxu0 %v6188_v2 }
 0x32f   :  { %2466 = vmatmul.bf16.gmra.mxu3 %v5334_v17  ;;  %2634 = vmatmul.bf16.gmra.mxu1 %v6189_v46 }
 0x330   :  { %v1696_v13 = vsel %vm1440_vm15, %v1311_v50, %v1568_v18 }
 0x331   :  { %v2338_v51 = vpop.f32.mrf.mxu2  ;;  %v5432_v61 = vpack.c.bf16 %v1696_v13, %v1692_v9  ;;  %v6191_v13 = vld [vmem:[#allocation44_spill] sm:$0xff] }
 0x332   :  { %v2339_v27 = vadd.f32 %v2338_v51, %v5177_v30  ;;  %v2427_v26 = vpop.f32.mrf.mxu3  ;;  %v6192_v51 = vld [vmem:[#allocation48_spill] sm:$0xff] }
 0x333   :  { %v2232_v55 = vpop.f32.mrf.mxu0 }
 0x334   :  { %v2428_v44 = vadd.f32 %v2427_v26, %v2339_v27  ;;  %v2233_v33 = vadd.f32 %v2232_v55, %v5173_v19  ;;  %v2321_v36 = vpop.f32.mrf.mxu1 }
 0x336   :  { %v5436_v48 = vadd.f32 %v2321_v36, %v2233_v33  ;;  %v2927_v35 = vmul.f32 0.2, %v2428_v44  ;;  %vm2863_vm0 = vcmp.gt.f32.partialorder %v2428_v44, 0.0 }
 0x339   :  { %v2340_v2 = vpop.f32.mrf.mxu2 }
 0x33a   :  { %v2341_v17 = vadd.f32 %v2340_v2, %v5195_v25  ;;  %v2429_v37 = vpop.f32.mrf.mxu3  ;;  %v5446_v25 = vsel %vm2863_vm0, %v2428_v44, %v2927_v35  ;;  %v4325_v44 = vld [vmem:[%s6029_s4] sm:$0x3] }
 0x33b   :  { %v2235_v46 = vpop.f32.mrf.mxu0  ;;  %v5459_v35 = vperm.slane %v4325_v44, 1  ;;  %v6198_v44 = vld [vmem:[#allocation50_spill] sm:$0xff] }
 0x33c   :  { %v2430_v42 = vadd.f32 %v2429_v37, %v2341_v17  ;;  %v2236_v50 = vadd.f32 %v2235_v46, %v5173_v19  ;;  %v2324_v18 = vpop.f32.mrf.mxu1 }
 0x33e   :  { %vm2865_vm1 = vcmp.gt.f32.partialorder %v2430_v42, 0.0  ;;  %v2929_v30 = vmul.f32 0.2, %v2430_v42  ;;  %v5440_v9 = vadd.f32 %v2324_v18, %v2236_v50  ;;  %2382 = vmatmul.bf16.gmra.mxu2 %v5144_v14  ;;  %2550 = vmatmul.bf16.gmra.mxu0 %v6191_v13  ;;  %v6194_v18 = vld [vmem:[#allocation22_spill] sm:$0xff] }
 0x33f   :  { %2471 = vmatmul.bf16.gmra.mxu3 %v5348_v28  ;;  %2639 = vmatmul.bf16.gmra.mxu1 %v6192_v51 }
 0x340   :  { %6190 = vst [vmem:[#allocation42_spill] sm:$0xff] %v5440_v9  ;;  %v5448_v27 = vsel %vm2865_vm1, %v2430_v42, %v2929_v30 }
 0x341   :  { %v2343_v17 = vpop.f32.mrf.mxu2 }
 0x342   :  { %v2344_v26 = vadd.f32 %v2343_v17, %v5199_v20  ;;  %v2432_v55 = vpop.f32.mrf.mxu3 }
 0x343   :  { %v2237_v33 = vpop.f32.mrf.mxu0 }
 0x344   :  { %v2433_v36 = vadd.f32 %v2432_v55, %v2344_v26  ;;  %v2238_v2 = vadd.f32 %v2237_v33, %v5173_v19  ;;  %v2326_v46 = vpop.f32.mrf.mxu1 }
 0x346   :  { %v5454_v50 = vadd.f32 %v2326_v46, %v2238_v2  ;;  %v2931_v20 = vmul.f32 0.2, %v2433_v36  ;;  %vm2867_vm2 = vcmp.gt.f32.partialorder %v2433_v36, 0.0  ;;  %v6196_v2 = vld [vmem:[#allocation17_spill] sm:$0xff]  ;;  %v6197_v46 = vld [vmem:[#allocation46_spill] sm:$0xff] }
 0x348   :  { %6193 = vst [vmem:[#allocation45_spill] sm:$0xff] %v5454_v50 }
 0x349   :  { %v2345_v42 = vpop.f32.mrf.mxu2 }
 0x34a   :  { %v2346_v30 = vadd.f32 %v2345_v42, %v6194_v18  ;;  %v2434_v13 = vpop.f32.mrf.mxu3  ;;  %v4259_v42 = vld [vmem:[#allocation9 + $0x174] sm:$0xf]  ;;  %v4017_v18 = vld [vmem:[#allocation9 + $0x178] sm:$0xf0] }
 0x34b   :  { %v2516_v51 = vpop.f32.mrf.mxu0  ;;  %v4020_v37 = vor.u32 %v4259_v42, %v4017_v18  ;;  %v4275_v42 = vld [vmem:[#allocation9 + $0x1f4] sm:$0xf] }
 0x34c   :  { %v2435_v17 = vadd.f32 %v2434_v13, %v2346_v30  ;;  %v2517_v26 = vadd.f32 %v2516_v51, %v5459_v35  ;;  %v2605_v55 = vpop.f32.mrf.mxu1  ;;  %v5469_v30 = vsel %vm2867_vm2, %v2433_v36, %v2931_v20  ;;  %v4081_v36 = vld [vmem:[#allocation9 + $0x1f8] sm:$0xf0] }
 0x34d   :  { %2685 = vmatpush.bf16.msra.mxu2 %v4020_v37  ;;  %v4084_v20 = vor.u32 %v4275_v42, %v4081_v36 }
 0x34e   :  { %vm2869_vm3 = vcmp.gt.f32.partialorder %v2435_v17, 0.0  ;;  %v2933_v19 = vmul.f32 0.2, %v2435_v17  ;;  %v5463_v33 = vadd.f32 %v2605_v55, %v2517_v26  ;;  %2387 = vmatmul.bf16.gmra.mxu2 %v6196_v2  ;;  %2555 = vmatmul.bf16.gmra.mxu0 %v6197_v46  ;;  %v6199_v55 = vld [vmem:[#allocation55_spill] sm:$0xff] }
 0x34f   :  { %2476 = vmatmul.bf16.gmra.mxu3 %v5362_v6  ;;  %2644 = vmatmul.bf16.gmra.mxu1 %v6198_v44 }
 0x350   :  { %6195 = vst [vmem:[#allocation43_spill] sm:$0xff] %v5463_v33  ;;  %v5471_v13 = vsel %vm2869_vm3, %v2435_v17, %v2933_v19  ;;  %2774 = vmatpush.bf16.msra.mxu3 %v4084_v20 }
 0x351   :  { %v2348_v51 = vpop.f32.mrf.mxu2 }
 0x352   :  { %v2349_v28 = vadd.f32 %v2348_v51, %v6199_v55  ;;  %v2437_v2 = vpop.f32.mrf.mxu3 }
 0x353   :  { %v2518_v46 = vpop.f32.mrf.mxu0 }
 0x354   :  { %v2438_v14 = vadd.f32 %v2437_v2, %v2349_v28  ;;  %v2519_v6 = vadd.f32 %v2518_v46, %v5459_v35  ;;  %v2607_v44 = vpop.f32.mrf.mxu1  ;;  %v6203_v46 = vld [vmem:[#allocation34_spill] sm:$0xff] }
 0x356   :  { %v5477_v33 = vadd.f32 %v2607_v44, %v2519_v6  ;;  %v2935_v50 = vmul.f32 0.2, %v2438_v14  ;;  %vm2871_vm4 = vcmp.gt.f32.partialorder %v2438_v14, 0.0  ;;  %v6202_v6 = vld [vmem:[#allocation19_spill] sm:$0xff] }
 0x358   :  { %6200 = vst [vmem:[#allocation47_spill] sm:$0xff] %v5477_v33  ;;  %v5487_v44 = vsel %vm2871_vm4, %v2438_v14, %v2935_v50 }
 0x359   :  { %v2350_v17 = vpop.f32.mrf.mxu2 }
 0x35a   :  { %v2351_v19 = vadd.f32 %v2350_v17, %v5239_v8  ;;  %v2439_v18 = vpop.f32.mrf.mxu3  ;;  %v6204_v8 = vld [vmem:[#allocation51_spill] sm:$0xff] }
 0x35b   :  { %v2521_v26 = vpop.f32.mrf.mxu0 }
 0x35c   :  { %v2440_v51 = vadd.f32 %v2439_v18, %v2351_v19  ;;  %v2522_v37 = vadd.f32 %v2521_v26, %v5459_v35  ;;  %v2610_v55 = vpop.f32.mrf.mxu1 }
 0x35e   :  { %vm2873_vm5 = vcmp.gt.f32.partialorder %v2440_v51, 0.0  ;;  %v2937_v28 = vmul.f32 0.2, %v2440_v51  ;;  %v5481_v2 = vadd.f32 %v2610_v55, %v2522_v37  ;;  %2392 = vmatmul.bf16.gmra.mxu2 %v6202_v6  ;;  %2560 = vmatmul.bf16.gmra.mxu0 %v6203_v46 }
 0x35f   :  { %2481 = vmatmul.bf16.gmra.mxu3 %v5376_v4  ;;  %2649 = vmatmul.bf16.gmra.mxu1 %v6204_v8 }
 0x360   :  { %6201 = vst [vmem:[#allocation44_spill] sm:$0xff] %v5481_v2  ;;  %v5489_v42 = vsel %vm2873_vm5, %v2440_v51, %v2937_v28  ;;  %v4065_v2 = vld [vmem:[#allocation9 + $0x1d8] sm:$0xf0] }
 0x361   :  { %v2353_v36 = vpop.f32.mrf.mxu2 }
 0x362   :  { %v2354_v20 = vadd.f32 %v2353_v36, %v5243_v32  ;;  %v2442_v17 = vpop.f32.mrf.mxu3 }
 0x363   :  { %v2523_v19 = vpop.f32.mrf.mxu0 }
 0x364   :  { %v2443_v18 = vadd.f32 %v2442_v17, %v2354_v20  ;;  %v2524_v37 = vadd.f32 %v2523_v19, %v5459_v35  ;;  %v2612_v55 = vpop.f32.mrf.mxu1  ;;  %v6207_v20 = vld [vmem:[#allocation21_spill] sm:$0xff]  ;;  %v6208_v17 = vld [vmem:[#allocation35_spill] sm:$0xff]  ;;  %v6209_v19 = vld [vmem:[#allocation52_spill] sm:$0xff] }
 0x366   :  { %v5495_v46 = vadd.f32 %v2612_v55, %v2524_v37  ;;  %v2939_v28 = vmul.f32 0.2, %v2443_v18  ;;  %vm2875_vm6 = vcmp.gt.f32.partialorder %v2443_v18, 0.0 }
 0x368   :  { %6205 = vst [vmem:[#allocation48_spill] sm:$0xff] %v5495_v46  ;;  %v5505_v55 = vsel %vm2875_vm6, %v2443_v18, %v2939_v28  ;;  %v4073_v46 = vld [vmem:[#allocation9 + $0x1e8] sm:$0xf0]  ;;  %v4255_v18 = vld [vmem:[#allocation9 + $0x154] sm:$0xf] }
 0x369   :  { %v2355_v4 = vpop.f32.mrf.mxu2  ;;  %v4001_v28 = vld [vmem:[#allocation9 + $0x158] sm:$0xf0] }
 0x36a   :  { %v2356_v14 = vadd.f32 %v2355_v4, %v5267_v0  ;;  %v2444_v50 = vpop.f32.mrf.mxu3  ;;  %v4257_v0 = vld [vmem:[#allocation9 + $0x164] sm:$0xf]  ;;  %v4009_v4 = vld [vmem:[#allocation9 + $0x168] sm:$0xf0] }
 0x36b   :  { %v2526_v51 = vpop.f32.mrf.mxu0  ;;  %v4012_v37 = vor.u32 %v4257_v0, %v4009_v4  ;;  %v4004_v4 = vor.u32 %v4255_v18, %v4001_v28  ;;  %v4267_v28 = vld [vmem:[#allocation9 + $0x1b4] sm:$0xf] }
 0x36c   :  { %v2445_v8 = vadd.f32 %v2444_v50, %v2356_v14  ;;  %v2527_v6 = vadd.f32 %v2526_v51, %v5459_v35  ;;  %v2615_v26 = vpop.f32.mrf.mxu1  ;;  %v4273_v51 = vld [vmem:[#allocation9 + $0x1e4] sm:$0xf] }
 0x36d   :  { %2686 = vmatpush.bf16.msra.mxu2 %v4012_v37  ;;  %v3993_v37 = vld [vmem:[#allocation9 + $0x148] sm:$0xf0] }
 0x36e   :  { %vm2877_vm7 = vcmp.gt.f32.partialorder %v2445_v8, 0.0  ;;  %v2941_v32 = vmul.f32 0.2, %v2445_v8  ;;  %v5499_v36 = vadd.f32 %v2615_v26, %v2527_v6  ;;  %2397 = vmatmul.bf16.gmra.mxu2 %v6207_v20  ;;  %2565 = vmatmul.bf16.gmra.mxu0 %v6208_v17 }
 0x36f   :  { %2486 = vmatmul.bf16.gmra.mxu3 %v5390_v10  ;;  %2654 = vmatmul.bf16.gmra.mxu1 %v6209_v19  ;;  %v4076_v10 = vor.u32 %v4273_v51, %v4073_v46  ;;  %v4269_v46 = vld [vmem:[#allocation9 + $0x1c4] sm:$0xf] }
 0x370   :  { %6206 = vst [vmem:[#allocation22_spill] sm:$0xff] %v5499_v36  ;;  %v5507_v14 = vsel %vm2877_vm7, %v2445_v8, %v2941_v32  ;;  %v4271_v8 = vld [vmem:[#allocation9 + $0x1d4] sm:$0xf] }
 0x371   :  { %v2358_v50 = vpop.f32.mrf.mxu2  ;;  %2775 = vmatpush.bf16.msra.mxu3 %v4076_v10  ;;  %v4068_v33 = vor.u32 %v4271_v8, %v4065_v2  ;;  %2687 = vmatpush.bf16.msra.mxu2 %v4004_v4  ;;  %v4251_v2 = vld [vmem:[#allocation9 + $0x134] sm:$0xf] }
 0x372   :  { %v2359_v26 = vadd.f32 %v2358_v50, %v5271_v58  ;;  %v2447_v17 = vpop.f32.mrf.mxu3  ;;  %v4253_v58 = vld [vmem:[#allocation9 + $0x144] sm:$0xf] }
 0x373   :  { %v2528_v20 = vpop.f32.mrf.mxu0 }
 0x374   :  { %v2448_v19 = vadd.f32 %v2447_v17, %v2359_v26  ;;  %v2529_v36 = vadd.f32 %v2528_v20, %v5459_v35  ;;  %v2617_v0 = vpop.f32.mrf.mxu1  ;;  %v3996_v20 = vor.u32 %v4253_v58, %v3993_v37  ;;  %v4057_v26 = vld [vmem:[#allocation9 + $0x1c8] sm:$0xf0]  ;;  %v4049_v37 = vld [vmem:[#allocation9 + $0x1b8] sm:$0xf0] }
 0x375   :  { %2776 = vmatpush.bf16.msra.mxu3 %v4068_v33  ;;  %v4060_v17 = vor.u32 %v4269_v46, %v4057_v26  ;;  %v3985_v33 = vld [vmem:[#allocation9 + $0x138] sm:$0xf0]  ;;  %v6214_v46 = vld [vmem:[#allocation53_spill] sm:$0xff] }
 0x376   :  { %v5513_v32 = vadd.f32 %v2617_v0, %v2529_v36  ;;  %vm2879_vm8 = vcmp.gt.f32.partialorder %v2448_v19, 0.0  ;;  %v2943_v9 = vmul.f32 0.2, %v2448_v19  ;;  %2688 = vmatpush.bf16.msra.mxu2 %v3996_v20  ;;  %v3988_v58 = vor.u32 %v4251_v2, %v3985_v33 }
 0x378   :  { %6210 = vst [vmem:[#allocation46_spill] sm:$0xff] %v5513_v32 }
 0x379   :  { %v2360_v6 = vpop.f32.mrf.mxu2  ;;  %2777 = vmatpush.bf16.msra.mxu3 %v4060_v17  ;;  %v3977_v17 = vld [vmem:[#allocation9 + $0x128] sm:$0xf0] }
 0x37a   :  { %v2361_v50 = vadd.f32 %v2360_v6, %v5295_v39  ;;  %v2449_v51 = vpop.f32.mrf.mxu3  ;;  %v6212_v39 = vld [vmem:[#allocation24_spill] sm:$0xff]  ;;  %2689 = vmatpush.bf16.msra.mxu2 %v3988_v58 }
 0x37b   :  { %v2531_v10 = vpop.f32.mrf.mxu0  ;;  %v6213_v6 = vld [vmem:[#allocation36_spill] sm:$0xff] }
 0x37c   :  { %v2450_v36 = vadd.f32 %v2449_v51, %v2361_v50  ;;  %v2532_v0 = vadd.f32 %v2531_v10, %v5459_v35  ;;  %v2620_v18 = vpop.f32.mrf.mxu1  ;;  %v4052_v50 = vor.u32 %v4267_v28, %v4049_v37  ;;  %v5524_v51 = vsel %vm2879_vm8, %v2448_v19, %v2943_v9  ;;  %v4249_v10 = vld [vmem:[#allocation9 + $0x124] sm:$0xf] }
 0x37e   :  { %vm2881_vm9 = vcmp.gt.f32.partialorder %v2450_v36, 0.0  ;;  %v2945_v8 = vmul.f32 0.2, %v2450_v36  ;;  %v5517_v4 = vadd.f32 %v2620_v18, %v2532_v0  ;;  %2402 = vmatmul.bf16.gmra.mxu2 %v6212_v39  ;;  %2570 = vmatmul.bf16.gmra.mxu0 %v6213_v6  ;;  %v4265_v0 = vld [vmem:[#allocation9 + $0x1a4] sm:$0xf]  ;;  %v3980_v6 = vor.u32 %v4249_v10, %v3977_v17 }
 0x37f   :  { %2491 = vmatmul.bf16.gmra.mxu3 %v5404_v40  ;;  %2659 = vmatmul.bf16.gmra.mxu1 %v6214_v46  ;;  %v4041_v46 = vld [vmem:[#allocation9 + $0x1a8] sm:$0xf0]  ;;  %v4033_v18 = vld [vmem:[#allocation9 + $0x198] sm:$0xf0]  ;;  %v4261_v17 = vld [vmem:[#allocation9 + $0x184] sm:$0xf] }
 0x380   :  { %6211 = vst [vmem:[#allocation50_spill] sm:$0xff] %v5517_v4  ;;  %v5526_v20 = vsel %vm2881_vm9, %v2450_v36, %v2945_v8  ;;  %2778 = vmatpush.bf16.msra.mxu3 %v4052_v50  ;;  %v4044_v58 = vor.u32 %v4265_v0, %v4041_v46  ;;  %2690 = vmatpush.bf16.msra.mxu2 %v3980_v6  ;;  %v4247_v36 = vld [vmem:[#allocation9 + $0x114] sm:$0xf]  ;;  %v3969_v8 = vld [vmem:[#allocation9 + $0x118] sm:$0xf0] }
 0x381   :  { %v2363_v26 = vpop.f32.mrf.mxu2  ;;  %v4263_v50 = vld [vmem:[#allocation9 + $0x194] sm:$0xf]  ;;  %v3972_v39 = vor.u32 %v4247_v36, %v3969_v8  ;;  %v3961_v10 = vld [vmem:[#allocation9 + $0x108] sm:$0xf0] }
 0x382   :  { %v2364_v2 = vadd.f32 %v2363_v26, %v5299_v34  ;;  %v2452_v33 = vpop.f32.mrf.mxu3  ;;  %v4036_v4 = vor.u32 %v4263_v50, %v4033_v18  ;;  %v4245_v26 = vld [vmem:[#allocation9 + $0x104] sm:$0xf]  ;;  %v4025_v6 = vld [vmem:[#allocation9 + $0x188] sm:$0xf0]  ;;  %v6215_v18 = vld [vmem:[#allocation27_spill] sm:$0xff] }
 0x383   :  { %v2533_v28 = vpop.f32.mrf.mxu0 }
 0x384   :  { %v2453_v37 = vadd.f32 %v2452_v33, %v2364_v2  ;;  %v2534_v9 = vadd.f32 %v2533_v28, %v5459_v35  ;;  %v2622_v19 = vpop.f32.mrf.mxu1  ;;  %2779 = vmatpush.bf16.msra.mxu3 %v4044_v58  ;;  %2691 = vmatpush.bf16.msra.mxu2 %v3972_v39  ;;  %v3964_v33 = vor.u32 %v4245_v26, %v3961_v10 }
 0x385   :  { %v4028_v28 = vor.u32 %v4261_v17, %v4025_v6  ;;  %v4283_v17 = vld [vmem:[#allocation11 + $0x30] sm:$0xff] }
 0x386   :  { %v5532_v40 = vadd.f32 %v2622_v19, %v2534_v9  ;;  %v2947_v58 = vmul.f32 0.2, %v2453_v37  ;;  %vm2883_vm10 = vcmp.gt.f32.partialorder %v2453_v37, 0.0 }
 0x388   :  { %2780 = vmatpush.bf16.msra.mxu3 %v4036_v4  ;;  %2692 = vmatpush.bf16.msra.mxu2 %v3964_v33  ;;  %v5542_v36 = vsel %vm2883_vm10, %v2453_v37, %v2947_v58  ;;  %v4282_v33 = vld [vmem:[#allocation11 + $0x28] sm:$0xff] }
 0x389   :  { %v2365_v34 = vpop.f32.mrf.mxu2 }
 0x38a   :  { %v2366_v0 = vadd.f32 %v2365_v34, %v5310_v23  ;;  %v2454_v2 = vpop.f32.mrf.mxu3  ;;  %v4284_v23 = vld [vmem:[#allocation11 + $0x38] sm:$0xff] }
 0x38b   :  { %v2536_v46 = vpop.f32.mrf.mxu0  ;;  %3219 = vmatpush.bf16.msra.mxu0 %v4284_v23 }
 0x38c   :  { %v2455_v32 = vadd.f32 %v2454_v2, %v2366_v0  ;;  %v2537_v9 = vadd.f32 %v2536_v46, %v5459_v35  ;;  %v2625_v19 = vpop.f32.mrf.mxu1  ;;  %2781 = vmatpush.bf16.msra.mxu3 %v4028_v28  ;;  %v4281_v46 = vld [vmem:[#allocation11 + $0x20] sm:$0xff] }
 0x38e   :  { %vm2885_vm11 = vcmp.gt.f32.partialorder %v2455_v32, 0.0  ;;  %v2949_v4 = vmul.f32 0.2, %v2455_v32  ;;  %v5536_v39 = vadd.f32 %v2625_v19, %v2537_v9  ;;  %2407 = vmatmul.bf16.gmra.mxu2 %v5265_v54  ;;  %2575 = vmatmul.bf16.gmra.mxu0 %v6172_v49 }
 0x38f   :  { %2496 = vmatmul.bf16.gmra.mxu3 %v5418_v22  ;;  %2664 = vmatmul.bf16.gmra.mxu1 %v6215_v18  ;;  %v6216_v18 = vld [vmem:[#allocation38_spill] sm:$0xff] }
 0x390   :  { %v5544_v8 = vsel %vm2885_vm11, %v2455_v32, %v2949_v4  ;;  %3220 = vmatpush.bf16.msra.mxu0 %v4283_v17 }
 0x391   :  { %v2368_v50 = vpop.f32.mrf.mxu2 }
 0x392   :  { %v2369_v26 = vadd.f32 %v2368_v50, %v5314_v29  ;;  %v2457_v10 = vpop.f32.mrf.mxu3  ;;  %v4280_v50 = vld [vmem:[#allocation11 + $0x18] sm:$0xff] }
 0x393   :  { %v5549_v0 = vpop.f32.mrf.mxu0 }
 0x394   :  { %v2458_v49 = vadd.f32 %v2457_v10, %v2369_v26  ;;  %v5551_v2 = vpop.f32.mrf.mxu1  ;;  %3221 = vmatpush.bf16.msra.mxu0 %v4282_v33  ;;  %v6223_v33 = vld [vmem:[#allocation18_spill] sm:$0xff] }
 0x396   :  { %v2951_v58 = vmul.f32 0.2, %v2458_v49  ;;  %vm2887_vm12 = vcmp.gt.f32.partialorder %v2458_v49, 0.0 }
 0x398   :  { %3222 = vmatpush.bf16.msra.mxu0 %v4281_v46  ;;  %v5561_v26 = vsel %vm2887_vm12, %v2458_v49, %v2951_v58 }
 0x399   :  { %v2370_v37 = vpop.f32.mrf.mxu2 }
 0x39a   :  { %v2371_v32 = vadd.f32 %v2370_v37, %v5324_v38  ;;  %v2459_v6 = vpop.f32.mrf.mxu3  ;;  %v6217_v38 = vld [vmem:[#allocation28_spill] sm:$0xff] }
 0x39b   :  { %v2541_v28 = vpop.f32.mrf.mxu0 }
 0x39c   :  { %v2460_v9 = vadd.f32 %v2459_v6, %v2371_v32  ;;  %v2542_v29 = vadd.f32 %v2541_v28, %v5459_v35  ;;  %v2630_v19 = vpop.f32.mrf.mxu1  ;;  %3223 = vmatpush.bf16.msra.mxu0 %v4280_v50  ;;  %v4279_v6 = vld [vmem:[#allocation11 + $0x10] sm:$0xff] }
 0x39e   :  { %vm2889_vm13 = vcmp.gt.f32.partialorder %v2460_v9, 0.0  ;;  %v2953_v4 = vmul.f32 0.2, %v2460_v9  ;;  %v5555_v23 = vadd.f32 %v2630_v19, %v2542_v29  ;;  %2412 = vmatmul.bf16.gmra.mxu2 %v5293_v31  ;;  %2580 = vmatmul.bf16.gmra.mxu0 %v6216_v18  ;;  %v4278_v19 = vld [vmem:[#allocation11 + $0x8] sm:$0xff] }
 0x39f   :  { %2501 = vmatmul.bf16.gmra.mxu3 %v5432_v61  ;;  %2669 = vmatmul.bf16.gmra.mxu1 %v6217_v38 }
 0x3a0   :  { %v5563_v10 = vsel %vm2889_vm13, %v2460_v9, %v2953_v4  ;;  %3224 = vmatpush.bf16.msra.mxu0 %v4279_v6  ;;  %v4277_v4 = vld [vmem:[#allocation11] sm:$0xff] }
 0x3a1   :  { %v2373_v17 = vpop.f32.mrf.mxu2 }
 0x3a2   :  { %v2374_v37 = vadd.f32 %v2373_v17, %v5328_v16  ;;  %v2462_v32 = vpop.f32.mrf.mxu3 }
 0x3a3   :  { %v5568_v46 = vpop.f32.mrf.mxu0 }
 0x3a4   :  { %v2463_v28 = vadd.f32 %v2462_v32, %v2374_v37  ;;  %v5570_v29 = vpop.f32.mrf.mxu1  ;;  %3225 = vmatpush.bf16.msra.mxu0 %v4278_v19 }
 0x3a6   :  { %v2955_v50 = vmul.f32 0.2, %v2463_v28  ;;  %vm2891_vm14 = vcmp.gt.f32.partialorder %v2463_v28, 0.0 }
 0x3a8   :  { %3226 = vmatpush.bf16.msra.mxu0 %v4277_v4  ;;  %v5580_v6 = vsel %vm2891_vm14, %v2463_v28, %v2955_v50 }
 0x3a9   :  { %v2375_v49 = vpop.f32.mrf.mxu2 }
 0x3aa   :  { %v2376_v58 = vadd.f32 %v2375_v49, %v5338_v56  ;;  %v2464_v9 = vpop.f32.mrf.mxu3  ;;  %v6218_v56 = vld [vmem:[#allocation33_spill] sm:$0xff] }
 0x3ab   :  { %v2546_v18 = vpop.f32.mrf.mxu0 }
 0x3ac   :  { %v2465_v38 = vadd.f32 %v2464_v9, %v2376_v58  ;;  %v2547_v16 = vadd.f32 %v2546_v18, %v5459_v35  ;;  %v2635_v17 = vpop.f32.mrf.mxu1 }
 0x3ae   :  { %vm2893_vm15 = vcmp.gt.f32.partialorder %v2465_v38, 0.0  ;;  %v2957_v37 = vmul.f32 0.2, %v2465_v38  ;;  %v5574_v32 = vadd.f32 %v2635_v17, %v2547_v16  ;;  %2585 = vmatmul.bf16.gmra.mxu0 %v6176_v60  ;;  %2693 = vmatmul.bf16.vlgmr.msra.gmra.mxu2 %v6177_v62 }
 0x3af   :  { %2674 = vmatmul.bf16.gmra.mxu1 %v5114_v52  ;;  %2782 = vmatmul.bf16.vlgmr.msra.gmra.mxu3 %v6218_v56 }
 0x3b0   :  { %v5582_v19 = vsel %vm2893_vm15, %v2465_v38, %v2957_v37 }
 0x3b1   :  { %v2378_v49 = vpop.f32.mrf.mxu2 }
 0x3b2   :  { %v2379_v9 = vadd.f32 %v2378_v49, %v5342_v21  ;;  %v2467_v4 = vpop.f32.mrf.mxu3  ;;  %v6220_v49 = vld [vmem:[#allocation40_spill] sm:$0xff] }
 0x3b3   :  { %v5587_v18 = vpop.f32.mrf.mxu0 }
 0x3b4   :  { %v2468_v60 = vadd.f32 %v2467_v4, %v2379_v9  ;;  %v5589_v16 = vpop.f32.mrf.mxu1  ;;  %v6221_v9 = vld [vmem:[#allocation49_spill] sm:$0xff]  ;;  %v6222_v4 = vld [vmem:[#allocation31_spill] sm:$0xff] }
 0x3b6   :  { %v2959_v50 = vmul.f32 0.2, %v2468_v60  ;;  %vm2895_vm0 = vcmp.gt.f32.partialorder %v2468_v60, 0.0 }
 0x3b9   :  { %v2380_v62 = vpop.f32.mrf.mxu2 }
 0x3ba   :  { %v2381_v52 = vadd.f32 %v2380_v62, %v5352_v12  ;;  %v2469_v17 = vpop.f32.mrf.mxu3  ;;  %v5599_v12 = vsel %vm2895_vm0, %v2468_v60, %v2959_v50 }
 0x3bb   :  { %v2551_v28 = vpop.f32.mrf.mxu0 }
 0x3bc   :  { %v2470_v38 = vadd.f32 %v2469_v17, %v2381_v52  ;;  %v2552_v37 = vadd.f32 %v2551_v28, %v5459_v35  ;;  %v2640_v56 = vpop.f32.mrf.mxu1 }
 0x3be   :  { %vm2897_vm1 = vcmp.gt.f32.partialorder %v2470_v38, 0.0  ;;  %v2961_v58 = vmul.f32 0.2, %v2470_v38  ;;  %v5593_v21 = vadd.f32 %v2640_v56, %v2552_v37  ;;  %2590 = vmatmul.bf16.gmra.mxu0 %v6220_v49  ;;  %2698 = vmatmul.bf16.gmra.mxu2 %v6221_v9 }
 0x3bf   :  { %2679 = vmatmul.bf16.gmra.mxu1 %v6222_v4  ;;  %2787 = vmatmul.bf16.gmra.mxu3 %v6223_v33 }
 0x3c0   :  { %6219 = vst [vmem:[#allocation55_spill] sm:$0xff] %v5593_v21  ;;  %v5601_v62 = vsel %vm2897_vm1, %v2470_v38, %v2961_v58 }
 0x3c1   :  { %v2383_v52 = vpop.f32.mrf.mxu2 }
 0x3c2   :  { %v2384_v28 = vadd.f32 %v2383_v52, %v5356_v59  ;;  %v2472_v37 = vpop.f32.mrf.mxu3  ;;  %v6224_v52 = vpack.c.bf16 %v5448_v27, %v5446_v25 }
 0x3c3   :  { %v5606_v56 = vpop.f32.mrf.mxu0 }
 0x3c4   :  { %v2473_v49 = vadd.f32 %v2472_v37, %v2384_v28  ;;  %v5608_v34 = vpop.f32.mrf.mxu1  ;;  %v6225_v28 = vld [vmem:[#allocation20_spill] sm:$0xff] }
 0x3c6   :  { %v2963_v50 = vmul.f32 0.2, %v2473_v49  ;;  %vm2899_vm2 = vcmp.gt.f32.partialorder %v2473_v49, 0.0 }
 0x3c9   :  { %v2385_v9 = vpop.f32.mrf.mxu2 }
 0x3ca   :  { %v2386_v4 = vadd.f32 %v2385_v9, %v5366_v5  ;;  %v2474_v33 = vpop.f32.mrf.mxu3  ;;  %v5619_v5 = vsel %vm2899_vm2, %v2473_v49, %v2963_v50 }
 0x3cb   :  { %v2556_v60 = vpop.f32.mrf.mxu0 }
 0x3cc   :  { %v2475_v58 = vadd.f32 %v2474_v33, %v2386_v4  ;;  %v2557_v38 = vadd.f32 %v2556_v60, %v5459_v35  ;;  %v2645_v21 = vpop.f32.mrf.mxu1 }
 0x3ce   :  { %vm2901_vm3 = vcmp.gt.f32.partialorder %v2475_v58, 0.0  ;;  %v2965_v17 = vmul.f32 0.2, %v2475_v58  ;;  %v5612_v59 = vadd.f32 %v2645_v21, %v2557_v38  ;;  %2703 = vmatmul.bf16.gmra.mxu2 %v4988_v1  ;;  %3227 = vmatmul.bf16.vlgmr.msra.gmra.mxu0 %v6224_v52 }
 0x3cf   :  { %2792 = vmatmul.bf16.gmra.mxu3 %v6225_v28 }
 0x3d0   :  { %v5621_v37 = vsel %vm2901_vm3, %v2475_v58, %v2965_v17 }
 0x3d1   :  { %v2388_v9 = vpop.f32.mrf.mxu2 }
 0x3d2   :  { %v2389_v33 = vadd.f32 %v2388_v9, %v5370_v57  ;;  %v2477_v21 = vpop.f32.mrf.mxu3  ;;  %v6226_v9 = vpack.c.bf16 %v5471_v13, %v5469_v30  ;;  %v4292_v30 = vld [vmem:[#allocation11 + $0x78] sm:$0xff] }
 0x3d3   :  { %v5626_v60 = vpop.f32.mrf.mxu0  ;;  %3308 = vmatpush.bf16.msra.mxu1 %v4292_v30 }
 0x3d4   :  { %v2478_v1 = vadd.f32 %v2477_v21, %v2389_v33  ;;  %v5628_v38 = vpop.f32.mrf.mxu1  ;;  %v6227_v33 = vld [vmem:[#allocation23_spill] sm:$0xff] }
 0x3d6   :  { %v2967_v50 = vmul.f32 0.2, %v2478_v1  ;;  %vm2903_vm4 = vcmp.gt.f32.partialorder %v2478_v1, 0.0 }
 0x3d9   :  { %v2390_v25 = vpop.f32.mrf.mxu2 }
 0x3da   :  { %v2391_v27 = vadd.f32 %v2390_v25, %v5380_v43  ;;  %v2479_v52 = vpop.f32.mrf.mxu3  ;;  %v5639_v43 = vsel %vm2903_vm4, %v2478_v1, %v2967_v50 }
 0x3db   :  { %v2561_v49 = vpop.f32.mrf.mxu0 }
 0x3dc   :  { %v2480_v17 = vadd.f32 %v2479_v52, %v2391_v27  ;;  %v2562_v58 = vadd.f32 %v2561_v49, %v5459_v35  ;;  %v2650_v28 = vpop.f32.mrf.mxu1 }
 0x3de   :  { %vm2905_vm5 = vcmp.gt.f32.partialorder %v2480_v17, 0.0  ;;  %v2969_v4 = vmul.f32 0.2, %v2480_v17  ;;  %v5632_v57 = vadd.f32 %v2650_v28, %v2562_v58  ;;  %2708 = vmatmul.bf16.gmra.mxu2 %v5010_v3  ;;  %3232 = vmatmul.bf16.gmra.mxu0 %v6226_v9 }
 0x3df   :  { %2797 = vmatmul.bf16.gmra.mxu3 %v6227_v33 }
 0x3e0   :  { %v5641_v21 = vsel %vm2905_vm5, %v2480_v17, %v2969_v4 }
 0x3e1   :  { %v2393_v25 = vpop.f32.mrf.mxu2 }
 0x3e2   :  { %v2394_v52 = vadd.f32 %v2393_v25, %v5384_v7  ;;  %v2482_v49 = vpop.f32.mrf.mxu3 }
 0x3e3   :  { %v5646_v58 = vpop.f32.mrf.mxu0 }
 0x3e4   :  { %v2483_v3 = vadd.f32 %v2482_v49, %v2394_v52  ;;  %v5648_v28 = vpop.f32.mrf.mxu1  ;;  %v6228_v52 = vpack.c.bf16 %v5489_v42, %v5487_v44  ;;  %v6229_v49 = vld [vmem:[#allocation25_spill] sm:$0xff] }
 0x3e6   :  { %v2971_v17 = vmul.f32 0.2, %v2483_v3  ;;  %vm2907_vm6 = vcmp.gt.f32.partialorder %v2483_v3, 0.0 }
 0x3e9   :  { %v2395_v13 = vpop.f32.mrf.mxu2 }
 0x3ea   :  { %v2396_v1 = vadd.f32 %v2395_v13, %v5394_v53  ;;  %v2484_v50 = vpop.f32.mrf.mxu3  ;;  %v5659_v53 = vsel %vm2907_vm6, %v2483_v3, %v2971_v17 }
 0x3eb   :  { %v2566_v4 = vpop.f32.mrf.mxu0 }
 0x3ec   :  { %v2485_v9 = vadd.f32 %v2484_v50, %v2396_v1  ;;  %v2567_v33 = vadd.f32 %v2566_v4, %v5459_v35  ;;  %v2655_v27 = vpop.f32.mrf.mxu1 }
 0x3ee   :  { %vm2909_vm7 = vcmp.gt.f32.partialorder %v2485_v9, 0.0  ;;  %v2973_v7 = vmul.f32 0.2, %v2485_v9  ;;  %v5652_v25 = vadd.f32 %v2655_v27, %v2567_v33  ;;  %2713 = vmatmul.bf16.gmra.mxu2 %v5032_v24  ;;  %3237 = vmatmul.bf16.gmra.mxu0 %v6228_v52 }
 0x3ef   :  { %2802 = vmatmul.bf16.gmra.mxu3 %v6229_v49 }
 0x3f0   :  { %v5661_v30 = vsel %vm2909_vm7, %v2485_v9, %v2973_v7 }
 0x3f1   :  { %v2398_v13 = vpop.f32.mrf.mxu2 }
 0x3f2   :  { %v2399_v50 = vadd.f32 %v2398_v13, %v5398_v11  ;;  %v2487_v27 = vpop.f32.mrf.mxu3  ;;  %v6231_v13 = vpack.c.bf16 %v5507_v14, %v5505_v55  ;;  %v4291_v55 = vld [vmem:[#allocation11 + $0x70] sm:$0xff] }
 0x3f3   :  { %v5666_v4 = vpop.f32.mrf.mxu0  ;;  %3309 = vmatpush.bf16.msra.mxu1 %v4291_v55  ;;  %v4289_v55 = vld [vmem:[#allocation11 + $0x60] sm:$0xff] }
 0x3f4   :  { %v2488_v24 = vadd.f32 %v2487_v27, %v2399_v50  ;;  %v5668_v33 = vpop.f32.mrf.mxu1  ;;  %v6232_v50 = vld [vmem:[#allocation26_spill] sm:$0xff] }
 0x3f6   :  { %v2975_v17 = vmul.f32 0.2, %v2488_v24  ;;  %vm2911_vm8 = vcmp.gt.f32.partialorder %v2488_v24, 0.0 }
 0x3f9   :  { %v2400_v44 = vpop.f32.mrf.mxu2 }
 0x3fa   :  { %v2401_v42 = vadd.f32 %v2400_v44, %v5408_v47  ;;  %v2489_v52 = vpop.f32.mrf.mxu3  ;;  %v5679_v47 = vsel %vm2911_vm8, %v2488_v24, %v2975_v17 }
 0x3fb   :  { %v2571_v3 = vpop.f32.mrf.mxu0 }
 0x3fc   :  { %v2490_v9 = vadd.f32 %v2489_v52, %v2401_v42  ;;  %v2572_v7 = vadd.f32 %v2571_v3, %v5459_v35  ;;  %v2660_v49 = vpop.f32.mrf.mxu1 }
 0x3fe   :  { %vm2913_vm9 = vcmp.gt.f32.partialorder %v2490_v9, 0.0  ;;  %v2977_v1 = vmul.f32 0.2, %v2490_v9  ;;  %v5672_v11 = vadd.f32 %v2660_v49, %v2572_v7  ;;  %2718 = vmatmul.bf16.gmra.mxu2 %v5054_v41  ;;  %3242 = vmatmul.bf16.gmra.mxu0 %v6231_v13 }
 0x3ff   :  { %2807 = vmatmul.bf16.gmra.mxu3 %v6232_v50 }
 0x400   :  { %6230 = vst [vmem:[#allocation34_spill] sm:$0xff] %v5672_v11  ;;  %v5681_v27 = vsel %vm2913_vm9, %v2490_v9, %v2977_v1  ;;  %v4290_v9 = vld [vmem:[#allocation11 + $0x68] sm:$0xff] }
 0x401   :  { %v2403_v44 = vpop.f32.mrf.mxu2  ;;  %3310 = vmatpush.bf16.msra.mxu1 %v4290_v9 }
 0x402   :  { %v2404_v52 = vadd.f32 %v2403_v44, %v5412_v15  ;;  %v2492_v3 = vpop.f32.mrf.mxu3 }
 0x403   :  { %v5686_v7 = vpop.f32.mrf.mxu0 }
 0x404   :  { %6233 = vst [vmem:[#allocation51_spill] sm:$0xff] %v5686_v7  ;;  %v2493_v41 = vadd.f32 %v2492_v3, %v2404_v52  ;;  %v5688_v49 = vpop.f32.mrf.mxu1  ;;  %v6236_v52 = vld [vmem:[#allocation54_spill] sm:$0xff]  ;;  %v6237_v3 = vpack.c.bf16 %v5526_v20, %v5524_v51 }
 0x405   :  { %6234 = vst [vmem:[#allocation35_spill] sm:$0xff] %v5688_v49  ;;  %3311 = vmatpush.bf16.msra.mxu1 %v4289_v55 }
 0x406   :  { %v2979_v13 = vmul.f32 0.2, %v2493_v41  ;;  %vm2915_vm10 = vcmp.gt.f32.partialorder %v2493_v41, 0.0 }
 0x409   :  { %v2405_v14 = vpop.f32.mrf.mxu2 }
 0x40a   :  { %v2406_v24 = vadd.f32 %v2405_v14, %v5422_v63  ;;  %v2494_v17 = vpop.f32.mrf.mxu3  ;;  %v6238_v63 = vld [vmem:[#allocation37_spill] sm:$0xff]  ;;  %v5699_v14 = vsel %vm2915_vm10, %v2493_v41, %v2979_v13 }
 0x40b   :  { %v2576_v1 = vpop.f32.mrf.mxu0 }
 0x40c   :  { %v2495_v50 = vadd.f32 %v2494_v17, %v2406_v24  ;;  %v2577_v42 = vadd.f32 %v2576_v1, %v5459_v35  ;;  %v2665_v11 = vpop.f32.mrf.mxu1 }
 0x40e   :  { %vm2917_vm11 = vcmp.gt.f32.partialorder %v2495_v50, 0.0  ;;  %v2981_v15 = vmul.f32 0.2, %v2495_v50  ;;  %v5692_v44 = vadd.f32 %v2665_v11, %v2577_v42  ;;  %2723 = vmatmul.bf16.gmra.mxu2 %v6236_v52  ;;  %3247 = vmatmul.bf16.gmra.mxu0 %v6237_v3  ;;  %v4288_v52 = vld [vmem:[#allocation11 + $0x58] sm:$0xff]  ;;  %v4287_v3 = vld [vmem:[#allocation11 + $0x50] sm:$0xff] }
 0x40f   :  { %2812 = vmatmul.bf16.gmra.mxu3 %v6238_v63  ;;  %3312 = vmatpush.bf16.msra.mxu1 %v4288_v52  ;;  %v4286_v63 = vld [vmem:[#allocation11 + $0x48] sm:$0xff] }
 0x410   :  { %6235 = vst [vmem:[#allocation52_spill] sm:$0xff] %v5692_v44  ;;  %v5701_v24 = vsel %vm2917_vm11, %v2495_v50, %v2981_v15  ;;  %v6242_v52 = vld [vmem:[#allocation29_spill] sm:$0xff] }
 0x411   :  { %v2408_v17 = vpop.f32.mrf.mxu2 }
 0x412   :  { %v2409_v11 = vadd.f32 %v2408_v17, %v5426_v45  ;;  %v2497_v42 = vpop.f32.mrf.mxu3 }
 0x413   :  { %v5706_v9 = vpop.f32.mrf.mxu0  ;;  %3313 = vmatpush.bf16.msra.mxu1 %v4287_v3  ;;  %v6243_v3 = vpack.c.bf16 %v5544_v8, %v5542_v36 }
 0x414   :  { %6239 = vst [vmem:[#allocation36_spill] sm:$0xff] %v5706_v9  ;;  %v2498_v51 = vadd.f32 %v2497_v42, %v2409_v11  ;;  %v5708_v20 = vpop.f32.mrf.mxu1 }
 0x415   :  { %6240 = vst [vmem:[#allocation53_spill] sm:$0xff] %v5708_v20 }
 0x416   :  { %v2983_v55 = vmul.f32 0.2, %v2498_v51  ;;  %vm2919_vm12 = vcmp.gt.f32.partialorder %v2498_v51, 0.0 }
 0x417   :  { %3314 = vmatpush.bf16.msra.mxu1 %v4286_v63  ;;  %v6245_v63 = vld [vmem:[#allocation42_spill] sm:$0xff] }
 0x418   :  { %v5719_v20 = vsel %vm2919_vm12, %v2498_v51, %v2983_v55 }
 0x419   :  { %v2410_v41 = vpop.f32.mrf.mxu2 }
 0x41a   :  { %v2411_v13 = vadd.f32 %v2410_v41, %v5436_v48  ;;  %v2499_v50 = vpop.f32.mrf.mxu3  ;;  %v6244_v48 = vld [vmem:[#allocation39_spill] sm:$0xff]  ;;  %v4285_v41 = vld [vmem:[#allocation11 + $0x40] sm:$0xff] }
 0x41b   :  { %v2581_v15 = vpop.f32.mrf.mxu0  ;;  %3315 = vmatpush.bf16.msra.mxu1 %v4285_v41 }
 0x41c   :  { %v2500_v1 = vadd.f32 %v2499_v50, %v2411_v13  ;;  %v2582_v45 = vadd.f32 %v2581_v15, %v5459_v35  ;;  %v2670_v17 = vpop.f32.mrf.mxu1 }
 0x41e   :  { %vm2921_vm13 = vcmp.gt.f32.partialorder %v2500_v1, 0.0  ;;  %v2985_v11 = vmul.f32 0.2, %v2500_v1  ;;  %v5712_v42 = vadd.f32 %v2670_v17, %v2582_v45  ;;  %2728 = vmatmul.bf16.gmra.mxu2 %v6242_v52  ;;  %3252 = vmatmul.bf16.gmra.mxu0 %v6243_v3  ;;  %v6248_v3 = vld [vmem:[#allocation45_spill] sm:$0xff] }
 0x41f   :  { %2817 = vmatmul.bf16.gmra.mxu3 %v6244_v48 }
 0x420   :  { %6241 = vst [vmem:[#allocation27_spill] sm:$0xff] %v5712_v42  ;;  %v5721_v13 = vsel %vm2921_vm13, %v2500_v1, %v2985_v11 }
 0x421   :  { %v2413_v50 = vpop.f32.mrf.mxu2 }
 0x422   :  { %v2414_v45 = vadd.f32 %v2413_v50, %v6245_v63  ;;  %v2502_v17 = vpop.f32.mrf.mxu3  ;;  %v6250_v63 = vld [vmem:[#allocation30_spill] sm:$0xff] }
 0x423   :  { %v5726_v52 = vpop.f32.mrf.mxu0 }
 0x424   :  { %6246 = vst [vmem:[#allocation38_spill] sm:$0xff] %v5726_v52  ;;  %v2503_v42 = vadd.f32 %v2502_v17, %v2414_v45  ;;  %v5728_v36 = vpop.f32.mrf.mxu1  ;;  %v6251_v45 = vpack.c.bf16 %v5563_v10, %v5561_v26  ;;  %v6252_v17 = vld [vmem:[#allocation41_spill] sm:$0xff]  ;;  %v6256_v10 = vld [vmem:[#allocation47_spill] sm:$0xff] }
 0x425   :  { %6247 = vst [vmem:[#allocation28_spill] sm:$0xff] %v5728_v36 }
 0x426   :  { %v2987_v1 = vmul.f32 0.2, %v2503_v42  ;;  %vm2923_vm14 = vcmp.gt.f32.partialorder %v2503_v42, 0.0 }
 0x429   :  { %v2415_v8 = vpop.f32.mrf.mxu2 }
 0x42a   :  { %v2416_v48 = vadd.f32 %v2415_v8, %v6248_v3  ;;  %v2504_v51 = vpop.f32.mrf.mxu3  ;;  %v5739_v8 = vsel %vm2923_vm14, %v2503_v42, %v2987_v1 }
 0x42b   :  { %v2586_v55 = vpop.f32.mrf.mxu0 }
 0x42c   :  { %v2505_v11 = vadd.f32 %v2504_v51, %v2416_v48  ;;  %v2587_v41 = vadd.f32 %v2586_v55, %v5459_v35  ;;  %v2675_v44 = vpop.f32.mrf.mxu1 }
 0x42e   :  { %vm2925_vm15 = vcmp.gt.f32.partialorder %v2505_v11, 0.0  ;;  %v2989_v15 = vmul.f32 0.2, %v2505_v11  ;;  %v5732_v50 = vadd.f32 %v2675_v44, %v2587_v41  ;;  %2733 = vmatmul.bf16.gmra.mxu2 %v6250_v63  ;;  %3257 = vmatmul.bf16.gmra.mxu0 %v6251_v45  ;;  %v6254_v44 = vld [vmem:[#allocation43_spill] sm:$0xff] }
 0x42f   :  { %2822 = vmatmul.bf16.gmra.mxu3 %v6252_v17 }
 0x430   :  { %6249 = vst [vmem:[#allocation33_spill] sm:$0xff] %v5732_v50  ;;  %v5741_v3 = vsel %vm2925_vm15, %v2505_v11, %v2989_v15 }
 0x431   :  { %v2694_v48 = vpop.f32.mrf.mxu2 }
 0x432   :  { %v2783_v55 = vpop.f32.mrf.mxu3  ;;  %v2695_v41 = vadd.f32 %v2694_v48, %v6254_v44  ;;  %v6259_v48 = vpack.c.bf16 %v5582_v19, %v5580_v6  ;;  %v6263_v19 = vld [vmem:[#allocation17_spill] sm:$0xff] }
 0x433   :  { %v5745_v36 = vpop.f32.mrf.mxu0 }
 0x434   :  { %6253 = vst [vmem:[#allocation40_spill] sm:$0xff] %v5745_v36  ;;  %v5748_v63 = vpop.f32.mrf.mxu1  ;;  %v2784_v50 = vadd.f32 %v2783_v55, %v2695_v41  ;;  %v6258_v36 = vld [vmem:[#allocation32_spill] sm:$0xff] }
 0x435   :  { %6255 = vst [vmem:[#allocation49_spill] sm:$0xff] %v5748_v63  ;;  %v6260_v55 = vld [vmem:[#allocation56_spill] sm:$0xff] }
 0x436   :  { %v2928_v1 = vmul.f32 0.2, %v2784_v50  ;;  %vm2864_vm0 = vcmp.gt.f32.partialorder %v2784_v50, 0.0 }
 0x438   :  { %v2992_v44 = vsel %vm2864_vm0, %v2784_v50, %v2928_v1  ;;  %v6264_v50 = vpack.c.bf16 %v5601_v62, %v5599_v12  ;;  %v6268_v62 = vld [vmem:[#allocation19_spill] sm:$0xff] }
 0x439   :  { %v2696_v26 = vpop.f32.mrf.mxu2 }
 0x43a   :  { %v2697_v45 = vadd.f32 %v2696_v26, %v6256_v10  ;;  %v2785_v17 = vpop.f32.mrf.mxu3 }
 0x43b   :  { %v2591_v42 = vpop.f32.mrf.mxu0 }
 0x43c   :  { %v2786_v15 = vadd.f32 %v2785_v17, %v2697_v45  ;;  %v2592_v11 = vadd.f32 %v2591_v42, %v5459_v35  ;;  %v2680_v52 = vpop.f32.mrf.mxu1  ;;  %v6261_v17 = vld [vmem:[#allocation44_spill] sm:$0xff] }
 0x43e   :  { %vm2866_vm1 = vcmp.gt.f32.partialorder %v2786_v15, 0.0  ;;  %v2930_v51 = vmul.f32 0.2, %v2786_v15  ;;  %v5752_v9 = vadd.f32 %v2680_v52, %v2592_v11  ;;  %2738 = vmatmul.bf16.gmra.mxu2 %v6258_v36  ;;  %3262 = vmatmul.bf16.gmra.mxu0 %v6259_v48  ;;  %v6262_v52 = vld [vmem:[#allocation48_spill] sm:$0xff] }
 0x43f   :  { %2827 = vmatmul.bf16.gmra.mxu3 %v6260_v55 }
 0x440   :  { %6257 = vst [vmem:[#allocation31_spill] sm:$0xff] %v5752_v9  ;;  %v2994_v41 = vsel %vm2866_vm1, %v2786_v15, %v2930_v51  ;;  %v6265_v51 = vld [vmem:[#allocation57_spill] sm:$0xff] }
 0x441   :  { %v3056_v26 = vpack.c.bf16 %v2994_v41, %v2992_v44  ;;  %v2699_v10 = vpop.f32.mrf.mxu2 }
 0x442   :  { %v2788_v45 = vpop.f32.mrf.mxu3  ;;  %v2700_v42 = vadd.f32 %v2699_v10, %v6261_v17  ;;  %v6267_v10 = vld [vmem:[#allocation46_spill] sm:$0xff] }
 0x443   :  { %3316 = vmatmul.bf16.vlgmr.msra.gmra.mxu1 %v3056_v26 }
 0x444   :  { %v2789_v63 = vadd.f32 %v2788_v45, %v2700_v42 }
 0x446   :  { %v2932_v36 = vmul.f32 0.2, %v2789_v63  ;;  %vm2868_vm2 = vcmp.gt.f32.partialorder %v2789_v63, 0.0 }
 0x448   :  { %v2996_v1 = vsel %vm2868_vm2, %v2789_v63, %v2932_v36  ;;  %v6270_v63 = vld [vmem:[#allocation58_spill] sm:$0xff] }
 0x449   :  { %v2701_v49 = vpop.f32.mrf.mxu2 }
 0x44a   :  { %v2702_v11 = vadd.f32 %v2701_v49, %v6262_v52  ;;  %v2790_v9 = vpop.f32.mrf.mxu3  ;;  %v6266_v49 = vld [vmem:[#allocation22_spill] sm:$0xff] }
 0x44c   :  { %v2791_v7 = vadd.f32 %v2790_v9, %v2702_v11 }
 0x44e   :  { %vm2870_vm3 = vcmp.gt.f32.partialorder %v2791_v7, 0.0  ;;  %v2934_v6 = vmul.f32 0.2, %v2791_v7  ;;  %2743 = vmatmul.bf16.gmra.mxu2 %v6263_v19  ;;  %3267 = vmatmul.bf16.gmra.mxu0 %v6264_v50 }
 0x44f   :  { %2832 = vmatmul.bf16.gmra.mxu3 %v6265_v51  ;;  %v6271_v51 = vld [vmem:[#allocation50_spill] sm:$0xff] }
 0x450   :  { %v2998_v15 = vsel %vm2870_vm3, %v2791_v7, %v2934_v6  ;;  %v6269_v7 = vpack.c.bf16 %v5621_v37, %v5619_v5  ;;  %v5775_v5 = vpop.f32.mrf.mxu0 }
 0x451   :  { %v2704_v48 = vpop.f32.mrf.mxu2  ;;  %v3058_v55 = vpack.c.bf16 %v2998_v15, %v2996_v1 }
 0x452   :  { %v2793_v44 = vpop.f32.mrf.mxu3  ;;  %v2705_v41 = vadd.f32 %v2704_v48, %v6266_v49 }
 0x453   :  { %3321 = vmatmul.bf16.gmra.mxu1 %v3058_v55 }
 0x454   :  { %v2794_v9 = vadd.f32 %v2793_v44, %v2705_v41 }
 0x456   :  { %v2936_v42 = vmul.f32 0.2, %v2794_v9  ;;  %vm2872_vm4 = vcmp.gt.f32.partialorder %v2794_v9, 0.0 }
 0x458   :  { %v3000_v11 = vsel %vm2872_vm4, %v2794_v9, %v2936_v42  ;;  %v6272_v9 = vld [vmem:[#allocation21_spill] sm:$0xff] }
 0x459   :  { %v2706_v26 = vpop.f32.mrf.mxu2 }
 0x45a   :  { %v2707_v45 = vadd.f32 %v2706_v26, %v6267_v10  ;;  %v2795_v17 = vpop.f32.mrf.mxu3  ;;  %v6273_v26 = vpack.c.bf16 %v5641_v21, %v5639_v43  ;;  %v6274_v10 = vld [vmem:[#allocation59_spill] sm:$0xff] }
 0x45c   :  { %v2796_v52 = vadd.f32 %v2795_v17, %v2707_v45 }
 0x45e   :  { %vm2874_vm5 = vcmp.gt.f32.partialorder %v2796_v52, 0.0  ;;  %v2938_v12 = vmul.f32 0.2, %v2796_v52  ;;  %2748 = vmatmul.bf16.gmra.mxu2 %v6268_v62  ;;  %3272 = vmatmul.bf16.gmra.mxu0 %v6269_v7 }
 0x45f   :  { %2837 = vmatmul.bf16.gmra.mxu3 %v6270_v63  ;;  %v5786_v63 = vpop.f32.mrf.mxu0 }
 0x460   :  { %v3002_v36 = vsel %vm2874_vm5, %v2796_v52, %v2938_v12  ;;  %v2539_v12 = vadd.f32 %v5549_v0, %v5459_v35  ;;  %v6276_v0 = vpack.c.bf16 %v5661_v30, %v5659_v53 }
 0x461   :  { %v2709_v6 = vpop.f32.mrf.mxu2  ;;  %v3060_v19 = vpack.c.bf16 %v3002_v36, %v3000_v11 }
 0x462   :  { %v2798_v50 = vpop.f32.mrf.mxu3  ;;  %v2710_v1 = vadd.f32 %v2709_v6, %v6271_v51  ;;  %v2628_v7 = vadd.f32 %v5551_v2, %v2539_v12  ;;  %v6275_v51 = vld [vmem:[#allocation24_spill] sm:$0xff] }
 0x463   :  { %3326 = vmatmul.bf16.gmra.mxu1 %v3060_v19 }
 0x464   :  { %v2799_v15 = vadd.f32 %v2798_v50, %v2710_v1 }
 0x466   :  { %v2940_v49 = vmul.f32 0.2, %v2799_v15  ;;  %vm2876_vm6 = vcmp.gt.f32.partialorder %v2799_v15, 0.0 }
 0x468   :  { %v3004_v45 = vsel %vm2876_vm6, %v2799_v15, %v2940_v49  ;;  %v2544_v49 = vadd.f32 %v5568_v46, %v5459_v35  ;;  %v6278_v46 = vpack.c.bf16 %v5681_v27, %v5679_v47 }
 0x469   :  { %v2711_v48 = vpop.f32.mrf.mxu2 }
 0x46a   :  { %v2712_v55 = vadd.f32 %v2711_v48, %v5532_v40  ;;  %v2800_v44 = vpop.f32.mrf.mxu3 }
 0x46c   :  { %v2801_v41 = vadd.f32 %v2800_v44, %v2712_v55  ;;  %v5793_v55 = vpop.f32.mrf.mxu0 }
 0x46e   :  { %vm2878_vm7 = vcmp.gt.f32.partialorder %v2801_v41, 0.0  ;;  %v2942_v37 = vmul.f32 0.2, %v2801_v41  ;;  %2753 = vmatmul.bf16.gmra.mxu2 %v6272_v9  ;;  %3277 = vmatmul.bf16.gmra.mxu0 %v6273_v26 }
 0x46f   :  { %2842 = vmatmul.bf16.gmra.mxu3 %v6274_v10 }
 0x470   :  { %v3006_v17 = vsel %vm2878_vm7, %v2801_v41, %v2942_v37  ;;  %v2633_v37 = vadd.f32 %v5570_v29, %v2544_v49 }
 0x471   :  { %v2714_v42 = vpop.f32.mrf.mxu2  ;;  %v3062_v40 = vpack.c.bf16 %v3006_v17, %v3004_v45 }
 0x472   :  { %v2803_v52 = vpop.f32.mrf.mxu3  ;;  %v2715_v62 = vadd.f32 %v2714_v42, %v5536_v39  ;;  %v6277_v39 = vld [vmem:[#allocation60_spill] sm:$0xff] }
 0x473   :  { %3331 = vmatmul.bf16.gmra.mxu1 %v3062_v40 }
 0x474   :  { %v2804_v11 = vadd.f32 %v2803_v52, %v2715_v62  ;;  %v5799_v10 = vpop.f32.mrf.mxu0  ;;  %v2549_v62 = vadd.f32 %v5587_v18, %v5459_v35  ;;  %v6279_v18 = vpack.c.bf16 %v5701_v24, %v5699_v14 }
 0x476   :  { %v2944_v6 = vmul.f32 0.2, %v2804_v11  ;;  %vm2880_vm8 = vcmp.gt.f32.partialorder %v2804_v11, 0.0 }
 0x478   :  { %v3008_v2 = vsel %vm2880_vm8, %v2804_v11, %v2944_v6 }
 0x479   :  { %v2716_v43 = vpop.f32.mrf.mxu2 }
 0x47a   :  { %v2717_v21 = vadd.f32 %v2716_v43, %v2628_v7  ;;  %v2805_v36 = vpop.f32.mrf.mxu3 }
 0x47c   :  { %v2806_v19 = vadd.f32 %v2805_v36, %v2717_v21  ;;  %v5809_v11 = vpop.f32.mrf.mxu0 }
 0x47e   :  { %vm2882_vm9 = vcmp.gt.f32.partialorder %v2806_v19, 0.0  ;;  %v2946_v50 = vmul.f32 0.2, %v2806_v19  ;;  %2758 = vmatmul.bf16.gmra.mxu2 %v6275_v51  ;;  %3282 = vmatmul.bf16.gmra.mxu0 %v6276_v0 }
 0x47f   :  { %2847 = vmatmul.bf16.gmra.mxu3 %v6277_v39  ;;  %v2554_v39 = vadd.f32 %v5606_v56, %v5459_v35 }
 0x480   :  { %v3010_v1 = vsel %vm2882_vm9, %v2806_v19, %v2946_v50 }
 0x481   :  { %v2719_v15 = vpop.f32.mrf.mxu2  ;;  %v3064_v48 = vpack.c.bf16 %v3010_v1, %v3008_v2  ;;  %v6280_v2 = vld [vmem:[#allocation55_spill] sm:$0xff] }
 0x482   :  { %v2808_v44 = vpop.f32.mrf.mxu3  ;;  %v2720_v41 = vadd.f32 %v2719_v15, %v5555_v23 }
 0x483   :  { %3336 = vmatmul.bf16.gmra.mxu1 %v3064_v48 }
 0x484   :  { %v2809_v9 = vadd.f32 %v2808_v44, %v2720_v41 }
 0x486   :  { %v2948_v45 = vmul.f32 0.2, %v2809_v9  ;;  %vm2884_vm10 = vcmp.gt.f32.partialorder %v2809_v9, 0.0 }
 0x488   :  { %v3012_v23 = vsel %vm2884_vm10, %v2809_v9, %v2948_v45 }
 0x489   :  { %v2721_v53 = vpop.f32.mrf.mxu2 }
 0x48a   :  { %v2722_v30 = vadd.f32 %v2721_v53, %v2633_v37  ;;  %v2810_v26 = vpop.f32.mrf.mxu3  ;;  %v6281_v37 = vpack.c.bf16 %v5721_v13, %v5719_v20 }
 0x48c   :  { %v2811_v17 = vadd.f32 %v2810_v26, %v2722_v30  ;;  %v2559_v26 = vadd.f32 %v5626_v60, %v5459_v35 }
 0x48e   :  { %vm2886_vm11 = vcmp.gt.f32.partialorder %v2811_v17, 0.0  ;;  %v2950_v42 = vmul.f32 0.2, %v2811_v17  ;;  %2763 = vmatmul.bf16.gmra.mxu2 %v5265_v54  ;;  %3287 = vmatmul.bf16.gmra.mxu0 %v6278_v46  ;;  %v2638_v54 = vadd.f32 %v5589_v16, %v2549_v62  ;;  %v5834_v46 = vpop.f32.mrf.mxu1 }
 0x48f   :  { %2852 = vmatmul.bf16.gmra.mxu3 %v5418_v22 }
 0x490   :  { %v3014_v29 = vsel %vm2886_vm11, %v2811_v17, %v2950_v42  ;;  %v2648_v42 = vadd.f32 %v5628_v38, %v2559_v26  ;;  %v6282_v38 = vpack.c.bf16 %v5741_v3, %v5739_v8 }
 0x491   :  { %v2724_v40 = vpop.f32.mrf.mxu2  ;;  %v3066_v52 = vpack.c.bf16 %v3014_v29, %v3012_v23 }
 0x492   :  { %v2813_v12 = vpop.f32.mrf.mxu3  ;;  %v2725_v7 = vadd.f32 %v2724_v40, %v5574_v32  ;;  %v5817_v32 = vpop.f32.mrf.mxu0  ;;  %v5839_v40 = vld [vmem:[%s6031_s6] ss:$0 sm:$0xff] }
 0x493   :  { %3341 = vmatmul.bf16.gmra.mxu1 %v3066_v52  ;;  %v3229_v62 = vadd.f32 %v5839_v40, %v5786_v63  ;;  %v3231_v8 = vadd.f32 %v5839_v40, %v5793_v55 }
 0x494   :  { %v2814_v43 = vadd.f32 %v2813_v12, %v2725_v7 }
 0x496   :  { %v2952_v22 = vmul.f32 0.2, %v2814_v43  ;;  %vm2888_vm12 = vcmp.gt.f32.partialorder %v2814_v43, 0.0 }
 0x498   :  { %v3016_v16 = vsel %vm2888_vm12, %v2814_v43, %v2952_v22 }
 0x499   :  { %v2726_v47 = vpop.f32.mrf.mxu2 }
 0x49a   :  { %v2727_v27 = vadd.f32 %v2726_v47, %v2638_v54  ;;  %v2815_v21 = vpop.f32.mrf.mxu3  ;;  %v5823_v24 = vpop.f32.mrf.mxu0 }
 0x49c   :  { %v2816_v36 = vadd.f32 %v2815_v21, %v2727_v27 }
 0x49e   :  { %vm2890_vm13 = vcmp.gt.f32.partialorder %v2816_v36, 0.0  ;;  %v2954_v6 = vmul.f32 0.2, %v2816_v36  ;;  %2768 = vmatmul.bf16.gmra.mxu2 %v5293_v31  ;;  %3292 = vmatmul.bf16.gmra.mxu0 %v6279_v18  ;;  %v2643_v31 = vadd.f32 %v5608_v34, %v2554_v39 }
 0x49f   :  { %2857 = vmatmul.bf16.gmra.mxu3 %v5432_v61 }
 0x4a0   :  { %v3018_v19 = vsel %vm2890_vm13, %v2816_v36, %v2954_v6  ;;  %v2564_v36 = vadd.f32 %v5646_v58, %v5459_v35 }
 0x4a1   :  { %v2729_v50 = vpop.f32.mrf.mxu2  ;;  %v3068_v51 = vpack.c.bf16 %v3018_v19, %v3016_v16 }
 0x4a2   :  { %v2818_v0 = vpop.f32.mrf.mxu3  ;;  %v2730_v1 = vadd.f32 %v2729_v50, %v6280_v2  ;;  %v5830_v45 = vpop.f32.mrf.mxu0  ;;  %v2653_v3 = vadd.f32 %v5648_v28, %v2564_v36 }
 0x4a3   :  { %3346 = vmatmul.bf16.gmra.mxu1 %v3068_v51 }
 0x4a4   :  { %v2819_v15 = vadd.f32 %v2818_v0, %v2730_v1 }
 0x4a6   :  { %v2956_v44 = vmul.f32 0.2, %v2819_v15  ;;  %vm2892_vm14 = vcmp.gt.f32.partialorder %v2819_v15, 0.0 }
 0x4a8   :  { %v3020_v56 = vsel %vm2892_vm14, %v2819_v15, %v2956_v44  ;;  %v3234_v15 = vadd.f32 %v5839_v40, %v5799_v10 }
 0x4a9   :  { %v2731_v14 = vpop.f32.mrf.mxu2 }
 0x4aa   :  { %v2732_v61 = vadd.f32 %v2731_v14, %v2643_v31  ;;  %v2820_v48 = vpop.f32.mrf.mxu3  ;;  %v5841_v60 = vpop.f32.mrf.mxu0 }
 0x4ac   :  { %v2821_v49 = vadd.f32 %v2820_v48, %v2732_v61 }
 0x4ae   :  { %vm2894_vm15 = vcmp.gt.f32.partialorder %v2821_v49, 0.0  ;;  %v2958_v41 = vmul.f32 0.2, %v2821_v49  ;;  %3297 = vmatmul.bf16.gmra.mxu0 %v6281_v37 }
 0x4b0   :  { %v3022_v9 = vsel %vm2894_vm15, %v2821_v49, %v2958_v41 }
 0x4b1   :  { %v2734_v53 = vpop.f32.mrf.mxu2  ;;  %v3070_v30 = vpack.c.bf16 %v3022_v9, %v3020_v56  ;;  %v2569_v56 = vadd.f32 %v5666_v4, %v5459_v35 }
 0x4b2   :  { %v2823_v34 = vpop.f32.mrf.mxu3  ;;  %v2735_v17 = vadd.f32 %v2734_v53, %v5612_v59  ;;  %v5858_v55 = vpop.f32.mrf.mxu0  ;;  %v3236_v53 = vadd.f32 %v5839_v40, %v5809_v11 }
 0x4b3   :  { %3351 = vmatmul.bf16.gmra.mxu1 %v3070_v30  ;;  %v2658_v30 = vadd.f32 %v5668_v33, %v2569_v56 }
 0x4b4   :  { %v2824_v23 = vadd.f32 %v2823_v34, %v2735_v17 }
 0x4b6   :  { %v2960_v52 = vmul.f32 0.2, %v2824_v23  ;;  %vm2896_vm0 = vcmp.gt.f32.partialorder %v2824_v23, 0.0 }
 0x4b8   :  { %v3024_v54 = vsel %vm2896_vm0, %v2824_v23, %v2960_v52 }
 0x4b9   :  { %v2736_v20 = vpop.f32.mrf.mxu2 }
 0x4ba   :  { %v2737_v13 = vadd.f32 %v2736_v20, %v2648_v42  ;;  %v2825_v29 = vpop.f32.mrf.mxu3  ;;  %v5870_v34 = vpop.f32.mrf.mxu0 }
 0x4bc   :  { %v2826_v12 = vadd.f32 %v2825_v29, %v2737_v13 }
 0x4be   :  { %vm2898_vm1 = vcmp.gt.f32.partialorder %v2826_v12, 0.0  ;;  %v2962_v59 = vmul.f32 0.2, %v2826_v12  ;;  %3302 = vmatmul.bf16.gmra.mxu0 %v6282_v38 }
 0x4c0   :  { %v3317_v7 = vpop.f32.mrf.mxu1  ;;  %v3026_v43 = vsel %vm2898_vm1, %v2826_v12, %v2962_v59  ;;  %v3239_v59 = vadd.f32 %v5839_v40, %v5817_v32 }
 0x4c1   :  { %v3318_v47 = vadd.f32 %v3317_v7, %v3229_v62  ;;  %v2739_v27 = vpop.f32.mrf.mxu2  ;;  %v3072_v21 = vpack.c.bf16 %v3026_v43, %v3024_v54 }
 0x4c2   :  { %v2828_v22 = vpop.f32.mrf.mxu3  ;;  %v2740_v6 = vadd.f32 %v2739_v27, %v5632_v57  ;;  %v5880_v27 = vpop.f32.mrf.mxu0 }
 0x4c3   :  { %3356 = vmatmul.bf16.gmra.mxu1 %v3072_v21  ;;  %v3429_v16 = vmul.f32 0.2, %v3318_v47  ;;  %vm3397_vm2 = vcmp.gt.f32.partialorder %v3318_v47, 0.0 }
 0x4c4   :  { %v2829_v18 = vadd.f32 %v2828_v22, %v2740_v6  ;;  %v6283_v22 = vld [vmem:[#allocation51_spill] sm:$0xff]  ;;  %v6284_v6 = vld [vmem:[#allocation34_spill] sm:$0xff] }
 0x4c5   :  { %v5854_v58 = vsel %vm3397_vm2, %v3318_v47, %v3429_v16  ;;  %v2574_v36 = vadd.f32 %v6283_v22, %v5459_v35 }
 0x4c6   :  { %v2964_v2 = vmul.f32 0.2, %v2829_v18  ;;  %vm2900_vm4 = vcmp.gt.f32.partialorder %v2829_v18, 0.0 }
 0x4c8   :  { %v3319_v63 = vpop.f32.mrf.mxu1  ;;  %v3028_v61 = vsel %vm2900_vm4, %v2829_v18, %v2964_v2  ;;  %v6285_v18 = vld [vmem:[#allocation35_spill] sm:$0xff] }
 0x4c9   :  { %v3320_v19 = vadd.f32 %v3319_v63, %v3231_v8  ;;  %v2741_v50 = vpop.f32.mrf.mxu2  ;;  %v2663_v32 = vadd.f32 %v6285_v18, %v2574_v36  ;;  %v3249_v36 = vadd.f32 %v5839_v40, %v5858_v55 }
 0x4ca   :  { %v2742_v51 = vadd.f32 %v2741_v50, %v2653_v3  ;;  %v2830_v0 = vpop.f32.mrf.mxu3  ;;  %v3241_v3 = vadd.f32 %v5839_v40, %v5823_v24 }
 0x4cb   :  { %vm3398_vm3 = vcmp.gt.f32.partialorder %v3320_v19, 0.0  ;;  %v3430_v39 = vmul.f32 0.2, %v3320_v19 }
 0x4cc   :  { %v2831_v1 = vadd.f32 %v2830_v0, %v2742_v51 }
 0x4cd   :  { %v5856_v57 = vsel %vm3398_vm3, %v3320_v19, %v3430_v39 }
 0x4ce   :  { %vm2902_vm5 = vcmp.gt.f32.partialorder %v2831_v1, 0.0  ;;  %v2966_v28 = vmul.f32 0.2, %v2831_v1  ;;  %v3493_v31 = vpack.c.bf16 %v5856_v57, %v5854_v58 }
 0x4d0   :  { %v3322_v14 = vpop.f32.mrf.mxu1  ;;  %v3030_v48 = vsel %vm2902_vm5, %v2831_v1, %v2966_v28  ;;  %v5888_v1 = vpop.f32.mrf.mxu0 }
 0x4d1   :  { %v3323_v44 = vadd.f32 %v3322_v14, %v3234_v15  ;;  %v2744_v49 = vpop.f32.mrf.mxu2  ;;  %v3074_v41 = vpack.c.bf16 %v3030_v48, %v3028_v61 }
 0x4d2   :  { %v2833_v37 = vpop.f32.mrf.mxu3  ;;  %v2745_v9 = vadd.f32 %v2744_v49, %v5652_v25 }
 0x4d3   :  { %3361 = vmatmul.bf16.gmra.mxu1 %v3074_v41  ;;  %v3431_v17 = vmul.f32 0.2, %v3323_v44  ;;  %vm3399_vm6 = vcmp.gt.f32.partialorder %v3323_v44, 0.0 }
 0x4d4   :  { %v2834_v10 = vadd.f32 %v2833_v37, %v2745_v9 }
 0x4d5   :  { %v5872_v25 = vsel %vm3399_vm6, %v3323_v44, %v3431_v17  ;;  %v3244_v44 = vadd.f32 %v5839_v40, %v5830_v45  ;;  %v6287_v17 = vld [vmem:[#allocation52_spill] sm:$0xff] }
 0x4d6   :  { %v2968_v4 = vmul.f32 0.2, %v2834_v10  ;;  %vm2904_vm8 = vcmp.gt.f32.partialorder %v2834_v10, 0.0 }
 0x4d8   :  { %v3324_v26 = vpop.f32.mrf.mxu1  ;;  %v3032_v62 = vsel %vm2904_vm8, %v2834_v10, %v2968_v4  ;;  %v6286_v10 = vld [vmem:[#allocation36_spill] sm:$0xff] }
 0x4d9   :  { %v3325_v42 = vadd.f32 %v3324_v26, %v3236_v53  ;;  %v2746_v23 = vpop.f32.mrf.mxu2  ;;  %v2579_v26 = vadd.f32 %v6286_v10, %v5459_v35 }
 0x4da   :  { %v2747_v20 = vadd.f32 %v2746_v23, %v2658_v30  ;;  %v2835_v13 = vpop.f32.mrf.mxu3  ;;  %v5901_v23 = vpop.f32.mrf.mxu0 }
 0x4db   :  { %vm3400_vm7 = vcmp.gt.f32.partialorder %v3325_v42, 0.0  ;;  %v3432_v29 = vmul.f32 0.2, %v3325_v42 }
 0x4dc   :  { %v2836_v52 = vadd.f32 %v2835_v13, %v2747_v20  ;;  %v3246_v20 = vadd.f32 %v5839_v40, %v5841_v60  ;;  %v6288_v13 = vld [vmem:[#allocation53_spill] sm:$0xff] }
 0x4dd   :  { %v5874_v11 = vsel %vm3400_vm7, %v3325_v42, %v3432_v29  ;;  %v2668_v45 = vadd.f32 %v6288_v13, %v2579_v26 }
 0x4de   :  { %vm2906_vm9 = vcmp.gt.f32.partialorder %v2836_v52, 0.0  ;;  %v2970_v33 = vmul.f32 0.2, %v2836_v52  ;;  %v3494_v12 = vpack.c.bf16 %v5874_v11, %v5872_v25 }
 0x4e0   :  { %v3327_v38 = vpop.f32.mrf.mxu1  ;;  %v3034_v7 = vsel %vm2906_vm9, %v2836_v52, %v2970_v33 }
 0x4e1   :  { %v3328_v54 = vadd.f32 %v3327_v38, %v3239_v59  ;;  %v2749_v43 = vpop.f32.mrf.mxu2  ;;  %v3076_v47 = vpack.c.bf16 %v3034_v7, %v3032_v62 }
 0x4e2   :  { %v2838_v21 = vpop.f32.mrf.mxu3  ;;  %v2750_v8 = vadd.f32 %v2749_v43, %v6284_v6  ;;  %v5914_v6 = vpop.f32.mrf.mxu0 }
 0x4e3   :  { %3366 = vmatmul.bf16.gmra.mxu1 %v3076_v47  ;;  %v3433_v19 = vmul.f32 0.2, %v3328_v54  ;;  %vm3401_vm10 = vcmp.gt.f32.partialorder %v3328_v54, 0.0 }
 0x4e4   :  { %v2839_v63 = vadd.f32 %v2838_v21, %v2750_v8 }
 0x4e5   :  { %v5890_v14 = vsel %vm3401_vm10, %v3328_v54, %v3433_v19 }
 0x4e6   :  { %v2972_v28 = vmul.f32 0.2, %v2839_v63  ;;  %vm2908_vm12 = vcmp.gt.f32.partialorder %v2839_v63, 0.0 }
 0x4e8   :  { %v3329_v16 = vpop.f32.mrf.mxu1  ;;  %v3036_v41 = vsel %vm2908_vm12, %v2839_v63, %v2972_v28  ;;  %v6291_v28 = vld [vmem:[#allocation28_spill] sm:$0xff] }
 0x4e9   :  { %v3330_v50 = vadd.f32 %v3329_v16, %v3241_v3  ;;  %v2751_v51 = vpop.f32.mrf.mxu2 }
 0x4ea   :  { %v2752_v0 = vadd.f32 %v2751_v51, %v2663_v32  ;;  %v2840_v39 = vpop.f32.mrf.mxu3 }
 0x4eb   :  { %vm3402_vm11 = vcmp.gt.f32.partialorder %v3330_v50, 0.0  ;;  %v3434_v2 = vmul.f32 0.2, %v3330_v50 }
 0x4ec   :  { %v2841_v15 = vadd.f32 %v2840_v39, %v2752_v0  ;;  %v6290_v0 = vld [vmem:[#allocation27_spill] sm:$0xff] }
 0x4ed   :  { %v5892_v24 = vsel %vm3402_vm11, %v3330_v50, %v3434_v2  ;;  %v6289_v50 = vld [vmem:[#allocation38_spill] sm:$0xff]  ;;  %v3251_v2 = vadd.f32 %v5839_v40, %v5870_v34 }
 0x4ee   :  { %vm2910_vm13 = vcmp.gt.f32.partialorder %v2841_v15, 0.0  ;;  %v2974_v61 = vmul.f32 0.2, %v2841_v15  ;;  %v3495_v48 = vpack.c.bf16 %v5892_v24, %v5890_v14  ;;  %v2584_v51 = vadd.f32 %v6289_v50, %v5459_v35 }
 0x4f0   :  { %v3332_v49 = vpop.f32.mrf.mxu1  ;;  %v3038_v37 = vsel %vm2910_vm13, %v2841_v15, %v2974_v61  ;;  %v2673_v55 = vadd.f32 %v6291_v28, %v2584_v51 }
 0x4f1   :  { %v3333_v56 = vadd.f32 %v3332_v49, %v3244_v44  ;;  %v2754_v9 = vpop.f32.mrf.mxu2  ;;  %v3078_v53 = vpack.c.bf16 %v3038_v37, %v3036_v41  ;;  %v3263_v37 = vpop.f32.mrf.mxu0 }
 0x4f2   :  { %v2843_v30 = vpop.f32.mrf.mxu3  ;;  %v2755_v42 = vadd.f32 %v2754_v9, %v6287_v17 }
 0x4f3   :  { %3371 = vmatmul.bf16.gmra.mxu1 %v3078_v53  ;;  %v3435_v52 = vmul.f32 0.2, %v3333_v56  ;;  %vm3403_vm14 = vcmp.gt.f32.partialorder %v3333_v56, 0.0 }
 0x4f4   :  { %v2844_v29 = vadd.f32 %v2843_v30, %v2755_v42 }
 0x4f5   :  { %v5906_v47 = vsel %vm3403_vm14, %v3333_v56, %v3435_v52 }
 0x4f6   :  { %v2976_v54 = vmul.f32 0.2, %v2844_v29  ;;  %vm2912_vm0 = vcmp.gt.f32.partialorder %v2844_v29, 0.0 }
 0x4f8   :  { %v3334_v4 = vpop.f32.mrf.mxu1  ;;  %v3040_v3 = vsel %vm2912_vm0, %v2844_v29, %v2976_v54  ;;  %v6294_v54 = vld [vmem:[#allocation49_spill] sm:$0xff] }
 0x4f9   :  { %v3335_v33 = vadd.f32 %v3334_v4, %v3246_v20  ;;  %v2756_v59 = vpop.f32.mrf.mxu2 }
 0x4fa   :  { %v2757_v38 = vadd.f32 %v2756_v59, %v2668_v45  ;;  %v2845_v62 = vpop.f32.mrf.mxu3 }
 0x4fb   :  { %vm3404_vm15 = vcmp.gt.f32.partialorder %v3335_v33, 0.0  ;;  %v3436_v7 = vmul.f32 0.2, %v3335_v33 }
 0x4fc   :  { %v2846_v43 = vadd.f32 %v2845_v62, %v2757_v38  ;;  %v3265_v38 = vpop.f32.mrf.mxu0  ;;  %v6293_v62 = vld [vmem:[#allocation33_spill] sm:$0xff] }
 0x4fd   :  { %v5908_v21 = vsel %vm3404_vm15, %v3335_v33, %v3436_v7  ;;  %v6292_v33 = vld [vmem:[#allocation40_spill] sm:$0xff] }
 0x4fe   :  { %vm2914_vm1 = vcmp.gt.f32.partialorder %v2846_v43, 0.0  ;;  %v2978_v60 = vmul.f32 0.2, %v2846_v43  ;;  %v3496_v22 = vpack.c.bf16 %v5908_v21, %v5906_v47  ;;  %v2589_v59 = vadd.f32 %v6292_v33, %v5459_v35 }
 0x4ff   :  { %v3266_v33 = vadd.f32 %v5839_v40, %v3265_v38 }
 0x500   :  { %v3337_v8 = vpop.f32.mrf.mxu1  ;;  %v3042_v18 = vsel %vm2914_vm1, %v2846_v43, %v2978_v60  ;;  %v2678_v43 = vadd.f32 %v6294_v54, %v2589_v59 }
 0x501   :  { %v3338_v32 = vadd.f32 %v3337_v8, %v3249_v36  ;;  %v2759_v63 = vpop.f32.mrf.mxu2  ;;  %v3080_v16 = vpack.c.bf16 %v3042_v18, %v3040_v3 }
 0x502   :  { %v2848_v19 = vpop.f32.mrf.mxu3  ;;  %v2760_v39 = vadd.f32 %v2759_v63, %v6290_v0 }
 0x503   :  { %3376 = vmatmul.bf16.gmra.mxu1 %v3080_v16  ;;  %v3437_v44 = vmul.f32 0.2, %v3338_v32  ;;  %vm3405_vm2 = vcmp.gt.f32.partialorder %v3338_v32, 0.0 }
 0x504   :  { %v2849_v15 = vadd.f32 %v2848_v19, %v2760_v39  ;;  %v3268_v16 = vpop.f32.mrf.mxu0 }
 0x505   :  { %v5922_v26 = vsel %vm3405_vm2, %v3338_v32, %v3437_v44  ;;  %v3269_v38 = vadd.f32 %v5839_v40, %v3268_v16 }
 0x506   :  { %v2980_v30 = vmul.f32 0.2, %v2849_v15  ;;  %vm2916_vm4 = vcmp.gt.f32.partialorder %v2849_v15, 0.0 }
 0x508   :  { %v3339_v61 = vpop.f32.mrf.mxu1  ;;  %v3044_v13 = vsel %vm2916_vm4, %v2849_v15, %v2980_v30  ;;  %v6295_v15 = vld [vmem:[#allocation31_spill] sm:$0xff] }
 0x509   :  { %v3340_v49 = vadd.f32 %v3339_v61, %v3251_v2  ;;  %v2761_v41 = vpop.f32.mrf.mxu2 }
 0x50a   :  { %v2762_v56 = vadd.f32 %v2761_v41, %v2673_v55  ;;  %v2850_v9 = vpop.f32.mrf.mxu3  ;;  %v2594_v55 = vadd.f32 %v5775_v5, %v5459_v35  ;;  %v3264_v5 = vadd.f32 %v5839_v40, %v3263_v37 }
 0x50b   :  { %vm3406_vm3 = vcmp.gt.f32.partialorder %v3340_v49, 0.0  ;;  %v3438_v53 = vmul.f32 0.2, %v3340_v49 }
 0x50c   :  { %v2851_v10 = vadd.f32 %v2850_v9, %v2762_v56  ;;  %v2683_v44 = vadd.f32 %v5834_v46, %v2594_v55 }
 0x50d   :  { %v5924_v17 = vsel %vm3406_vm3, %v3340_v49, %v3438_v53  ;;  %v3270_v49 = vpop.f32.mrf.mxu0 }
 0x50e   :  { %vm2918_vm5 = vcmp.gt.f32.partialorder %v2851_v10, 0.0  ;;  %v2982_v34 = vmul.f32 0.2, %v2851_v10  ;;  %v3497_v42 = vpack.c.bf16 %v5924_v17, %v5922_v26 }
 0x510   :  { %v5928_v20 = vpop.f32.mrf.mxu1  ;;  %v3046_v45 = vsel %vm2918_vm5, %v2851_v10, %v2982_v34 }
 0x511   :  { %v2764_v29 = vpop.f32.mrf.mxu2  ;;  %v3082_v4 = vpack.c.bf16 %v3046_v45, %v3044_v13 }
 0x512   :  { %v2853_v52 = vpop.f32.mrf.mxu3  ;;  %v2765_v7 = vadd.f32 %v2764_v29, %v6293_v62  ;;  %v3261_v62 = vadd.f32 %v5839_v40, %v5914_v6  ;;  %v3256_v6 = vadd.f32 %v5839_v40, %v5888_v1 }
 0x513   :  { %3381 = vmatmul.bf16.gmra.mxu1 %v3082_v4 }
 0x514   :  { %v2854_v60 = vadd.f32 %v2853_v52, %v2765_v7 }
 0x515   :  { %v3273_v35 = vpop.f32.mrf.mxu0 }
 0x516   :  { %v2984_v32 = vmul.f32 0.2, %v2854_v60  ;;  %vm2920_vm6 = vcmp.gt.f32.partialorder %v2854_v60, 0.0 }
 0x518   :  { %v5934_v36 = vpop.f32.mrf.mxu1  ;;  %v3048_v51 = vsel %vm2920_vm6, %v2854_v60, %v2984_v32 }
 0x519   :  { %v2766_v8 = vpop.f32.mrf.mxu2 }
 0x51a   :  { %v2767_v3 = vadd.f32 %v2766_v8, %v2678_v43  ;;  %v2855_v18 = vpop.f32.mrf.mxu3  ;;  %v3259_v43 = vadd.f32 %v5839_v40, %v5901_v23  ;;  %v3254_v23 = vadd.f32 %v5839_v40, %v5880_v27 }
 0x51c   :  { %v2856_v63 = vadd.f32 %v2855_v18, %v2767_v3 }
 0x51d   :  { %v3275_v3 = vpop.f32.mrf.mxu0 }
 0x51e   :  { %vm2922_vm7 = vcmp.gt.f32.partialorder %v2856_v63, 0.0  ;;  %v2986_v19 = vmul.f32 0.2, %v2856_v63 }
 0x520   :  { %v3347_v50 = vpop.f32.mrf.mxu1  ;;  %v3050_v0 = vsel %vm2922_vm7, %v2856_v63, %v2986_v19 }
 0x521   :  { %v2769_v39 = vpop.f32.mrf.mxu2  ;;  %v3084_v2 = vpack.c.bf16 %v3050_v0, %v3048_v51  ;;  %v3348_v18 = vadd.f32 %v3347_v50, %v3259_v43  ;;  %v3345_v50 = vadd.f32 %v5934_v36, %v3256_v6 }
 0x522   :  { %v2858_v28 = vpop.f32.mrf.mxu3  ;;  %v2770_v61 = vadd.f32 %v2769_v39, %v6295_v15 }
 0x523   :  { %3386 = vmatmul.bf16.gmra.mxu1 %v3084_v2  ;;  %v3441_v0 = vmul.f32 0.2, %v3348_v18  ;;  %vm3409_vm13 = vcmp.gt.f32.partialorder %v3348_v18, 0.0  ;;  %vm3408_vm14 = vcmp.gt.f32.partialorder %v3345_v50, 0.0 }
 0x524   :  { %v2859_v41 = vadd.f32 %v2858_v28, %v2770_v61  ;;  %v3343_v28 = vadd.f32 %v5928_v20, %v3254_v23  ;;  %v3271_v61 = vadd.f32 %v5839_v40, %v3270_v49 }
 0x525   :  { %v3473_v55 = vsel %vm3409_vm13, %v3348_v18, %v3441_v0  ;;  %v3278_v16 = vpop.f32.mrf.mxu0 }
 0x526   :  { %v2988_v10 = vmul.f32 0.2, %v2859_v41  ;;  %vm2924_vm8 = vcmp.gt.f32.partialorder %v2859_v41, 0.0  ;;  %v3439_v1 = vmul.f32 0.2, %v3343_v28  ;;  %vm3407_vm15 = vcmp.gt.f32.partialorder %v3343_v28, 0.0 }
 0x528   :  { %v3349_v56 = vpop.f32.mrf.mxu1  ;;  %v3052_v29 = vsel %vm2924_vm8, %v2859_v41, %v2988_v10 }
 0x529   :  { %v2771_v9 = vpop.f32.mrf.mxu2  ;;  %v3350_v60 = vadd.f32 %v3349_v56, %v3261_v62 }
 0x52a   :  { %v2772_v53 = vadd.f32 %v2771_v9, %v2683_v44  ;;  %v2860_v30 = vpop.f32.mrf.mxu3  ;;  %v3440_v44 = vmul.f32 0.2, %v3345_v50 }
 0x52b   :  { %v3442_v19 = vmul.f32 0.2, %v3350_v60  ;;  %vm3410_vm12 = vcmp.gt.f32.partialorder %v3350_v60, 0.0 }
 0x52c   :  { %v2861_v34 = vadd.f32 %v2860_v30, %v2772_v53  ;;  %v3472_v36 = vsel %vm3408_vm14, %v3345_v50, %v3440_v44  ;;  %v3471_v53 = vsel %vm3407_vm15, %v3343_v28, %v3439_v1 }
 0x52d   :  { %v3474_v2 = vsel %vm3410_vm12, %v3350_v60, %v3442_v19  ;;  %v3498_v10 = vpack.c.bf16 %v3472_v36, %v3471_v53 }
 0x52e   :  { %vm2926_vm9 = vcmp.gt.f32.partialorder %v2861_v34, 0.0  ;;  %v2990_v13 = vmul.f32 0.2, %v2861_v34  ;;  %v3499_v15 = vpack.c.bf16 %v3474_v2, %v3473_v55 }
 0x530   :  { %v3352_v45 = vpop.f32.mrf.mxu1  ;;  %v3054_v4 = vsel %vm2926_vm9, %v2861_v34, %v2990_v13  ;;  %v3274_v34 = vadd.f32 %v5839_v40, %v3273_v35  ;;  %v3280_v13 = vpop.f32.mrf.mxu0 }
 0x531   :  { %v3086_v52 = vpack.c.bf16 %v3054_v4, %v3052_v29  ;;  %v3353_v46 = vadd.f32 %v3352_v45, %v3264_v5  ;;  %v3276_v4 = vadd.f32 %v5839_v40, %v3275_v3 }
 0x533   :  { %3391 = vmatmul.bf16.gmra.mxu1 %v3086_v52  ;;  %v3443_v7 = vmul.f32 0.2, %v3353_v46  ;;  %vm3411_vm10 = vcmp.gt.f32.partialorder %v3353_v46, 0.0 }
 0x535   :  { %v3475_v37 = vsel %vm3411_vm10, %v3353_v46, %v3443_v7 }
 0x538   :  { %v3354_v59 = vpop.f32.mrf.mxu1 }
 0x539   :  { %v3355_v54 = vadd.f32 %v3354_v59, %v3266_v33  ;;  %v3283_v33 = vpop.f32.mrf.mxu0 }
 0x53b   :  { %vm3412_vm11 = vcmp.gt.f32.partialorder %v3355_v54, 0.0  ;;  %v3444_v8 = vmul.f32 0.2, %v3355_v54 }
 0x53d   :  { %v3476_v32 = vsel %vm3412_vm11, %v3355_v54, %v3444_v8  ;;  %v3279_v54 = vadd.f32 %v5839_v40, %v3278_v16 }
 0x53e   :  { %v3500_v63 = vpack.c.bf16 %v3476_v32, %v3475_v37 }
 0x540   :  { %v3357_v51 = vpop.f32.mrf.mxu1  ;;  %3517 = vmatpush.bf16.xpose.msrb.mxu2 %v3500_v63 }
 0x541   :  { %v3358_v39 = vadd.f32 %v3357_v51, %v3269_v38  ;;  %v3285_v17 = vpop.f32.mrf.mxu0 }
 0x542   :  { %v3286_v24 = vadd.f32 %v5839_v40, %v3285_v17 }
 0x543   :  { %v3445_v56 = vmul.f32 0.2, %v3358_v39  ;;  %vm3413_vm0 = vcmp.gt.f32.partialorder %v3358_v39, 0.0 }
 0x545   :  { %v5954_v30 = vsel %vm3413_vm0, %v3358_v39, %v3445_v56  ;;  %vm3546_vm0 = vcmask 1040384  }
 0x548   :  { %v3359_v41 = vpop.f32.mrf.mxu1  ;;  %3518 = vmatpush.bf16.xpose.msrb.mxu2 %v3499_v15 }
 0x549   :  { %v3360_v9 = vadd.f32 %v3359_v41, %v3271_v61  ;;  %v3288_v47 = vpop.f32.mrf.mxu0 }
 0x54a   :  { %v3289_v11 = vadd.f32 %v5839_v40, %v3288_v47 }
 0x54b   :  { %vm3414_vm1 = vcmp.gt.f32.partialorder %v3360_v9, 0.0  ;;  %v3446_v27 = vmul.f32 0.2, %v3360_v9 }
 0x54d   :  { %v5956_v20 = vsel %vm3414_vm1, %v3360_v9, %v3446_v27 }
 0x54e   :  { %v3501_v49 = vpack.c.bf16 %v5956_v20, %v5954_v30 }
 0x550   :  { %v3362_v45 = vpop.f32.mrf.mxu1  ;;  %3519 = vmatpush.bf16.xpose.msrb.mxu2 %v3498_v10 }
 0x551   :  { %v3363_v29 = vadd.f32 %v3362_v45, %v3274_v34 }
 0x553   :  { %v3447_v5 = vmul.f32 0.2, %v3363_v29  ;;  %vm3415_vm2 = vcmp.gt.f32.partialorder %v3363_v29, 0.0 }
 0x555   :  { %v5965_v62 = vsel %vm3415_vm2, %v3363_v29, %v3447_v5 }
 0x558   :  { %v3364_v52 = vpop.f32.mrf.mxu1  ;;  %3520 = vmatpush.bf16.xpose.msrb.mxu2 %v3497_v42  ;;  %v3281_v42 = vadd.f32 %v5839_v40, %v3280_v13 }
 0x559   :  { %v3365_v46 = vadd.f32 %v3364_v52, %v3276_v4 }
 0x55b   :  { %vm3416_vm3 = vcmp.gt.f32.partialorder %v3365_v46, 0.0  ;;  %v3448_v59 = vmul.f32 0.2, %v3365_v46 }
 0x55d   :  { %v5967_v35 = vsel %vm3416_vm3, %v3365_v46, %v3448_v59 }
 0x55e   :  { %v3502_v7 = vpack.c.bf16 %v5967_v35, %v5965_v62 }
 0x560   :  { %v3367_v43 = vpop.f32.mrf.mxu1  ;;  %3521 = vmatpush.bf16.xpose.msrb.mxu2 %v3496_v22  ;;  %v3284_v22 = vadd.f32 %v5839_v40, %v3283_v33 }
 0x561   :  { %v3368_v26 = vadd.f32 %v3367_v43, %v3279_v54 }
 0x563   :  { %v3449_v8 = vmul.f32 0.2, %v3368_v26  ;;  %vm3417_vm4 = vcmp.gt.f32.partialorder %v3368_v26, 0.0 }
 0x565   :  { %v5979_v37 = vsel %vm3417_vm4, %v3368_v26, %v3449_v8 }
 0x568   :  { %v3369_v60 = vpop.f32.mrf.mxu1  ;;  %3522 = vmatpush.bf16.xpose.msrb.mxu2 %v3495_v48  ;;  %v3290_v48 = vpop.f32.mrf.mxu0 }
 0x569   :  { %v3370_v3 = vadd.f32 %v3369_v60, %v3281_v42  ;;  %v3291_v58 = vadd.f32 %v5839_v40, %v3290_v48 }
 0x56b   :  { %vm3418_vm5 = vcmp.gt.f32.partialorder %v3370_v3, 0.0  ;;  %v3450_v18 = vmul.f32 0.2, %v3370_v3 }
 0x56d   :  { %v5981_v32 = vsel %vm3418_vm5, %v3370_v3, %v3450_v18 }
 0x56e   :  { %v3503_v21 = vpack.c.bf16 %v5981_v32, %v5979_v37 }
 0x570   :  { %v3372_v63 = vpop.f32.mrf.mxu1  ;;  %3523 = vmatpush.bf16.xpose.msrb.mxu2 %v3494_v12  ;;  %v3293_v50 = vpop.f32.mrf.mxu0 }
 0x571   :  { %v3373_v14 = vadd.f32 %v3372_v63, %v3284_v22  ;;  %v3294_v3 = vadd.f32 %v5839_v40, %v3293_v50 }
 0x573   :  { %v3451_v19 = vmul.f32 0.2, %v3373_v14  ;;  %vm3419_vm6 = vcmp.gt.f32.partialorder %v3373_v14, 0.0 }
 0x575   :  { %v5993_v0 = vsel %vm3419_vm6, %v3373_v14, %v3451_v19 }
 0x578   :  { %v3374_v38 = vpop.f32.mrf.mxu1  ;;  %3524 = vmatpush.bf16.xpose.msrb.mxu2 %v3493_v31  ;;  %v3295_v55 = vpop.f32.mrf.mxu0 }
 0x579   :  { %v3375_v51 = vadd.f32 %v3374_v38, %v3286_v24  ;;  %v3296_v60 = vadd.f32 %v5839_v40, %v3295_v55 }
 0x57b   :  { %vm3420_vm7 = vcmp.gt.f32.partialorder %v3375_v51, 0.0  ;;  %v3452_v6 = vmul.f32 0.2, %v3375_v51 }
 0x57d   :  { %v5995_v39 = vsel %vm3420_vm7, %v3375_v51, %v3452_v6  ;;  %v3509_v6 = vld [vmem:[%s6032_s7] sm:$0x1]  ;;  %s4490_s7 = smov [#allocation12]  }
 0x57e   :  { %v3504_v25 = vpack.c.bf16 %v5995_v39, %v5993_v0  ;;  %s3559_s20 = sshll.u32 %s4490_s7, 4  ;;  %s3560_s20 = int_to_ptr.vmem [resolvable:$true] %s3559_s20 }
 0x57f   :  { %3525 = vmatmul.bf16.vlgmr.msrb.gmra.mxu2 %v3509_v6 }
 0x580   :  { %v3377_v12 = vpop.f32.mrf.mxu1  ;;  %v3298_v41 = vpop.f32.mrf.mxu0 }
 0x581   :  { %v3378_v23 = vadd.f32 %v3377_v12, %v3289_v11  ;;  %v3299_v46 = vadd.f32 %v5839_v40, %v3298_v41  ;;  %v4489_v11 = vmov 0  }
 0x582   :  { %4322 = vset.pattern.permute.xlu0 %v4489_v11 }
 0x583   :  { %v3453_v31 = vmul.f32 0.2, %v3378_v23  ;;  %vm3421_vm8 = vcmp.gt.f32.partialorder %v3378_v23, 0.0 }
 0x585   :  { %v3485_v16 = vsel %vm3421_vm8, %v3378_v23, %v3453_v31 }
 0x588   :  { %v3379_v57 = vpop.f32.mrf.mxu1  ;;  %v3300_v56 = vpop.f32.mrf.mxu0 }
 0x589   :  { %v3380_v2 = vadd.f32 %v3379_v57, %v3291_v58  ;;  %v3301_v4 = vadd.f32 %v5839_v40, %v3300_v56 }
 0x58b   :  { %vm3422_vm9 = vcmp.gt.f32.partialorder %v3380_v2, 0.0  ;;  %v3454_v28 = vmul.f32 0.2, %v3380_v2 }
 0x58d   :  { %v3486_v15 = vsel %vm3422_vm9, %v3380_v2, %v3454_v28 }
 0x58e   :  { %v3505_v61 = vpack.c.bf16 %v3486_v15, %v3485_v16 }
 0x590   :  { %v3382_v44 = vpop.f32.mrf.mxu1  ;;  %v3303_v36 = vpop.f32.mrf.mxu0 }
 0x591   :  { %v3304_v10 = vadd.f32 %v5839_v40, %v3303_v36  ;;  %v3383_v22 = vadd.f32 %v3382_v44, %v3294_v3 }
 0x593   :  { %v3455_v48 = vmul.f32 0.2, %v3383_v22  ;;  %vm3423_vm15 = vcmp.gt.f32.partialorder %v3383_v22, 0.0 }
 0x595   :  { %v3487_v19 = vsel %vm3423_vm15, %v3383_v22, %v3455_v48 }
 0x598   :  { %v3384_v1 = vpop.f32.mrf.mxu1  ;;  %v3305_v34 = vpop.f32.mrf.mxu0 }
 0x599   :  { %v3306_v45 = vadd.f32 %v5839_v40, %v3305_v34  ;;  %v3385_v18 = vadd.f32 %v3384_v1, %v3296_v60  ;;  %v3510_v40 = vld [vmem:[#allocation2] sm:$0x1] }
 0x59a   :  { %3513 = vperm.xlu0 %4322, %v3510_v40  }
 0x59b   :  { %v3456_v24 = vmul.f32 0.2, %v3385_v18  ;;  %vm3424_vm14 = vcmp.gt.f32.partialorder %v3385_v18, 0.0 }
 0x59d   :  { %v3488_v38 = vsel %vm3424_vm14, %v3385_v18, %v3456_v24 }
 0x59e   :  { %v3506_v51 = vpack.c.bf16 %v3488_v38, %v3487_v19 }
 0x5a0   :  { %v3387_v9 = vpop.f32.mrf.mxu1 }
 0x5a1   :  { %v3388_v54 = vadd.f32 %v3387_v9, %v3299_v46 }
 0x5a3   :  { %v3457_v8 = vmul.f32 0.2, %v3388_v54  ;;  %vm3425_vm13 = vcmp.gt.f32.partialorder %v3388_v54, 0.0 }
 0x5a5   :  { %v3489_v63 = vsel %vm3425_vm13, %v3388_v54, %v3457_v8 }
 0x5a8   :  { %v3389_v27 = vpop.f32.mrf.mxu1 }
 0x5a9   :  { %v3390_v33 = vadd.f32 %v3389_v27, %v3301_v4 }
 0x5ab   :  { %v3458_v42 = vmul.f32 0.2, %v3390_v33  ;;  %vm3426_vm12 = vcmp.gt.f32.partialorder %v3390_v33, 0.0 }
 0x5ad   :  { %v3490_v47 = vsel %vm3426_vm12, %v3390_v33, %v3458_v42 }
 0x5ae   :  { %v3507_v14 = vpack.c.bf16 %v3490_v47, %v3489_v63 }
 0x5b0   :  { %v3392_v53 = vpop.f32.mrf.mxu1 }
 0x5b1   :  { %v3393_v13 = vadd.f32 %v3392_v53, %v3304_v10 }
 0x5b3   :  { %v3459_v52 = vmul.f32 0.2, %v3393_v13  ;;  %vm3427_vm10 = vcmp.gt.f32.partialorder %v3393_v13, 0.0 }
 0x5b5   :  { %v3491_v43 = vsel %vm3427_vm10, %v3393_v13, %v3459_v52 }
 0x5b8   :  { %v3394_v29 = vpop.f32.mrf.mxu1 }
 0x5b9   :  { %v3395_v5 = vadd.f32 %v3394_v29, %v3306_v45 }
 0x5bb   :  { %vm3428_vm11 = vcmp.gt.f32.partialorder %v3395_v5, 0.0  ;;  %v3460_v59 = vmul.f32 0.2, %v3395_v5 }
 0x5bd   :  { %v3492_v26 = vsel %vm3428_vm11, %v3395_v5, %v3460_v59 }
 0x5be   :  { %v3508_v17 = vpack.c.bf16 %v3492_v26, %v3491_v43 }
 0x5c0   :  { %3530 = vmatpush.bf16.xpose.msrb.mxu3 %v3508_v17 }
 0x5c8   :  { %3531 = vmatpush.bf16.xpose.msrb.mxu3 %v3507_v14 }
 0x5d0   :  { %3532 = vmatpush.bf16.xpose.msrb.mxu3 %v3506_v51 }
 0x5d8   :  { %3533 = vmatpush.bf16.xpose.msrb.mxu3 %v3505_v61 }
 0x5e0   :  { %3534 = vmatpush.bf16.xpose.msrb.mxu3 %v3504_v25  ;;  %v3549_v25 = vlaneseq }
 0x5e2   :  { %vm3551_vm1 = vcmp.lt.s32.totalorder %v3549_v25, 256 }
 0x5e8   :  { %3535 = vmatpush.bf16.xpose.msrb.mxu3 %v3503_v21 }
 0x5f0   :  { %3536 = vmatpush.bf16.xpose.msrb.mxu3 %v3502_v7 }
 0x5f8   :  { %3537 = vmatpush.bf16.xpose.msrb.mxu3 %v3501_v49 }
 0x5ff   :  { %3538 = vmatmul.bf16.vlgmr.msrb.gmra.mxu3 %v3509_v6 }
 0x602   :  { %v3526_v12 = vpop.f32.mrf.mxu2 }
 0x60a   :  { %v3528_v23 = vpop.f32.mrf.mxu2 }
 0x60c   :  { %v3514_v0 = vpop.permute.xlu0 %3513 }
 0x60d   :  { %v3516_v39 = vperm.slane %v3514_v0, 0 }
 0x60f   :  { %v3527_v62 = vadd.f32 %v3526_v12, %v3516_v39 }
 0x682   :  { %v3539_v50 = vpop.f32.mrf.mxu3 }
 0x683   :  { %v3540_v58 = vadd.f32 %v3539_v50, %v3516_v39 }
 0x685   :  { %v3545_v35 = vrot.slane %v3540_v58, 7 }
 0x687   :  { %v3547_v30 = vsel %vm3546_vm0, %v3527_v62, %v3545_v35 }
 0x688   :  { %3553 = vst.msk [vmem:[#allocation12] sm:$0x3] %vm3551_vm1, %v3547_v30 }
 0x689   :  { %3564 = dma.vmem_to_hbm [thread:$0]  %s3560_s20, 32, %s3562_s23, [#allocation5]  }
 0x68a   :  { %v3541_v20 = vpop.f32.mrf.mxu3 }
 0x68b   :  { %4476 = dma.done.wait [#allocation5], 32  }
 0x68c   :  { %4477 = vsyncadd [#allocation5], 4294967264 }
 0x68d   :  { %3569 = vsyncpa [#allocation4], 1 }
 0x68e   :  { %3570 = vsyncpa [#allocation7], 1 }
 0x68f   :  { %3571 = vsyncpa [#allocation10], 1 }
 0x690   :  { %3572 = vsyncpa [#allocation5], 1 }

</bundles_post_ra>
